<compile_context>
chip_gen: v7x
topology: tpu7x:2x2x1
jax: 0.10.0
libtpu: 0.0.40
codegen_flags: <defaults>
</compile_context>

<pallas_src>
import jax
import jax.numpy as jnp
from jax.experimental import pallas as pl
from jax.experimental.pallas import tpu as pltpu


# ------------------------------ model constants ---------------------------- #
IMG = 28                                   # MNIST input
C1, KSZ1 = 10, 5                           # conv1: 1 -> 10, k=5
C2, KSZ2 = 20, 5                           # conv2: 10 -> 20, k=5
HID, NCLS = 50, 10                         # fc1 hidden, classes
CP = 128                                   # padded lane width (channels / hidden / logits)
OH1, PH1 = IMG - KSZ1 + 1, (IMG - KSZ1 + 1) // 2      # 24, 12
OH2, PH2 = PH1 - KSZ2 + 1, (PH1 - KSZ2 + 1) // 2      # 8, 4
NSP = PH2 * PH2                                       # 16 spatial positions feeding fc1
KG1 = (KSZ1 * KSZ1 * 1 + 31) // 32 * 32               # 32  (per-pool-pos patch depth, conv1)
KG2 = (KSZ2 * KSZ2 * C1 + 31) // 32 * 32              # 256 (per-pool-pos patch depth, conv2)


def _round_up(x, m):
    return (x + m - 1) // m * m


def _pad_axis(a, axis, target):
    pad = target - a.shape[axis]
    if pad == 0:
        return a
    widths = [(0, 0)] * a.ndim
    widths[axis] = (0, pad)
    return jnp.pad(a, widths)


def _pick_tile(n_rows, cap, min_steps=8):
    """Row tile: multiple of 8, capped for VMEM, aiming for >= min_steps grid steps
    (keeps both v7x TensorCores busy and the double-buffer pipeline overlapped)."""
    t = _round_up(max(1, -(-n_rows // min_steps)), 8)
    return int(max(8, min(t, cap)))


def _chip_tuning():
    """Generation-aware tile caps + scoped-VMEM request."""
    vmem = 0
    try:
        info = pltpu.get_tpu_info()
        for name in ("vmem_capacity_bytes", "vmem_size_bytes", "vmem_bytes"):
            v = getattr(info, name, None)
            if v:
                vmem = int(v)
                break
    except Exception:
        vmem = 0
    if vmem >= 100 * 1024 * 1024:                     # v5e / v6e class (128 MiB VMEM)
        return 4096, 256, min(96 * 1024 * 1024, (vmem * 3) // 4)
    if vmem > 0:                                      # v7x class (64 MiB VMEM)
        return 2048, 128, (vmem * 3) // 4
    return 1024, 64, None                             # unknown: stay under default scoped limit


_TM_CAP, _TB_CAP, _VMEM_LIMIT = _chip_tuning()


# ----------------------------- Pallas kernels ------------------------------ #

def conv_pool_relu_kernel(p_ref, w_ref, b_ref, o_ref):
    """Fused conv (lane-packed im2col matmul) + 2x2 max-pool + bias + ReLU, one row tile.

    p_ref: (TM, 4*KG)  bf16  4 pool positions packed into lanes, KG-deep patch each
    w_ref: (4*KG, 4*C) bf16  block-diagonal flattened conv weight
    b_ref: (1, C)      f32
    o_ref: (TM, C)     bf16  pooled + biased + ReLU'd rows (C = 128, lane dense)
    """
    C = o_ref.shape[-1]
    acc = jnp.dot(p_ref[...], w_ref[...], preferred_element_type=jnp.float32)   # (TM, 4*C)
    # 4 pool positions live in aligned 128-lane column groups -> cheap VPU max.
    pooled = jnp.maximum(jnp.maximum(acc[:, 0 * C:1 * C], acc[:, 1 * C:2 * C]),
                         jnp.maximum(acc[:, 2 * C:3 * C], acc[:, 3 * C:4 * C]))
    # Bias commutes with the window max and relu(max) == max(relu): matches
    # F.relu(F.max_pool2d(conv(x), 2)) exactly.
    o_ref[...] = jnp.maximum(pooled + b_ref[...], 0.0).astype(o_ref.dtype)


def conv2_mlp_kernel(p_ref, w2_ref, b2_ref, w1s_ref, b1_ref, wf2_ref, bf2_ref, o_ref):
    """Fused conv2(+pool+ReLU) -> fc1(+ReLU) -> fc2 -> log_softmax for one batch tile.

    p_ref:   (16, TB, 1024) bf16  spatial-major conv2 patches (4 pool positions packed
                                  into lanes, K=250 padded to 256 per position)
    w2_ref:  (1024, 512)    bf16  block-diagonal conv2 weight (4 groups of 256 x 128)
    b2_ref:  (1, 128)       f32
    w1s_ref: (16, 128, 128) bf16  fc1 weight split per spatial position (PyTorch
                                  view(-1, 320) ordering folded in)
    b1_ref:  (1, 128)       f32
    wf2_ref: (128, 128)     bf16  fc2 weight (50->128 rows, 10->128 cols zero-padded)
    bf2_ref: (1, 128)       f32   fc2 bias; padded logit lanes hold -1e9
    o_ref:   (TB, 128)      f32   log-probs (first 10 lanes real)
    """
    S, TB, KW = p_ref.shape
    C = o_ref.shape[-1]

    # conv2 + 2x2 max-pool + bias + ReLU (one MXU pass; TB % 8 == 0 -> free merge).
    x = p_ref[...].reshape(S * TB, KW)
    acc = jnp.dot(x, w2_ref[...], preferred_element_type=jnp.float32)           # (S*TB, 4*C)
    pooled = jnp.maximum(jnp.maximum(acc[:, 0 * C:1 * C], acc[:, 1 * C:2 * C]),
                         jnp.maximum(acc[:, 2 * C:3 * C], acc[:, 3 * C:4 * C]))
    f2 = jnp.maximum(pooled + b2_ref[...], 0.0).astype(jnp.bfloat16)             # (S*TB, C)

    # fc1 as an accumulation over the 16 spatial positions (rows are spatial-major,
    # so each slice below is sublane-tile aligned).
    h = jnp.zeros((TB, C), jnp.float32) + b1_ref[...]
    for s in range(S):                                    # static, 16 small MXU passes
        h = h + jnp.dot(f2[s * TB:(s + 1) * TB, :], w1s_ref[s],
                        preferred_element_type=jnp.float32)
    h = jnp.maximum(h, 0.0).astype(jnp.bfloat16)

    # fc2 + numerically-stable log_softmax (padded lanes carry -1e9 bias -> exact).
    z = jnp.dot(h, wf2_ref[...], preferred_element_type=jnp.float32) + bf2_ref[...]
    m = jnp.max(z, axis=-1, keepdims=True)
    lse = jnp.log(jnp.sum(jnp.exp(z - m), axis=-1, keepdims=True))
    o_ref[...] = (z - m - lse).astype(o_ref.dtype)


# ----------------------------- kernel wrappers ----------------------------- #

def conv_pool_relu(patches, wbd, bias):
    """patches: (M, 4*KG) bf16; wbd: (4*KG, 4*C) bf16; bias: (1, C) f32 -> (M, C) bf16."""
    M, KW = patches.shape
    C = wbd.shape[1] // 4
    TM = _pick_tile(M, _TM_CAP)
    Mp = _round_up(M, TM)
    patches = _pad_axis(patches, 0, Mp)
    out = pl.pallas_call(
        conv_pool_relu_kernel,
        out_shape=jax.ShapeDtypeStruct((Mp, C), jnp.bfloat16),
        grid=(Mp // TM,),
        in_specs=[
            pl.BlockSpec((TM, KW), lambda i: (i, 0)),        # pipelined row tiles
            pl.BlockSpec(wbd.shape, lambda i: (0, 0)),       # resident weight
            pl.BlockSpec((1, C), lambda i: (0, 0)),          # resident bias
        ],
        out_specs=pl.BlockSpec((TM, C), lambda i: (i, 0)),
        compiler_params=pltpu.CompilerParams(
            dimension_semantics=("parallel",), vmem_limit_bytes=_VMEM_LIMIT),
    )(patches, wbd, bias)
    return out[:M]


def conv2_mlp_head(p2, w2bd, b2, w1s, b_fc1, w_fc2, b_fc2):
    """p2: (16, N, 1024) bf16 spatial-major patches -> (N, 128) f32 log-probs."""
    S, N, KW = p2.shape
    C = b_fc2.shape[1]
    TB = _pick_tile(N, _TB_CAP)
    Np = _round_up(N, TB)
    p2 = _pad_axis(p2, 1, Np)
    out = pl.pallas_call(
        conv2_mlp_kernel,
        out_shape=jax.ShapeDtypeStruct((Np, C), jnp.float32),
        grid=(Np // TB,),
        in_specs=[
            pl.BlockSpec((S, TB, KW), lambda i: (0, i, 0)),  # pipelined batch tiles
            pl.BlockSpec(w2bd.shape, lambda i: (0, 0)),      # resident conv2 weight
            pl.BlockSpec((1, C), lambda i: (0, 0)),
            pl.BlockSpec(w1s.shape, lambda i: (0, 0, 0)),    # resident fc1 slices
            pl.BlockSpec((1, C), lambda i: (0, 0)),
            pl.BlockSpec(w_fc2.shape, lambda i: (0, 0)),     # resident fc2 weight
            pl.BlockSpec((1, C), lambda i: (0, 0)),
        ],
        out_specs=pl.BlockSpec((TB, C), lambda i: (i, 0)),
        compiler_params=pltpu.CompilerParams(
            dimension_semantics=("parallel",), vmem_limit_bytes=_VMEM_LIMIT),
    )(p2, w2bd, b2, w1s, b_fc1, w_fc2, b_fc2)
    return out[:N]


# ------------------------------ JAX glue ----------------------------------- #

def im2col_nhwc(x, kh, kw):
    """x: (N, H, W, C) -> (N, OH, OW, kh*kw*C); patch order (kh, kw, c_in)."""
    N, H, W, C = x.shape
    OH, OW = H - kh + 1, W - kw + 1
    cols = []
    for dy in range(kh):
        for dx in range(kw):
            cols.append(x[:, dy:dy + OH, dx:dx + OW, :])
    return jnp.concatenate(cols, axis=-1)


def _pool_pack_lanes(patches, kg):
    """(N, OH, OW, K) -> (N, OH//2, OW//2, 4*kg): zero-pad K to kg, then pack the four
    2x2 pool-window positions into the lane dimension (lane-dense patch stream)."""
    patches = _pad_axis(patches, -1, kg)
    return jnp.concatenate(
        [patches[:, a::2, b::2, :] for a in (0, 1) for b in (0, 1)], axis=-1)


def _flatten_conv_w(w):
    """PyTorch (C_out, C_in, kh, kw) -> (kh*kw*C_in, C_out), matching im2col order."""
    return jnp.transpose(w, (2, 3, 1, 0)).reshape(-1, w.shape[0])


def _block_diag4(block):
    """(kg, cp) -> (4*kg, 4*cp) block-diagonal (one block per pool position)."""
    kg, cp = block.shape
    out = jnp.zeros((4 * kg, 4 * cp), block.dtype)
    for g in range(4):
        out = out.at[g * kg:(g + 1) * kg, g * cp:(g + 1) * cp].set(block)
    return out


def init_params(key, channel1=C1, channel2=C2, kernel1=KSZ1, kernel2=KSZ2):
    ks = jax.random.split(key, 8)
    lin1 = (IMG - (kernel1 - 1)) // 2
    lin1 = (lin1 - (kernel2 - 1)) // 2
    lin1 = int(lin1 ** 2 * channel2)  # 320
    return {
        "conv1_w": 0.1 * jax.random.normal(ks[0], (channel1, 1, kernel1, kernel1), jnp.float32),
        "conv1_b": 0.1 * jax.random.normal(ks[1], (channel1,), jnp.float32),
        "conv2_w": 0.1 * jax.random.normal(ks[2], (channel2, channel1, kernel2, kernel2), jnp.float32),
        "conv2_b": 0.1 * jax.random.normal(ks[3], (channel2,), jnp.float32),
        "fc1_w": 0.1 * jax.random.normal(ks[4], (HID, lin1), jnp.float32),
        "fc1_b": 0.1 * jax.random.normal(ks[5], (HID,), jnp.float32),
        "fc2_w": 0.1 * jax.random.normal(ks[6], (NCLS, HID), jnp.float32),
        "fc2_b": 0.1 * jax.random.normal(ks[7], (NCLS,), jnp.float32),
    }


def prepare_params(params):
    """One-time weight packing (hoisted out of the jitted forward)."""
    bf16, f32 = jnp.bfloat16, jnp.float32

    # conv1: (10,1,5,5) -> (25,10), zero-pad to (32,128), 4-group block-diagonal.
    w1 = jnp.pad(_flatten_conv_w(params["conv1_w"]),
                 ((0, KG1 - KSZ1 * KSZ1 * 1), (0, CP - C1)))
    w1bd = _block_diag4(w1).astype(bf16)                              # (128, 512)
    b1 = jnp.pad(params["conv1_b"], (0, CP - C1)).reshape(1, CP).astype(f32)

    # conv2: (20,10,5,5) -> (250,20), zero-pad to (256,128), block-diagonal.
    w2 = jnp.pad(_flatten_conv_w(params["conv2_w"]),
                 ((0, KG2 - KSZ2 * KSZ2 * C1), (0, CP - C2)))
    w2bd = _block_diag4(w2).astype(bf16)                              # (1024, 512)
    b2 = jnp.pad(params["conv2_b"], (0, CP - C2)).reshape(1, CP).astype(f32)

    # fc1: PyTorch view(-1, 320) flattens as c2*16 + (ii*4 + jj).  Split the weight per
    # spatial position s so the kernel contracts (spatial, channel) with no reshuffle.
    w_fc1 = params["fc1_w"].T                                          # (320, 50), row = c2*16+s
    w1s = jnp.stack([jnp.pad(w_fc1[s::NSP, :], ((0, CP - C2), (0, CP - HID)))
                     for s in range(NSP)], axis=0).astype(bf16)        # (16, 128, 128)
    b_fc1 = jnp.pad(params["fc1_b"], (0, CP - HID)).reshape(1, CP).astype(f32)

    # fc2 (+ -1e9 bias on padded logit lanes so the in-kernel log_softmax ignores them).
    w_fc2 = jnp.pad(params["fc2_w"].T, ((0, CP - HID), (0, CP - NCLS))).astype(bf16)
    b_fc2 = jnp.concatenate(
        [params["fc2_b"].astype(f32), jnp.full((CP - NCLS,), -1e9, f32)]).reshape(1, CP)

    return {"w1bd": w1bd, "b1": b1, "w2bd": w2bd, "b2": b2,
            "w1s": w1s, "b_fc1": b_fc1, "w_fc2": w_fc2, "b_fc2": b_fc2}


@jax.jit
def forward(x, prepped):
    N = x.shape[0]
    # NCHW -> NHWC once at the boundary; channels-last downstream.
    xh = jnp.transpose(x, (0, 2, 3, 1)).astype(jnp.bfloat16)           # (N, 28, 28, 1)

    # --- conv1 + max_pool2d(2) + relu : 28x28x1 -> 12x12x10 (lanes padded to 128) ---
    p1 = _pool_pack_lanes(im2col_nhwc(xh, KSZ1, KSZ1), KG1)            # (N, 12, 12, 128)
    p1 = p1.reshape(N * PH1 * PH1, 4 * KG1)                            # (N*144, 128)
    f1 = conv_pool_relu(p1, prepped["w1bd"], prepped["b1"])            # (N*144, 128) bf16
    f1 = f1[:, :C1].reshape(N, PH1, PH1, C1)                           # (N, 12, 12, 10)

    # --- conv2 + pool + relu + fc1 + relu + fc2 + log_softmax (one fused kernel) ---
    p2 = _pool_pack_lanes(im2col_nhwc(f1, KSZ2, KSZ2), KG2)            # (N, 4, 4, 1024)
    p2 = jnp.transpose(p2.reshape(N, NSP, 4 * KG2), (1, 0, 2))         # (16, N, 1024)
    out = conv2_mlp_head(p2, prepped["w2bd"], prepped["b2"], prepped["w1s"],
                         prepped["b_fc1"], prepped["w_fc2"], prepped["b_fc2"])
    return out[:, :NCLS]                                               # (N, 10) f32


def reference_forward(x, params):
    """Pure-JAX f32 reference matching the PyTorch module exactly."""
    def conv(z, w, b):
        y = jax.lax.conv_general_dilated(z, w, (1, 1), "VALID",
                                         dimension_numbers=("NCHW", "OIHW", "NCHW"))
        return y + b[None, :, None, None]

    def pool2(z):
        n, c, h, w = z.shape
        return jnp.max(z.reshape(n, c, h // 2, 2, w // 2, 2), axis=(3, 5))

    a = jax.nn.relu(pool2(conv(x, params["conv1_w"], params["conv1_b"])))
    a = jax.nn.relu(pool2(conv(a, params["conv2_w"], params["conv2_b"])))
    a = a.reshape(a.shape[0], -1)                      # (N, 320), PyTorch view order
    a = jax.nn.relu(a @ params["fc1_w"].T + params["fc1_b"])
    z = a @ params["fc2_w"].T + params["fc2_b"]
    return jax.nn.log_softmax(z, axis=-1)


if __name__ == "__main__":
    key = jax.random.PRNGKey(0)
    pkey, xkey = jax.random.split(key)
    params = init_params(pkey)
    prepped = prepare_params(params)                   # one-time weight packing
    x = jax.random.normal(xkey, (2, 1, 28, 28), jnp.float32)   # NCHW, MNIST-sized

    out = jax.block_until_ready(forward(x, prepped))

    assert out.shape == (2, 10), out.shape
    assert bool(jnp.all(jnp.isfinite(out)))
    row_sums = jnp.sum(jnp.exp(out), axis=1)           # log_softmax rows sum to 1
    assert bool(jnp.all(jnp.abs(row_sums - 1.0) < 1e-3)), row_sums
    # bf16 weights/activations (f32 accumulation) -> loose tolerance vs f32 reference.
    ref = reference_forward(x, params)
    max_err = float(jnp.max(jnp.abs(out - ref)))
    assert max_err < 0.15, max_err

    print("KERNEL_OK")
</pallas_src>

<mosaic_0001>
module attributes {stable_mosaic.version = 11 : i64} {
  func.func @conv_pool_relu_kernel(%arg0: i32, %arg1: memref<40x128xbf16, #tpu.memory_space<vmem>>, %arg2: memref<128x512xbf16, #tpu.memory_space<vmem>>, %arg3: memref<1x128xf32, #tpu.memory_space<vmem>>, %arg4: memref<40x128xbf16, #tpu.memory_space<vmem>>) attributes {dimension_semantics = [#tpu.dimension_semantics<parallel>], iteration_bounds = array<i64: 8>, scalar_prefetch = 0 : i64, scratch_operands = 0 : i64, tpu.core_type = #tpu.core_type<tc>, window_params = [{transform_indices = @transform_0, window_bounds = array<i64: 40, 128>}, {pipeline_mode = #tpu.pipeline_mode<synchronous>, transform_indices = @transform_1, window_bounds = array<i64: 128, 512>}, {pipeline_mode = #tpu.pipeline_mode<synchronous>, transform_indices = @transform_2, window_bounds = array<i64: 1, 128>}, {transform_indices = @transform_3, window_bounds = array<i64: 40, 128>}]} {
    %c0 = arith.constant 0 : index
    %c0_0 = arith.constant 0 : index
    %0 = vector.load %arg1[%c0, %c0_0] : memref<40x128xbf16, #tpu.memory_space<vmem>>, vector<40x128xbf16>
    %c0_1 = arith.constant 0 : index
    %c0_2 = arith.constant 0 : index
    %1 = vector.load %arg2[%c0_1, %c0_2] : memref<128x512xbf16, #tpu.memory_space<vmem>>, vector<128x512xbf16>
    %cst = arith.constant dense<0.000000e+00> : vector<40x512xf32>
    %2 = tpu.matmul %0, %1, %cst {dimension_numbers = #tpu.dot_dimension_numbers<[1], [0], [0], [1], [0, 0, 1, 1], [], []>} : vector<40x128xbf16>, vector<128x512xbf16>, vector<40x512xf32> -> vector<40x512xf32>
    %3 = vector.extract_strided_slice %2 {offsets = [0, 0], sizes = [40, 128], strides = [1, 1]} : vector<40x512xf32> to vector<40x128xf32>
    %4 = vector.extract_strided_slice %2 {offsets = [0, 128], sizes = [40, 128], strides = [1, 1]} : vector<40x512xf32> to vector<40x128xf32>
    %5 = arith.maximumf %3, %4 : vector<40x128xf32>
    %6 = vector.extract_strided_slice %2 {offsets = [0, 256], sizes = [40, 128], strides = [1, 1]} : vector<40x512xf32> to vector<40x128xf32>
    %7 = vector.extract_strided_slice %2 {offsets = [0, 384], sizes = [40, 128], strides = [1, 1]} : vector<40x512xf32> to vector<40x128xf32>
    %8 = arith.maximumf %6, %7 : vector<40x128xf32>
    %9 = arith.maximumf %5, %8 : vector<40x128xf32>
    %c0_3 = arith.constant 0 : index
    %c0_4 = arith.constant 0 : index
    %10 = vector.load %arg3[%c0_3, %c0_4] : memref<1x128xf32, #tpu.memory_space<vmem>>, vector<1x128xf32>
    %11 = vector.broadcast %10 : vector<1x128xf32> to vector<40x128xf32>
    %12 = arith.addf %9, %11 : vector<40x128xf32>
    %cst_5 = arith.constant 0.000000e+00 : f32
    %13 = vector.broadcast %cst_5 : f32 to vector<40x128xf32>
    %14 = arith.maximumf %12, %13 : vector<40x128xf32>
    %15 = arith.truncf %14 : vector<40x128xf32> to vector<40x128xbf16>
    %c0_6 = arith.constant 0 : index
    %c0_7 = arith.constant 0 : index
    %16 = vector.load %arg4[%c0_6, %c0_7] : memref<40x128xbf16, #tpu.memory_space<vmem>>, vector<40x128xbf16>
    tpu.vector_store %arg4[%c0_6, %c0_7], %15 {strides = array<i32>} : memref<40x128xbf16, #tpu.memory_space<vmem>>, vector<40x128xbf16>,
    return
  }
  func.func @transform_0(%arg0: i32) -> (i32, i32) {
    %c0_i32 = arith.constant 0 : i32
    %c0_i32_0 = arith.constant 0 : i32
    return %arg0, %c0_i32 : i32, i32
  }
  func.func @transform_1(%arg0: i32) -> (i32, i32) {
    %c0_i32 = arith.constant 0 : i32
    %c0_i32_0 = arith.constant 0 : i32
    %c0_i32_1 = arith.constant 0 : i32
    return %c0_i32, %c0_i32_0 : i32, i32
  }
  func.func @transform_2(%arg0: i32) -> (i32, i32) {
    %c0_i32 = arith.constant 0 : i32
    %c0_i32_0 = arith.constant 0 : i32
    %c0_i32_1 = arith.constant 0 : i32
    return %c0_i32, %c0_i32_0 : i32, i32
  }
  func.func @transform_3(%arg0: i32) -> (i32, i32) {
    %c0_i32 = arith.constant 0 : i32
    %c0_i32_0 = arith.constant 0 : i32
    return %arg0, %c0_i32 : i32, i32
  }
}

module attributes {stable_mosaic.version = 11 : i64} {
  func.func @conv2_mlp_kernel(%arg0: i32, %arg1: memref<16x8x1024xbf16, #tpu.memory_space<vmem>>, %arg2: memref<1024x512xbf16, #tpu.memory_space<vmem>>, %arg3: memref<1x128xf32, #tpu.memory_space<vmem>>, %arg4: memref<16x128x128xbf16, #tpu.memory_space<vmem>>, %arg5: memref<1x128xf32, #tpu.memory_space<vmem>>, %arg6: memref<128x128xbf16, #tpu.memory_space<vmem>>, %arg7: memref<1x128xf32, #tpu.memory_space<vmem>>, %arg8: memref<8x128xf32, #tpu.memory_space<vmem>>) attributes {dimension_semantics = [#tpu.dimension_semantics<parallel>], iteration_bounds = array<i64: 1>, scalar_prefetch = 0 : i64, scratch_operands = 0 : i64, tpu.core_type = #tpu.core_type<tc>, window_params = [{transform_indices = @transform_0, window_bounds = array<i64: 16, 8, 1024>}, {pipeline_mode = #tpu.pipeline_mode<synchronous>, transform_indices = @transform_1, window_bounds = array<i64: 1024, 512>}, {pipeline_mode = #tpu.pipeline_mode<synchronous>, transform_indices = @transform_2, window_bounds = array<i64: 1, 128>}, {pipeline_mode = #tpu.pipeline_mode<synchronous>, transform_indices = @transform_3, window_bounds = array<i64: 16, 128, 128>}, {pipeline_mode = #tpu.pipeline_mode<synchronous>, transform_indices = @transform_4, window_bounds = array<i64: 1, 128>}, {pipeline_mode = #tpu.pipeline_mode<synchronous>, transform_indices = @transform_5, window_bounds = array<i64: 128, 128>}, {pipeline_mode = #tpu.pipeline_mode<synchronous>, transform_indices = @transform_6, window_bounds = array<i64: 1, 128>}, {transform_indices = @transform_7, window_bounds = array<i64: 8, 128>}]} {
    %c0 = arith.constant 0 : index
    %c0_0 = arith.constant 0 : index
    %c0_1 = arith.constant 0 : index
    %0 = vector.load %arg1[%c0, %c0_0, %c0_1] : memref<16x8x1024xbf16, #tpu.memory_space<vmem>>, vector<16x8x1024xbf16>
    %1 = vector.shape_cast %0 : vector<16x8x1024xbf16> to vector<128x1024xbf16>
    %c0_2 = arith.constant 0 : index
    %c0_3 = arith.constant 0 : index
    %2 = vector.load %arg2[%c0_2, %c0_3] : memref<1024x512xbf16, #tpu.memory_space<vmem>>, vector<1024x512xbf16>
    %cst = arith.constant dense<0.000000e+00> : vector<128x512xf32>
    %3 = tpu.matmul %1, %2, %cst {dimension_numbers = #tpu.dot_dimension_numbers<[1], [0], [0], [1], [0, 0, 1, 1], [], []>} : vector<128x1024xbf16>, vector<1024x512xbf16>, vector<128x512xf32> -> vector<128x512xf32>
    %4 = vector.extract_strided_slice %3 {offsets = [0, 0], sizes = [128, 128], strides = [1, 1]} : vector<128x512xf32> to vector<128x128xf32>
    %5 = vector.extract_strided_slice %3 {offsets = [0, 128], sizes = [128, 128], strides = [1, 1]} : vector<128x512xf32> to vector<128x128xf32>
    %6 = arith.maximumf %4, %5 : vector<128x128xf32>
    %7 = vector.extract_strided_slice %3 {offsets = [0, 256], sizes = [128, 128], strides = [1, 1]} : vector<128x512xf32> to vector<128x128xf32>
    %8 = vector.extract_strided_slice %3 {offsets = [0, 384], sizes = [128, 128], strides = [1, 1]} : vector<128x512xf32> to vector<128x128xf32>
    %9 = arith.maximumf %7, %8 : vector<128x128xf32>
    %10 = arith.maximumf %6, %9 : vector<128x128xf32>
    %c0_4 = arith.constant 0 : index
    %c0_5 = arith.constant 0 : index
    %11 = vector.load %arg3[%c0_4, %c0_5] : memref<1x128xf32, #tpu.memory_space<vmem>>, vector<1x128xf32>
    %12 = vector.broadcast %11 : vector<1x128xf32> to vector<128x128xf32>
    %13 = arith.addf %10, %12 : vector<128x128xf32>
    %cst_6 = arith.constant 0.000000e+00 : f32
    %14 = vector.broadcast %cst_6 : f32 to vector<128x128xf32>
    %15 = arith.maximumf %13, %14 : vector<128x128xf32>
    %16 = arith.truncf %15 : vector<128x128xf32> to vector<128x128xbf16>
    %cst_7 = arith.constant 0.000000e+00 : f32
    %17 = vector.broadcast %cst_7 : f32 to vector<8x128xf32>
    %c0_8 = arith.constant 0 : index
    %c0_9 = arith.constant 0 : index
    %18 = vector.load %arg5[%c0_8, %c0_9] : memref<1x128xf32, #tpu.memory_space<vmem>>, vector<1x128xf32>
    %19 = vector.broadcast %18 : vector<1x128xf32> to vector<8x128xf32>
    %20 = arith.addf %17, %19 : vector<8x128xf32>
    %21 = vector.extract_strided_slice %16 {offsets = [0, 0], sizes = [8, 128], strides = [1, 1]} : vector<128x128xbf16> to vector<8x128xbf16>
    %c0_10 = arith.constant 0 : index
    %c0_11 = arith.constant 0 : index
    %c0_12 = arith.constant 0 : index
    %22 = vector.load %arg4[%c0_10, %c0_11, %c0_12] : memref<16x128x128xbf16, #tpu.memory_space<vmem>>, vector<1x128x128xbf16>
    %23 = vector.shape_cast %22 : vector<1x128x128xbf16> to vector<128x128xbf16>
    %cst_13 = arith.constant dense<0.000000e+00> : vector<8x128xf32>
    %24 = tpu.matmul %21, %23, %cst_13 {dimension_numbers = #tpu.dot_dimension_numbers<[1], [0], [0], [1], [0, 0, 1, 1], [], []>} : vector<8x128xbf16>, vector<128x128xbf16>, vector<8x128xf32> -> vector<8x128xf32>
    %25 = arith.addf %20, %24 : vector<8x128xf32>
    %26 = vector.extract_strided_slice %16 {offsets = [8, 0], sizes = [8, 128], strides = [1, 1]} : vector<128x128xbf16> to vector<8x128xbf16>
    %c1 = arith.constant 1 : index
    %c0_14 = arith.constant 0 : index
    %c0_15 = arith.constant 0 : index
    %27 = vector.load %arg4[%c1, %c0_14, %c0_15] : memref<16x128x128xbf16, #tpu.memory_space<vmem>>, vector<1x128x128xbf16>
    %28 = vector.shape_cast %27 : vector<1x128x128xbf16> to vector<128x128xbf16>
    %cst_16 = arith.constant dense<0.000000e+00> : vector<8x128xf32>
    %29 = tpu.matmul %26, %28, %cst_16 {dimension_numbers = #tpu.dot_dimension_numbers<[1], [0], [0], [1], [0, 0, 1, 1], [], []>} : vector<8x128xbf16>, vector<128x128xbf16>, vector<8x128xf32> -> vector<8x128xf32>
    %30 = arith.addf %25, %29 : vector<8x128xf32>
    %31 = vector.extract_strided_slice %16 {offsets = [16, 0], sizes = [8, 128], strides = [1, 1]} : vector<128x128xbf16> to vector<8x128xbf16>
    %c2 = arith.constant 2 : index
    %c0_17 = arith.constant 0 : index
    %c0_18 = arith.constant 0 : index
    %32 = vector.load %arg4[%c2, %c0_17, %c0_18] : memref<16x128x128xbf16, #tpu.memory_space<vmem>>, vector<1x128x128xbf16>
    %33 = vector.shape_cast %32 : vector<1x128x128xbf16> to vector<128x128xbf16>
    %cst_19 = arith.constant dense<0.000000e+00> : vector<8x128xf32>
    %34 = tpu.matmul %31, %33, %cst_19 {dimension_numbers = #tpu.dot_dimension_numbers<[1], [0], [0], [1], [0, 0, 1, 1], [], []>} : vector<8x128xbf16>, vector<128x128xbf16>, vector<8x128xf32> -> vector<8x128xf32>
    %35 = arith.addf %30, %34 : vector<8x128xf32>
    %36 = vector.extract_strided_slice %16 {offsets = [24, 0], sizes = [8, 128], strides = [1, 1]} : vector<128x128xbf16> to vector<8x128xbf16>
    %c3 = arith.constant 3 : index
    %c0_20 = arith.constant 0 : index
    %c0_21 = arith.constant 0 : index
    %37 = vector.load %arg4[%c3, %c0_20, %c0_21] : memref<16x128x128xbf16, #tpu.memory_space<vmem>>, vector<1x128x128xbf16>
    %38 = vector.shape_cast %37 : vector<1x128x128xbf16> to vector<128x128xbf16>
    %cst_22 = arith.constant dense<0.000000e+00> : vector<8x128xf32>
    %39 = tpu.matmul %36, %38, %cst_22 {dimension_numbers = #tpu.dot_dimension_numbers<[1], [0], [0], [1], [0, 0, 1, 1], [], []>} : vector<8x128xbf16>, vector<128x128xbf16>, vector<8x128xf32> -> vector<8x128xf32>
    %40 = arith.addf %35, %39 : vector<8x128xf32>
    %41 = vector.extract_strided_slice %16 {offsets = [32, 0], sizes = [8, 128], strides = [1, 1]} : vector<128x128xbf16> to vector<8x128xbf16>
    %c4 = arith.constant 4 : index
    %c0_23 = arith.constant 0 : index
    %c0_24 = arith.constant 0 : index
    %42 = vector.load %arg4[%c4, %c0_23, %c0_24] : memref<16x128x128xbf16, #tpu.memory_space<vmem>>, vector<1x128x128xbf16>
    %43 = vector.shape_cast %42 : vector<1x128x128xbf16> to vector<128x128xbf16>
    %cst_25 = arith.constant dense<0.000000e+00> : vector<8x128xf32>
    %44 = tpu.matmul %41, %43, %cst_25 {dimension_numbers = #tpu.dot_dimension_numbers<[1], [0], [0], [1], [0, 0, 1, 1], [], []>} : vector<8x128xbf16>, vector<128x128xbf16>, vector<8x128xf32> -> vector<8x128xf32>
    %45 = arith.addf %40, %44 : vector<8x128xf32>
    %46 = vector.extract_strided_slice %16 {offsets = [40, 0], sizes = [8, 128], strides = [1, 1]} : vector<128x128xbf16> to vector<8x128xbf16>
    %c5 = arith.constant 5 : index
    %c0_26 = arith.constant 0 : index
    %c0_27 = arith.constant 0 : index
    %47 = vector.load %arg4[%c5, %c0_26, %c0_27] : memref<16x128x128xbf16, #tpu.memory_space<vmem>>, vector<1x128x128xbf16>
    %48 = vector.shape_cast %47 : vector<1x128x128xbf16> to vector<128x128xbf16>
    %cst_28 = arith.constant dense<0.000000e+00> : vector<8x128xf32>
    %49 = tpu.matmul %46, %48, %cst_28 {dimension_numbers = #tpu.dot_dimension_numbers<[1], [0], [0], [1], [0, 0, 1, 1], [], []>} : vector<8x128xbf16>, vector<128x128xbf16>, vector<8x128xf32> -> vector<8x128xf32>
    %50 = arith.addf %45, %49 : vector<8x128xf32>
    %51 = vector.extract_strided_slice %16 {offsets = [48, 0], sizes = [8, 128], strides = [1, 1]} : vector<128x128xbf16> to vector<8x128xbf16>
    %c6 = arith.constant 6 : index
    %c0_29 = arith.constant 0 : index
    %c0_30 = arith.constant 0 : index
    %52 = vector.load %arg4[%c6, %c0_29, %c0_30] : memref<16x128x128xbf16, #tpu.memory_space<vmem>>, vector<1x128x128xbf16>
    %53 = vector.shape_cast %52 : vector<1x128x128xbf16> to vector<128x128xbf16>
    %cst_31 = arith.constant dense<0.000000e+00> : vector<8x128xf32>
    %54 = tpu.matmul %51, %53, %cst_31 {dimension_numbers = #tpu.dot_dimension_numbers<[1], [0], [0], [1], [0, 0, 1, 1], [], []>} : vector<8x128xbf16>, vector<128x128xbf16>, vector<8x128xf32> -> vector<8x128xf32>
    %55 = arith.addf %50, %54 : vector<8x128xf32>
    %56 = vector.extract_strided_slice %16 {offsets = [56, 0], sizes = [8, 128], strides = [1, 1]} : vector<128x128xbf16> to vector<8x128xbf16>
    %c7 = arith.constant 7 : index
    %c0_32 = arith.constant 0 : index
    %c0_33 = arith.constant 0 : index
    %57 = vector.load %arg4[%c7, %c0_32, %c0_33] : memref<16x128x128xbf16, #tpu.memory_space<vmem>>, vector<1x128x128xbf16>
    %58 = vector.shape_cast %57 : vector<1x128x128xbf16> to vector<128x128xbf16>
    %cst_34 = arith.constant dense<0.000000e+00> : vector<8x128xf32>
    %59 = tpu.matmul %56, %58, %cst_34 {dimension_numbers = #tpu.dot_dimension_numbers<[1], [0], [0], [1], [0, 0, 1, 1], [], []>} : vector<8x128xbf16>, vector<128x128xbf16>, vector<8x128xf32> -> vector<8x128xf32>
    %60 = arith.addf %55, %59 : vector<8x128xf32>
    %61 = vector.extract_strided_slice %16 {offsets = [64, 0], sizes = [8, 128], strides = [1, 1]} : vector<128x128xbf16> to vector<8x128xbf16>
    %c8 = arith.constant 8 : index
    %c0_35 = arith.constant 0 : index
    %c0_36 = arith.constant 0 : index
    %62 = vector.load %arg4[%c8, %c0_35, %c0_36] : memref<16x128x128xbf16, #tpu.memory_space<vmem>>, vector<1x128x128xbf16>
    %63 = vector.shape_cast %62 : vector<1x128x128xbf16> to vector<128x128xbf16>
    %cst_37 = arith.constant dense<0.000000e+00> : vector<8x128xf32>
    %64 = tpu.matmul %61, %63, %cst_37 {dimension_numbers = #tpu.dot_dimension_numbers<[1], [0], [0], [1], [0, 0, 1, 1], [], []>} : vector<8x128xbf16>, vector<128x128xbf16>, vector<8x128xf32> -> vector<8x128xf32>
    %65 = arith.addf %60, %64 : vector<8x128xf32>
    %66 = vector.extract_strided_slice %16 {offsets = [72, 0], sizes = [8, 128], strides = [1, 1]} : vector<128x128xbf16> to vector<8x128xbf16>
    %c9 = arith.constant 9 : index
    %c0_38 = arith.constant 0 : index
    %c0_39 = arith.constant 0 : index
    %67 = vector.load %arg4[%c9, %c0_38, %c0_39] : memref<16x128x128xbf16, #tpu.memory_space<vmem>>, vector<1x128x128xbf16>
    %68 = vector.shape_cast %67 : vector<1x128x128xbf16> to vector<128x128xbf16>
    %cst_40 = arith.constant dense<0.000000e+00> : vector<8x128xf32>
    %69 = tpu.matmul %66, %68, %cst_40 {dimension_numbers = #tpu.dot_dimension_numbers<[1], [0], [0], [1], [0, 0, 1, 1], [], []>} : vector<8x128xbf16>, vector<128x128xbf16>, vector<8x128xf32> -> vector<8x128xf32>
    %70 = arith.addf %65, %69 : vector<8x128xf32>
    %71 = vector.extract_strided_slice %16 {offsets = [80, 0], sizes = [8, 128], strides = [1, 1]} : vector<128x128xbf16> to vector<8x128xbf16>
    %c10 = arith.constant 10 : index
    %c0_41 = arith.constant 0 : index
    %c0_42 = arith.constant 0 : index
    %72 = vector.load %arg4[%c10, %c0_41, %c0_42] : memref<16x128x128xbf16, #tpu.memory_space<vmem>>, vector<1x128x128xbf16>
    %73 = vector.shape_cast %72 : vector<1x128x128xbf16> to vector<128x128xbf16>
    %cst_43 = arith.constant dense<0.000000e+00> : vector<8x128xf32>
    %74 = tpu.matmul %71, %73, %cst_43 {dimension_numbers = #tpu.dot_dimension_numbers<[1], [0], [0], [1], [0, 0, 1, 1], [], []>} : vector<8x128xbf16>, vector<128x128xbf16>, vector<8x128xf32> -> vector<8x128xf32>
    %75 = arith.addf %70, %74 : vector<8x128xf32>
    %76 = vector.extract_strided_slice %16 {offsets = [88, 0], sizes = [8, 128], strides = [1, 1]} : vector<128x128xbf16> to vector<8x128xbf16>
    %c11 = arith.constant 11 : index
    %c0_44 = arith.constant 0 : index
    %c0_45 = arith.constant 0 : index
    %77 = vector.load %arg4[%c11, %c0_44, %c0_45] : memref<16x128x128xbf16, #tpu.memory_space<vmem>>, vector<1x128x128xbf16>
    %78 = vector.shape_cast %77 : vector<1x128x128xbf16> to vector<128x128xbf16>
    %cst_46 = arith.constant dense<0.000000e+00> : vector<8x128xf32>
    %79 = tpu.matmul %76, %78, %cst_46 {dimension_numbers = #tpu.dot_dimension_numbers<[1], [0], [0], [1], [0, 0, 1, 1], [], []>} : vector<8x128xbf16>, vector<128x128xbf16>, vector<8x128xf32> -> vector<8x128xf32>
    %80 = arith.addf %75, %79 : vector<8x128xf32>
    %81 = vector.extract_strided_slice %16 {offsets = [96, 0], sizes = [8, 128], strides = [1, 1]} : vector<128x128xbf16> to vector<8x128xbf16>
    %c12 = arith.constant 12 : index
    %c0_47 = arith.constant 0 : index
    %c0_48 = arith.constant 0 : index
    %82 = vector.load %arg4[%c12, %c0_47, %c0_48] : memref<16x128x128xbf16, #tpu.memory_space<vmem>>, vector<1x128x128xbf16>
    %83 = vector.shape_cast %82 : vector<1x128x128xbf16> to vector<128x128xbf16>
    %cst_49 = arith.constant dense<0.000000e+00> : vector<8x128xf32>
    %84 = tpu.matmul %81, %83, %cst_49 {dimension_numbers = #tpu.dot_dimension_numbers<[1], [0], [0], [1], [0, 0, 1, 1], [], []>} : vector<8x128xbf16>, vector<128x128xbf16>, vector<8x128xf32> -> vector<8x128xf32>
    %85 = arith.addf %80, %84 : vector<8x128xf32>
    %86 = vector.extract_strided_slice %16 {offsets = [104, 0], sizes = [8, 128], strides = [1, 1]} : vector<128x128xbf16> to vector<8x128xbf16>
    %c13 = arith.constant 13 : index
    %c0_50 = arith.constant 0 : index
    %c0_51 = arith.constant 0 : index
    %87 = vector.load %arg4[%c13, %c0_50, %c0_51] : memref<16x128x128xbf16, #tpu.memory_space<vmem>>, vector<1x128x128xbf16>
    %88 = vector.shape_cast %87 : vector<1x128x128xbf16> to vector<128x128xbf16>
    %cst_52 = arith.constant dense<0.000000e+00> : vector<8x128xf32>
    %89 = tpu.matmul %86, %88, %cst_52 {dimension_numbers = #tpu.dot_dimension_numbers<[1], [0], [0], [1], [0, 0, 1, 1], [], []>} : vector<8x128xbf16>, vector<128x128xbf16>, vector<8x128xf32> -> vector<8x128xf32>
    %90 = arith.addf %85, %89 : vector<8x128xf32>
    %91 = vector.extract_strided_slice %16 {offsets = [112, 0], sizes = [8, 128], strides = [1, 1]} : vector<128x128xbf16> to vector<8x128xbf16>
    %c14 = arith.constant 14 : index
    %c0_53 = arith.constant 0 : index
    %c0_54 = arith.constant 0 : index
    %92 = vector.load %arg4[%c14, %c0_53, %c0_54] : memref<16x128x128xbf16, #tpu.memory_space<vmem>>, vector<1x128x128xbf16>
    %93 = vector.shape_cast %92 : vector<1x128x128xbf16> to vector<128x128xbf16>
    %cst_55 = arith.constant dense<0.000000e+00> : vector<8x128xf32>
    %94 = tpu.matmul %91, %93, %cst_55 {dimension_numbers = #tpu.dot_dimension_numbers<[1], [0], [0], [1], [0, 0, 1, 1], [], []>} : vector<8x128xbf16>, vector<128x128xbf16>, vector<8x128xf32> -> vector<8x128xf32>
    %95 = arith.addf %90, %94 : vector<8x128xf32>
    %96 = vector.extract_strided_slice %16 {offsets = [120, 0], sizes = [8, 128], strides = [1, 1]} : vector<128x128xbf16> to vector<8x128xbf16>
    %c15 = arith.constant 15 : index
    %c0_56 = arith.constant 0 : index
    %c0_57 = arith.constant 0 : index
    %97 = vector.load %arg4[%c15, %c0_56, %c0_57] : memref<16x128x128xbf16, #tpu.memory_space<vmem>>, vector<1x128x128xbf16>
    %98 = vector.shape_cast %97 : vector<1x128x128xbf16> to vector<128x128xbf16>
    %cst_58 = arith.constant dense<0.000000e+00> : vector<8x128xf32>
    %99 = tpu.matmul %96, %98, %cst_58 {dimension_numbers = #tpu.dot_dimension_numbers<[1], [0], [0], [1], [0, 0, 1, 1], [], []>} : vector<8x128xbf16>, vector<128x128xbf16>, vector<8x128xf32> -> vector<8x128xf32>
    %100 = arith.addf %95, %99 : vector<8x128xf32>
    %cst_59 = arith.constant 0.000000e+00 : f32
    %101 = vector.broadcast %cst_59 : f32 to vector<8x128xf32>
    %102 = arith.maximumf %100, %101 : vector<8x128xf32>
    %103 = arith.truncf %102 : vector<8x128xf32> to vector<8x128xbf16>
    %c0_60 = arith.constant 0 : index
    %c0_61 = arith.constant 0 : index
    %104 = vector.load %arg6[%c0_60, %c0_61] : memref<128x128xbf16, #tpu.memory_space<vmem>>, vector<128x128xbf16>
    %cst_62 = arith.constant dense<0.000000e+00> : vector<8x128xf32>
    %105 = tpu.matmul %103, %104, %cst_62 {dimension_numbers = #tpu.dot_dimension_numbers<[1], [0], [0], [1], [0, 0, 1, 1], [], []>} : vector<8x128xbf16>, vector<128x128xbf16>, vector<8x128xf32> -> vector<8x128xf32>
    %c0_63 = arith.constant 0 : index
    %c0_64 = arith.constant 0 : index
    %106 = vector.load %arg7[%c0_63, %c0_64] : memref<1x128xf32, #tpu.memory_space<vmem>>, vector<1x128xf32>
    %107 = vector.broadcast %106 : vector<1x128xf32> to vector<8x128xf32>
    %108 = arith.addf %105, %107 : vector<8x128xf32>
    %cst_65 = arith.constant dense<0xFF800000> : vector<8xf32>
    %109 = vector.multi_reduction <maximumf>, %108, %cst_65 [1] : vector<8x128xf32> to vector<8xf32>
    %110 = vector.shape_cast %109 : vector<8xf32> to vector<8x1xf32>
    %111 = vector.broadcast %110 : vector<8x1xf32> to vector<8x128xf32>
    %112 = arith.subf %108, %111 : vector<8x128xf32>
    %113 = math.exp %112 : vector<8x128xf32>
    %cst_66 = arith.constant dense<0.000000e+00> : vector<8xf32>
    %114 = vector.multi_reduction <add>, %113, %cst_66 [1] : vector<8x128xf32> to vector<8xf32>
    %115 = vector.shape_cast %114 : vector<8xf32> to vector<8x1xf32>
    %116 = math.log %115 : vector<8x1xf32>
    %117 = vector.broadcast %110 : vector<8x1xf32> to vector<8x128xf32>
    %118 = arith.subf %108, %117 : vector<8x128xf32>
    %119 = vector.broadcast %116 : vector<8x1xf32> to vector<8x128xf32>
    %120 = arith.subf %118, %119 : vector<8x128xf32>
    %c0_67 = arith.constant 0 : index
    %c0_68 = arith.constant 0 : index
    %121 = vector.load %arg8[%c0_67, %c0_68] : memref<8x128xf32, #tpu.memory_space<vmem>>, vector<8x128xf32>
    tpu.vector_store %arg8[%c0_67, %c0_68], %120 {strides = array<i32>} : memref<8x128xf32, #tpu.memory_space<vmem>>, vector<8x128xf32>,
    return
  }
  func.func @transform_0(%arg0: i32) -> (i32, i32, i32) {
    %c0_i32 = arith.constant 0 : i32
    %c0_i32_0 = arith.constant 0 : i32
    %c0_i32_1 = arith.constant 0 : i32
    return %c0_i32, %arg0, %c0_i32_0 : i32, i32, i32
  }
  func.func @transform_1(%arg0: i32) -> (i32, i32) {
    %c0_i32 = arith.constant 0 : i32
    %c0_i32_0 = arith.constant 0 : i32
    %c0_i32_1 = arith.constant 0 : i32
    return %c0_i32, %c0_i32_0 : i32, i32
  }
  func.func @transform_2(%arg0: i32) -> (i32, i32) {
    %c0_i32 = arith.constant 0 : i32
    %c0_i32_0 = arith.constant 0 : i32
    %c0_i32_1 = arith.constant 0 : i32
    return %c0_i32, %c0_i32_0 : i32, i32
  }
  func.func @transform_3(%arg0: i32) -> (i32, i32, i32) {
    %c0_i32 = arith.constant 0 : i32
    %c0_i32_0 = arith.constant 0 : i32
    %c0_i32_1 = arith.constant 0 : i32
    %c0_i32_2 = arith.constant 0 : i32
    return %c0_i32, %c0_i32_0, %c0_i32_1 : i32, i32, i32
  }
  func.func @transform_4(%arg0: i32) -> (i32, i32) {
    %c0_i32 = arith.constant 0 : i32
    %c0_i32_0 = arith.constant 0 : i32
    %c0_i32_1 = arith.constant 0 : i32
    return %c0_i32, %c0_i32_0 : i32, i32
  }
  func.func @transform_5(%arg0: i32) -> (i32, i32) {
    %c0_i32 = arith.constant 0 : i32
    %c0_i32_0 = arith.constant 0 : i32
    %c0_i32_1 = arith.constant 0 : i32
    return %c0_i32, %c0_i32_0 : i32, i32
  }
  func.func @transform_6(%arg0: i32) -> (i32, i32) {
    %c0_i32 = arith.constant 0 : i32
    %c0_i32_0 = arith.constant 0 : i32
    %c0_i32_1 = arith.constant 0 : i32
    return %c0_i32, %c0_i32_0 : i32, i32
  }
  func.func @transform_7(%arg0: i32) -> (i32, i32) {
    %c0_i32 = arith.constant 0 : i32
    %c0_i32_0 = arith.constant 0 : i32
    return %arg0, %c0_i32 : i32, i32
  }
}

</mosaic_0001>

<bundles_post_ra>
// kernel: forward.2
= control target key start
LH: loop header
LB: loop body
LE: loop exit
PB: predicated region body
PF: predicated region fallthrough
CT: control target
= control target key end

     0   :  { %s779_s12 = smov 0   ;;  %s908_s0 = inlined_call_operand.vmem [shape: bf16[320,128], index: 0, kind: input, shape index: {}]   ;;  %s909_s1 = inlined_call_operand.vmem [shape: bf16[128,512], index: 1, kind: input, shape index: {}]   ;;  %s910_s2 = inlined_call_operand.vmem [shape: f32[1,128], index: 2, kind: input, shape index: {}]   ;;  %s911_s3 = inlined_call_operand.vmem [shape: bf16[320,128], index: 3, kind: output, shape index: {}]  }
   0x1 LB: > { %s624_s13 = sadd.s32 4294967295, %s756_s12   ;;  %p628_p0 = scmp.ge.s32.totalorder %s756_s12, 1  ;;  %s756_s12 = sphi %s779_s12, %s13_s12  }
   0x2   : > { %p138_p1 = scmp.lt.s32.totalorder %s756_s12, 9 }
   0x4   : > { %p139_p2 = pnand %p628_p0, %p138_p1 }
   0x5   : > { %v699_v0 = vld [vmem:[%s909_s1 + $0x4] ss:$16 sps:$4 sm:$0xff] (!%p139_p2)   ;;  %v701_v1 = vld [vmem:[%s909_s1 + $0xc] ss:$16 sps:$4 sm:$0xff] (!%p139_p2)   ;;  %v758_v2 = vmov (!%p139_p2), 0   ;;  %s162_s30 = smul.u32 (!%p139_p2), 5, %s624_s13 }
   0x6   : > { %142 = sbr.rel (%p139_p2) target bundleno = 279 (0x117), region = 32  ;;  %420 = vmatprep.mubr.bf16.mxu0 (!%p139_p2), %v758_v2  ;;  %481 = vmatprep.mubr.bf16.mxu1 (!%p139_p2), %v758_v2  ;;  %v703_v3 = vld [vmem:[%s909_s1] ss:$16 sps:$4 sm:$0xff] (!%p139_p2)   ;;  %v704_v4 = vld [vmem:[%s909_s1 + $0x8] ss:$16 sps:$4 sm:$0xff] (!%p139_p2)  }
   0x7   : > { %388 = vmatprep.subr.bf16.mxu0 (!%p139_p2), %v699_v0  ;;  %449 = vmatprep.subr.bf16.mxu1 (!%p139_p2), %v701_v1  ;;  %v705_v5 = vld [vmem:[%s909_s1 + $0x24] ss:$16 sps:$4 sm:$0xff] (!%p139_p2)   ;;  %v707_v6 = vld [vmem:[%s909_s1 + $0x2c] ss:$16 sps:$4 sm:$0xff] (!%p139_p2)   ;;  %v709_v7 = vld [vmem:[%s909_s1 + $0x20] ss:$16 sps:$4 sm:$0xff] (!%p139_p2)  }
   0x8   : > { %389 = vmatpush1.bf16.msra.mxu0 (!%p139_p2), %v703_v3  ;;  %450 = vmatpush1.bf16.msra.mxu1 (!%p139_p2), %v704_v4  ;;  %v710_v8 = vld [vmem:[%s909_s1 + $0x28] ss:$16 sps:$4 sm:$0xff] (!%p139_p2)   ;;  %v711_v9 = vld [vmem:[%s909_s1 + $0x44] ss:$16 sps:$4 sm:$0xff] (!%p139_p2)   ;;  %v713_v10 = vld [vmem:[%s909_s1 + $0x4c] ss:$16 sps:$4 sm:$0xff] (!%p139_p2)  }
   0x9   : > { %390 = vmatprep.subr.bf16.mxu0 (!%p139_p2), %v705_v5  ;;  %451 = vmatprep.subr.bf16.mxu1 (!%p139_p2), %v707_v6  ;;  %v715_v11 = vld [vmem:[%s909_s1 + $0x40] ss:$16 sps:$4 sm:$0xff] (!%p139_p2)   ;;  %v716_v12 = vld [vmem:[%s909_s1 + $0x48] ss:$16 sps:$4 sm:$0xff] (!%p139_p2)   ;;  %v717_v13 = vld [vmem:[%s909_s1 + $0x64] ss:$16 sps:$4 sm:$0xff] (!%p139_p2)  }
   0xa   : > { %v719_v14 = vld [vmem:[%s909_s1 + $0x6c] ss:$16 sps:$4 sm:$0xff] (!%p139_p2)   ;;  %p163_p3 = scmp.lt.s32.totalorder (!%p139_p2), %s162_s30, 39  ;;  %v721_v15 = vld [vmem:[%s909_s1 + $0x60] ss:$16 sps:$4 sm:$0xff] (!%p139_p2)  }
   0xb   : > { %v722_v16 = vld [vmem:[%s909_s1 + $0x68] ss:$16 sps:$4 sm:$0xff] (!%p139_p2)   ;;  %v723_v17 = vld [vmem:[%s909_s1 + $0x84] ss:$16 sps:$4 sm:$0xff] (!%p139_p2)   ;;  %v725_v18 = vld [vmem:[%s909_s1 + $0x8c] ss:$16 sps:$4 sm:$0xff] (!%p139_p2)  }
   0xc   : > { %391 = vmatpush1.bf16.msra.mxu0 (!%p139_p2), %v709_v7  ;;  %452 = vmatpush1.bf16.msra.mxu1 (!%p139_p2), %v710_v8  ;;  %v727_v19 = vld [vmem:[%s909_s1 + $0x80] ss:$16 sps:$4 sm:$0xff] (!%p139_p2)   ;;  %v728_v20 = vld [vmem:[%s909_s1 + $0x88] ss:$16 sps:$4 sm:$0xff] (!%p139_p2)   ;;  %v729_v21 = vld [vmem:[%s909_s1 + $0xa4] ss:$16 sps:$4 sm:$0xff] (!%p139_p2)  }
   0xd   : > { %392 = vmatprep.subr.bf16.mxu0 %v711_v9  ;;  %453 = vmatprep.subr.bf16.mxu1 %v713_v10  ;;  %s913_s30 = smov (!%p163_p3, %s162_s30), 39  ;;  %v731_v22 = vld [vmem:[%s909_s1 + $0xac] ss:$16 sps:$4 sm:$0xff]   ;;  %v733_v23 = vld [vmem:[%s909_s1 + $0xa0] ss:$16 sps:$4 sm:$0xff]  }
   0xe   : > { %s629_s7 = sshll.u32 %s913_s30, 2  ;;  %v734_v24 = vld [vmem:[%s909_s1 + $0xa8] ss:$16 sps:$4 sm:$0xff]   ;;  %v735_v25 = vld [vmem:[%s909_s1 + $0xc4] ss:$16 sps:$4 sm:$0xff]  }
   0xf   : > { %s166_s17 = scalar_lea.vmem %s908_s0, %s629_s7  ;;  %v737_v26 = vld [vmem:[%s909_s1 + $0xcc] ss:$16 sps:$4 sm:$0xff]   ;;  %v739_v27 = vld [vmem:[%s909_s1 + $0xc0] ss:$16 sps:$4 sm:$0xff]   ;;  %v740_v28 = vld [vmem:[%s909_s1 + $0xc8] ss:$16 sps:$4 sm:$0xff]   ;;  %s172_s11 = scalar_lea.vmem %s911_s3, %s629_s7 }
  0x10   : > { %393 = vmatpush1.bf16.msra.mxu0 %v715_v11  ;;  %454 = vmatpush1.bf16.msra.mxu1 %v716_v12  ;;  %v741_v29 = vld [vmem:[%s909_s1 + $0xe4] ss:$16 sps:$4 sm:$0xff]   ;;  %v743_v30 = vld [vmem:[%s909_s1 + $0xec] ss:$16 sps:$4 sm:$0xff]   ;;  %v745_v31 = vld [vmem:[%s909_s1 + $0xe0] ss:$16 sps:$4 sm:$0xff]  }
  0x11   : > { %394 = vmatprep.subr.bf16.mxu0 %v717_v13  ;;  %455 = vmatprep.subr.bf16.mxu1 %v719_v14  ;;  %v746_v32 = vld [vmem:[%s909_s1 + $0xe8] ss:$16 sps:$4 sm:$0xff]   ;;  %v747_v33 = vld [vmem:[%s166_s17] sm:$0xff]   ;;  %v749_v35 = vld [vmem:[%s166_s17 + $0x10] ss:$0 sps:$4 sm:$0xff]  }
  0x12   : > { %v748_v34 = vld [vmem:[%s166_s17 + $0x8] sm:$0xff]   ;;  %v666_v44 = vld [vmem:[%s910_s2] ss:$0 sm:$0xff] }
  0x14   : > { %395 = vmatpush1.bf16.msra.mxu0 %v721_v15  ;;  %456 = vmatpush1.bf16.msra.mxu1 %v722_v16 }
  0x15   : > { %396 = vmatprep.subr.bf16.mxu0 %v723_v17  ;;  %457 = vmatprep.subr.bf16.mxu1 %v725_v18 }
  0x18   : > { %397 = vmatpush1.bf16.msra.mxu0 %v727_v19  ;;  %458 = vmatpush1.bf16.msra.mxu1 %v728_v20 }
  0x19   : > { %398 = vmatprep.subr.bf16.mxu0 %v729_v21  ;;  %459 = vmatprep.subr.bf16.mxu1 %v731_v22 }
  0x1c   : > { %399 = vmatpush1.bf16.msra.mxu0 %v733_v23  ;;  %460 = vmatpush1.bf16.msra.mxu1 %v734_v24 }
  0x1d   : > { %400 = vmatprep.subr.bf16.mxu0 %v735_v25  ;;  %461 = vmatprep.subr.bf16.mxu1 %v737_v26 }
  0x20   : > { %401 = vmatpush1.bf16.msra.mxu0 %v739_v27  ;;  %462 = vmatpush1.bf16.msra.mxu1 %v740_v28 }
  0x21   : > { %402 = vmatprep.subr.bf16.mxu0 %v741_v29  ;;  %463 = vmatprep.subr.bf16.mxu1 %v743_v30 }
  0x24   : > { %403 = vmatpush1.bf16.msra.mxu0 %v745_v31  ;;  %464 = vmatpush1.bf16.msra.mxu1 %v746_v32 }
  0x27   : > { %421 = vmatmul.mubr.bf16.vlgmr.msra.gmra.mrb[0].mxu0 %v747_v33  ;;  %482 = vmatmul.mubr.bf16.vlgmr.msra.gmra.mrb[0].mxu1 %v747_v33 }
  0x28   : > { %430 = vmatprep.mubr.bf16.mxu0 %v758_v2  ;;  %491 = vmatprep.mubr.bf16.mxu1 %v758_v2 }
  0x2f   : > { %431 = vmatmul.mubr.bf16.gmra.mrb[4].mxu0 %v748_v34  ;;  %492 = vmatmul.mubr.bf16.gmra.mrb[4].mxu1 %v748_v34 }
  0x30   : > { %440 = vmatprep.mubr.bf16.mxu0 %v758_v2  ;;  %501 = vmatprep.mubr.bf16.mxu1 %v758_v2 }
  0x37   : > { %441 = vmatmul.mubr.bf16.gmra.mrb[8].mxu0 %v749_v35  ;;  %502 = vmatmul.mubr.bf16.gmra.mrb[8].mxu1 %v749_v35 }
  0xfa   : > { %v422_v36 = vpop.f32.mrb[0].mxu0  ;;  %v483_v37 = vpop.f32.mrb[0].mxu1 }
  0xfb   : > { %v424_v38 = vpop.f32.mrb[1].mxu0  ;;  %v485_v39 = vpop.f32.mrb[1].mxu1 }
  0xfc   : > { %v510_v40 = vmax.f32 %v422_v36, %v424_v38  ;;  %v515_v41 = vmax.f32 %v483_v37, %v485_v39  ;;  %v426_v42 = vpop.f32.mrb[2].mxu0  ;;  %v487_v43 = vpop.f32.mrb[2].mxu1 }
  0xfd   : > { %v428_v45 = vpop.f32.mrb[3].mxu0  ;;  %v489_v46 = vpop.f32.mrb[3].mxu1 }
  0xfe   : > { %v520_v47 = vmax.f32 %v510_v40, %v515_v41  ;;  %v511_v48 = vmax.f32 %v426_v42, %v428_v45  ;;  %v516_v49 = vmax.f32 %v487_v43, %v489_v46 }
 0x100   : > { %v532_v50 = vadd.f32 %v666_v44, %v520_v47  ;;  %v521_v51 = vmax.f32 %v511_v48, %v516_v49 }
 0x102   : > { %v533_v52 = vadd.f32 %v666_v44, %v521_v51  ;;  %v432_v53 = vpop.f32.mrb[4].mxu0  ;;  %v493_v54 = vpop.f32.mrb[4].mxu1  ;;  %v537_v57 = vmax.f32 %v532_v50, 0.0 }
 0x103   : > { %v434_v55 = vpop.f32.mrb[5].mxu0  ;;  %v495_v56 = vpop.f32.mrb[5].mxu1 }
 0x104   : > { %v538_v58 = vmax.f32 %v533_v52, 0.0  ;;  %v512_v59 = vmax.f32 %v432_v53, %v434_v55  ;;  %v517_v60 = vmax.f32 %v493_v54, %v495_v56  ;;  %v436_v61 = vpop.f32.mrb[6].mxu0  ;;  %v497_v62 = vpop.f32.mrb[6].mxu1 }
 0x105   : > { %v438_v63 = vpop.f32.mrb[7].mxu0  ;;  %v499_v0 = vpop.f32.mrb[7].mxu1 }
 0x106   : > { %v682_v1 = vpack.c.bf16 %v538_v58, %v537_v57  ;;  %v522_v2 = vmax.f32 %v512_v59, %v517_v60  ;;  %v513_v3 = vmax.f32 %v436_v61, %v438_v63  ;;  %v518_v4 = vmax.f32 %v497_v62, %v499_v0 }
 0x108   : > { %683 = vst [vmem:[%s172_s11] sm:$0xff] %v682_v1   ;;  %v534_v5 = vadd.f32 %v666_v44, %v522_v2  ;;  %v523_v6 = vmax.f32 %v513_v3, %v518_v4 }
 0x10a   : > { %v535_v7 = vadd.f32 %v666_v44, %v523_v6  ;;  %v442_v8 = vpop.f32.mrb[8].mxu0  ;;  %v503_v9 = vpop.f32.mrb[8].mxu1  ;;  %v539_v12 = vmax.f32 %v534_v5, 0.0 }
 0x10b   : > { %v444_v10 = vpop.f32.mrb[9].mxu0  ;;  %v505_v11 = vpop.f32.mrb[9].mxu1 }
 0x10c   : > { %v540_v13 = vmax.f32 %v535_v7, 0.0  ;;  %v514_v14 = vmax.f32 %v442_v8, %v444_v10  ;;  %v519_v15 = vmax.f32 %v503_v9, %v505_v11  ;;  %v446_v16 = vpop.f32.mrb[10].mxu0  ;;  %v507_v17 = vpop.f32.mrb[10].mxu1 }
 0x10d   : > { %v447_v18 = vpop.f32.mrb[11].mxu0  ;;  %v508_v19 = vpop.f32.mrb[11].mxu1 }
 0x10e   : > { %v687_v20 = vpack.c.bf16 %v540_v13, %v539_v12  ;;  %v524_v21 = vmax.f32 %v514_v14, %v519_v15 }
 0x110   : > { %689 = vst [vmem:[%s172_s11 + $0x8] sm:$0xff] %v687_v20   ;;  %v536_v22 = vadd.f32 %v666_v44, %v524_v21 }
 0x112   : > { %v541_v23 = vmax.f32 %v536_v22, 0.0 }
 0x114   : > { %v678_v24 = vpack.c.bf16 %v541_v23, %v541_v23 }
 0x116   : > { %567 = vst [vmem:[%s172_s11 + $0x10] sm:$0xf] %v678_v24 }
 0x117 PF: > { %s13_s12 = sadd.s32 1, %s756_s12  }
 0x118   : > { %p10_p4 = scmp.ge.s32.totalorder %s13_s12, 10  }
 0x11a   :  { %12 = sbr.rel (!%p10_p4) target bundleno = 1 (0x1), region = 62 }

// kernel: forward.3
= control target key start
LH: loop header
LB: loop body
LE: loop exit
PB: predicated region body
PF: predicated region fallthrough
CT: control target
= control target key end

     0   :  { %vm6773_vm0 = vmmov 0   ;;  %s8814_s1 = inlined_call_operand.vmem [shape: bf16[1024,512], index: 1, kind: input, shape index: {}]   ;;  %s8815_s0 = inlined_call_operand.vmem [shape: bf16[16,8,1024], index: 0, kind: input, shape index: {}]   ;;  %s8816_s3 = inlined_call_operand.vmem [shape: bf16[16,128,128], index: 3, kind: input, shape index: {}]   ;;  %s8817_s2 = inlined_call_operand.vmem [shape: f32[1,128], index: 2, kind: input, shape index: {}]   ;;  %s8818_s5 = inlined_call_operand.vmem [shape: bf16[128,128], index: 5, kind: input, shape index: {}]   ;;  %s8819_s4 = inlined_call_operand.vmem [shape: f32[1,128], index: 4, kind: input, shape index: {}]   ;;  %s8820_s6 = inlined_call_operand.vmem [shape: f32[1,128], index: 6, kind: input, shape index: {}]   ;;  %s8821_s7 = inlined_call_operand.vmem [shape: f32[8,128], index: 7, kind: output, shape index: {}]  }
   0x1   :  { %v6248_v0 = vld [vmem:[%s8814_s1 + $0x4] ss:$16 sps:$4 sm:$0xff]   ;;  %v6250_v1 = vld [vmem:[%s8814_s1] ss:$16 sps:$4 sm:$0xff]  }
   0x2   :  { %1947 = vmatprep.subr.bf16.mxu1 %v6248_v0  ;;  %v6251_v2 = vld [vmem:[%s8814_s1 + $0x24] ss:$16 sps:$4 sm:$0xff]   ;;  %v6253_v3 = vld [vmem:[%s8814_s1 + $0x20] ss:$16 sps:$4 sm:$0xff]  }
   0x3   :  { %1948 = vmatpush1.bf16.msra.mxu1 %v6250_v1  ;;  %v6254_v4 = vld [vmem:[%s8814_s1 + $0x44] ss:$16 sps:$4 sm:$0xff]   ;;  %v6256_v5 = vld [vmem:[%s8814_s1 + $0x40] ss:$16 sps:$4 sm:$0xff]  }
   0x4   :  { %1949 = vmatprep.subr.bf16.mxu1 %v6251_v2  ;;  %v6257_v6 = vld [vmem:[%s8814_s1 + $0x64] ss:$16 sps:$4 sm:$0xff]   ;;  %v6259_v7 = vld [vmem:[%s8814_s1 + $0x60] ss:$16 sps:$4 sm:$0xff]  }
   0x5   :  { %v6260_v8 = vld [vmem:[%s8814_s1 + $0x84] ss:$16 sps:$4 sm:$0xff]   ;;  %v6262_v9 = vld [vmem:[%s8814_s1 + $0x80] ss:$16 sps:$4 sm:$0xff]  }
   0x6   :  { %v6263_v10 = vld [vmem:[%s8814_s1 + $0xa4] ss:$16 sps:$4 sm:$0xff]   ;;  %v6265_v11 = vld [vmem:[%s8814_s1 + $0xa0] ss:$16 sps:$4 sm:$0xff]  }
   0x7   :  { %1950 = vmatpush1.bf16.msra.mxu1 %v6253_v3  ;;  %v6266_v12 = vld [vmem:[%s8814_s1 + $0xc4] ss:$16 sps:$4 sm:$0xff]   ;;  %v6268_v16 = vld [vmem:[%s8814_s1 + $0xc0] ss:$16 sps:$4 sm:$0xff]  }
   0x8   :  { %1951 = vmatprep.subr.bf16.mxu1 %v6254_v4  ;;  %v27_v13 = vld [vmem:[%s8815_s0] sm:$0xff] }
   0x9   :  { %v31_v14 = vld [vmem:[%s8815_s0 + $0x20] sm:$0xff] }
   0xa   :  { %v6859_v15 = vcombine.high %v27_v13, %v31_v14  ;;  %v6269_v17 = vld [vmem:[%s8814_s1 + $0xe4] ss:$16 sps:$4 sm:$0xff]   ;;  %v6271_v18 = vld [vmem:[%s8814_s1 + $0xe0] ss:$16 sps:$4 sm:$0xff]   ;;  %v6928_v38 = vcombine.low %v27_v13, %v31_v14 }
   0xb   :  { %1952 = vmatpush1.bf16.msra.mxu1 %v6256_v5  ;;  %v6272_v19 = vld [vmem:[%s8814_s1 + $0x104] ss:$16 sps:$4 sm:$0xff]   ;;  %v6274_v20 = vld [vmem:[%s8814_s1 + $0x100] ss:$16 sps:$4 sm:$0xff]  }
   0xc   :  { %1953 = vmatprep.subr.bf16.mxu1 %v6257_v6  ;;  %1979 = vmatprep.mubr.bf16.mxu1 %v6859_v15  ;;  %v6275_v21 = vld [vmem:[%s8814_s1 + $0x124] ss:$16 sps:$4 sm:$0xff]   ;;  %v6277_v22 = vld [vmem:[%s8814_s1 + $0x120] ss:$16 sps:$4 sm:$0xff]  }
   0xd   :  { %v6278_v23 = vld [vmem:[%s8814_s1 + $0x144] ss:$16 sps:$4 sm:$0xff]   ;;  %v6280_v24 = vld [vmem:[%s8814_s1 + $0x140] ss:$16 sps:$4 sm:$0xff]  }
   0xe   :  { %v6281_v25 = vld [vmem:[%s8814_s1 + $0x164] ss:$16 sps:$4 sm:$0xff]   ;;  %v6283_v26 = vld [vmem:[%s8814_s1 + $0x160] ss:$16 sps:$4 sm:$0xff]  }
   0xf   :  { %1954 = vmatpush1.bf16.msra.mxu1 %v6259_v7  ;;  %v6284_v27 = vld [vmem:[%s8814_s1 + $0x184] ss:$16 sps:$4 sm:$0xff]   ;;  %v6286_v28 = vld [vmem:[%s8814_s1 + $0x180] ss:$16 sps:$4 sm:$0xff]  }
  0x10   :  { %1955 = vmatprep.subr.bf16.mxu1 %v6260_v8  ;;  %v6287_v29 = vld [vmem:[%s8814_s1 + $0x1a4] ss:$16 sps:$4 sm:$0xff]   ;;  %v6289_v30 = vld [vmem:[%s8814_s1 + $0x1a0] ss:$16 sps:$4 sm:$0xff]  }
  0x11   :  { %v6290_v31 = vld [vmem:[%s8814_s1 + $0x1c4] ss:$16 sps:$4 sm:$0xff]   ;;  %v6292_v32 = vld [vmem:[%s8814_s1 + $0x1c0] ss:$16 sps:$4 sm:$0xff]  }
  0x12   :  { %v6293_v33 = vld [vmem:[%s8814_s1 + $0x1e4] ss:$16 sps:$4 sm:$0xff]   ;;  %v6295_v34 = vld [vmem:[%s8814_s1 + $0x1e0] ss:$16 sps:$4 sm:$0xff]  }
  0x13   :  { %1956 = vmatpush1.bf16.msra.mxu1 %v6262_v9  ;;  %v6298_v35 = vld [vmem:[%s8814_s1 + $0x204] ss:$16 sps:$4 sm:$0xff]   ;;  %v6296_v39 = vld [vmem:[%s8814_s1 + $0x200] ss:$16 sps:$4 sm:$0xff]  }
  0x14   :  { %1957 = vmatprep.subr.bf16.mxu1 %v6263_v10  ;;  %v35_v36 = vld [vmem:[%s8815_s0 + $0x40] sm:$0xff] }
  0x15   :  { %v39_v37 = vld [vmem:[%s8815_s0 + $0x60] sm:$0xff] }
  0x16   :  { %v6933_v40 = vcombine.high %v35_v36, %v39_v37  ;;  %v6301_v41 = vld [vmem:[%s8814_s1 + $0x224] ss:$16 sps:$4 sm:$0xff]   ;;  %v6299_v42 = vld [vmem:[%s8814_s1 + $0x220] ss:$16 sps:$4 sm:$0xff]   ;;  %v6952_v46 = vcombine.low %v35_v36, %v39_v37  ;;  %v36_v37 = vld [vmem:[%s8815_s0 + $0x48] sm:$0xff] }
  0x17   :  { %1958 = vmatpush1.bf16.msra.mxu1 %v6265_v11  ;;  %v6304_v43 = vld [vmem:[%s8814_s1 + $0x244] ss:$16 sps:$4 sm:$0xff]   ;;  %v6302_v47 = vld [vmem:[%s8814_s1 + $0x240] ss:$16 sps:$4 sm:$0xff]  }
  0x18   :  { %1959 = vmatprep.subr.bf16.mxu1 %v6266_v12  ;;  %v43_v44 = vld [vmem:[%s8815_s0 + $0x80] sm:$0xff] }
  0x19   :  { %v47_v45 = vld [vmem:[%s8815_s0 + $0xa0] sm:$0xff] }
  0x1a   :  { %v6957_v48 = vcombine.high %v43_v44, %v47_v45  ;;  %v6307_v49 = vld [vmem:[%s8814_s1 + $0x264] ss:$16 sps:$4 sm:$0xff]   ;;  %v6305_v50 = vld [vmem:[%s8814_s1 + $0x260] ss:$16 sps:$4 sm:$0xff]   ;;  %v6976_v54 = vcombine.low %v43_v44, %v47_v45 }
  0x1b   :  { %1960 = vmatpush1.bf16.msra.mxu1 %v6268_v16  ;;  %v6310_v51 = vld [vmem:[%s8814_s1 + $0x284] ss:$16 sps:$4 sm:$0xff]   ;;  %v6308_v55 = vld [vmem:[%s8814_s1 + $0x280] ss:$16 sps:$4 sm:$0xff]  }
  0x1c   :  { %1961 = vmatprep.subr.bf16.mxu1 %v6269_v17  ;;  %v51_v52 = vld [vmem:[%s8815_s0 + $0xc0] sm:$0xff] }
  0x1d   :  { %v55_v53 = vld [vmem:[%s8815_s0 + $0xe0] sm:$0xff] }
  0x1e   :  { %v6981_v56 = vcombine.high %v51_v52, %v55_v53  ;;  %v6313_v57 = vld [vmem:[%s8814_s1 + $0x2a4] ss:$16 sps:$4 sm:$0xff]   ;;  %v6311_v58 = vld [vmem:[%s8814_s1 + $0x2a0] ss:$16 sps:$4 sm:$0xff]   ;;  %v7000_v62 = vcombine.low %v51_v52, %v55_v53 }
  0x1f   :  { %1962 = vmatpush1.bf16.msra.mxu1 %v6271_v18  ;;  %v6316_v59 = vld [vmem:[%s8814_s1 + $0x2c4] ss:$16 sps:$4 sm:$0xff]   ;;  %v6314_v63 = vld [vmem:[%s8814_s1 + $0x2c0] ss:$16 sps:$4 sm:$0xff]  }
  0x20   :  { %1963 = vmatprep.subr.bf16.mxu1 %v6272_v19  ;;  %v59_v60 = vld [vmem:[%s8815_s0 + $0x100] sm:$0xff] }
  0x21   :  { %v63_v61 = vld [vmem:[%s8815_s0 + $0x120] sm:$0xff] }
  0x22   :  { %v7005_v0 = vcombine.high %v59_v60, %v63_v61  ;;  %v6319_v1 = vld [vmem:[%s8814_s1 + $0x2e4] ss:$16 sps:$4 sm:$0xff]   ;;  %v6317_v2 = vld [vmem:[%s8814_s1 + $0x2e0] ss:$16 sps:$4 sm:$0xff]   ;;  %v7024_v6 = vcombine.low %v59_v60, %v63_v61  ;;  %v56_v60 = vld [vmem:[%s8815_s0 + $0xe8] sm:$0xff] }
  0x23   :  { %1964 = vmatpush1.bf16.msra.mxu1 %v6274_v20  ;;  %v6322_v3 = vld [vmem:[%s8814_s1 + $0x304] ss:$16 sps:$4 sm:$0xff]   ;;  %v6320_v7 = vld [vmem:[%s8814_s1 + $0x300] ss:$16 sps:$4 sm:$0xff]  }
  0x24   :  { %1965 = vmatprep.subr.bf16.mxu1 %v6275_v21  ;;  %v67_v4 = vld [vmem:[%s8815_s0 + $0x140] sm:$0xff] }
  0x25   :  { %v71_v5 = vld [vmem:[%s8815_s0 + $0x160] sm:$0xff] }
  0x26   :  { %v7029_v8 = vcombine.high %v67_v4, %v71_v5  ;;  %v6325_v9 = vld [vmem:[%s8814_s1 + $0x324] ss:$16 sps:$4 sm:$0xff]   ;;  %v6323_v10 = vld [vmem:[%s8814_s1 + $0x320] ss:$16 sps:$4 sm:$0xff]   ;;  %v7048_v14 = vcombine.low %v67_v4, %v71_v5  ;;  %v60_v5 = vld [vmem:[%s8815_s0 + $0x108] sm:$0xff] }
  0x27   :  { %1966 = vmatpush1.bf16.msra.mxu1 %v6277_v22  ;;  %v6328_v11 = vld [vmem:[%s8814_s1 + $0x344] ss:$16 sps:$4 sm:$0xff]   ;;  %v6326_v16 = vld [vmem:[%s8814_s1 + $0x340] ss:$16 sps:$4 sm:$0xff]  }
  0x28   :  { %1967 = vmatprep.subr.bf16.mxu1 %v6278_v23  ;;  %v75_v12 = vld [vmem:[%s8815_s0 + $0x180] sm:$0xff] }
  0x29   :  { %v79_v13 = vld [vmem:[%s8815_s0 + $0x1a0] sm:$0xff] }
  0x2a   :  { %v7053_v17 = vcombine.high %v75_v12, %v79_v13  ;;  %v6331_v18 = vld [vmem:[%s8814_s1 + $0x364] ss:$16 sps:$4 sm:$0xff]   ;;  %v6329_v19 = vld [vmem:[%s8814_s1 + $0x360] ss:$16 sps:$4 sm:$0xff]   ;;  %v7072_v23 = vcombine.low %v75_v12, %v79_v13 }
  0x2b   :  { %1968 = vmatpush1.bf16.msra.mxu1 %v6280_v24  ;;  %v6334_v20 = vld [vmem:[%s8814_s1 + $0x384] ss:$16 sps:$4 sm:$0xff]   ;;  %v6332_v24 = vld [vmem:[%s8814_s1 + $0x380] ss:$16 sps:$4 sm:$0xff]  }
  0x2c   :  { %1969 = vmatprep.subr.bf16.mxu1 %v6281_v25  ;;  %v83_v21 = vld [vmem:[%s8815_s0 + $0x1c0] sm:$0xff] }
  0x2d   :  { %v87_v22 = vld [vmem:[%s8815_s0 + $0x1e0] sm:$0xff] }
  0x2e   :  { %v7077_v25 = vcombine.high %v83_v21, %v87_v22  ;;  %v6346_v36 = vld [vmem:[%s8814_s1 + $0x404] ss:$16 sps:$4 sm:$0xff]   ;;  %v6347_v45 = vld [vmem:[%s8814_s1 + $0x420] ss:$16 sps:$4 sm:$0xff]  }
  0x2f   :  { %1970 = vmatpush1.bf16.msra.mxu1 %v6283_v26  ;;  %v6337_v26 = vld [vmem:[%s8814_s1 + $0x3a4] ss:$16 sps:$4 sm:$0xff]   ;;  %v6350_v52 = vld [vmem:[%s8814_s1 + $0x440] ss:$16 sps:$4 sm:$0xff]  }
  0x30   :  { %1971 = vmatprep.subr.bf16.mxu1 %v6284_v27  ;;  %v6335_v27 = vld [vmem:[%s8814_s1 + $0x3a0] ss:$16 sps:$4 sm:$0xff]   ;;  %v6349_v44 = vld [vmem:[%s8814_s1 + $0x424] ss:$16 sps:$4 sm:$0xff]  }
  0x31   :  { %v6364_v4 = vld [vmem:[%s8814_s1 + $0x4c4] ss:$16 sps:$4 sm:$0xff]   ;;  %v6365_v13 = vld [vmem:[%s8814_s1 + $0x4e0] ss:$16 sps:$4 sm:$0xff]  }
  0x32   :  { %v6367_v12 = vld [vmem:[%s8814_s1 + $0x4e4] ss:$16 sps:$4 sm:$0xff]  }
  0x33   :  { %1972 = vmatpush1.bf16.msra.mxu1 %v6286_v28  ;;  %v6340_v28 = vld [vmem:[%s8814_s1 + $0x3c4] ss:$16 sps:$4 sm:$0xff]  }
  0x34   :  { %1973 = vmatprep.subr.bf16.mxu1 %v6287_v29  ;;  %v28_v29 = vld [vmem:[%s8815_s0 + $0x8] sm:$0xff] }
  0x37   :  { %1974 = vmatpush1.bf16.msra.mxu1 %v6289_v30  ;;  %v32_v30 = vld [vmem:[%s8815_s0 + $0x28] sm:$0xff] }
  0x38   :  { %1975 = vmatprep.subr.bf16.mxu1 %v6290_v31  ;;  %v7096_v31 = vcombine.low %v83_v21, %v87_v22  ;;  %v6368_v21 = vld [vmem:[%s8814_s1 + $0x500] ss:$16 sps:$4 sm:$0xff]  }
  0x3b   :  { %1976 = vmatpush1.bf16.msra.mxu1 %v6292_v32  ;;  %v6338_v32 = vld [vmem:[%s8814_s1 + $0x3c0] ss:$16 sps:$4 sm:$0xff]  }
  0x3c   :  { %1977 = vmatprep.subr.bf16.mxu1 %v6293_v33  ;;  %v7101_v33 = vcombine.high %v28_v29, %v32_v30 }
  0x3f   :  { %1978 = vmatpush1.bf16.msra.mxu1 %v6295_v34  ;;  %v6343_v34 = vld [vmem:[%s8814_s1 + $0x3e4] ss:$16 sps:$4 sm:$0xff]  }
  0x40   :  { %2060 = vmatprep.subr.bf16.mxu1 %v6298_v35  ;;  %v6341_v35 = vld [vmem:[%s8814_s1 + $0x3e0] ss:$16 sps:$4 sm:$0xff]  }
  0x42   :  { %1980 = vmatmul.mubr.bf16.vlgmr.msra.gmra.mrb[0].mxu1 %v6928_v38 }
  0x43   :  { %2061 = vmatpush1.bf16.msra.mxu1 %v6296_v39  ;;  %1989 = vmatprep.mubr.bf16.mxu1 %v6933_v40  ;;  %v40_v39 = vld [vmem:[%s8815_s0 + $0x68] sm:$0xff] }
  0x44   :  { %2062 = vmatprep.subr.bf16.mxu1 %v6301_v41  ;;  %v7120_v41 = vcombine.low %v28_v29, %v32_v30  ;;  %v80_v29 = vld [vmem:[%s8815_s0 + $0x1a8] sm:$0xff] }
  0x47   :  { %2063 = vmatpush1.bf16.msra.mxu1 %v6299_v42  ;;  %v6344_v42 = vld [vmem:[%s8814_s1 + $0x400] ss:$16 sps:$4 sm:$0xff]  }
  0x48   :  { %2064 = vmatprep.subr.bf16.mxu1 %v6304_v43  ;;  %v7125_v43 = vcombine.high %v36_v37, %v40_v39 }
  0x4a   :  { %1990 = vmatmul.mubr.bf16.gmra.mrb[4].mxu1 %v6952_v46 }
  0x4b   :  { %2065 = vmatpush1.bf16.msra.mxu1 %v6302_v47  ;;  %1999 = vmatprep.mubr.bf16.mxu1 %v6957_v48  ;;  %v6352_v47 = vld [vmem:[%s8814_s1 + $0x444] ss:$16 sps:$4 sm:$0xff]  }
  0x4c   :  { %2066 = vmatprep.subr.bf16.mxu1 %v6307_v49  ;;  %v44_v49 = vld [vmem:[%s8815_s0 + $0x88] sm:$0xff] }
  0x4f   :  { %2067 = vmatpush1.bf16.msra.mxu1 %v6305_v50  ;;  %v48_v50 = vld [vmem:[%s8815_s0 + $0xa8] sm:$0xff] }
  0x50   :  { %2068 = vmatprep.subr.bf16.mxu1 %v6310_v51  ;;  %v7144_v51 = vcombine.low %v36_v37, %v40_v39  ;;  %v7149_v53 = vcombine.high %v44_v49, %v48_v50  ;;  %v7168_v61 = vcombine.low %v44_v49, %v48_v50  ;;  %v6382_v37 = vld [vmem:[%s8814_s1 + $0x584] ss:$16 sps:$4 sm:$0xff]   ;;  %v84_v39 = vld [vmem:[%s8815_s0 + $0x1c8] sm:$0xff]  ;;  %v6383_v50 = vld [vmem:[%s8814_s1 + $0x5a0] ss:$16 sps:$4 sm:$0xff]  }
  0x51   :  { %v6385_v49 = vld [vmem:[%s8814_s1 + $0x5a4] ss:$16 sps:$4 sm:$0xff]  }
  0x52   :  { %2000 = vmatmul.mubr.bf16.gmra.mrb[8].mxu1 %v6976_v54 }
  0x53   :  { %2069 = vmatpush1.bf16.msra.mxu1 %v6308_v55  ;;  %2009 = vmatprep.mubr.bf16.mxu1 %v6981_v56  ;;  %v6355_v55 = vld [vmem:[%s8814_s1 + $0x464] ss:$16 sps:$4 sm:$0xff]  }
  0x54   :  { %2070 = vmatprep.subr.bf16.mxu1 %v6313_v57  ;;  %v6353_v57 = vld [vmem:[%s8814_s1 + $0x460] ss:$16 sps:$4 sm:$0xff]  }
  0x57   :  { %2071 = vmatpush1.bf16.msra.mxu1 %v6311_v58  ;;  %v6358_v58 = vld [vmem:[%s8814_s1 + $0x484] ss:$16 sps:$4 sm:$0xff]  }
  0x58   :  { %2072 = vmatprep.subr.bf16.mxu1 %v6316_v59  ;;  %v52_v59 = vld [vmem:[%s8815_s0 + $0xc8] sm:$0xff] }
  0x5a   :  { %2010 = vmatmul.mubr.bf16.gmra.mrb[12].mxu1 %v7000_v62 }
  0x5b   :  { %2073 = vmatpush1.bf16.msra.mxu1 %v6314_v63  ;;  %2019 = vmatprep.mubr.bf16.mxu1 %v7005_v0  ;;  %v6356_v63 = vld [vmem:[%s8814_s1 + $0x480] ss:$16 sps:$4 sm:$0xff]  }
  0x5c   :  { %2074 = vmatprep.subr.bf16.mxu1 %v6319_v1  ;;  %v7173_v1 = vcombine.high %v52_v59, %v56_v60 }
  0x5f   :  { %2075 = vmatpush1.bf16.msra.mxu1 %v6317_v2  ;;  %v6361_v2 = vld [vmem:[%s8814_s1 + $0x4a4] ss:$16 sps:$4 sm:$0xff]  }
  0x60   :  { %2076 = vmatprep.subr.bf16.mxu1 %v6322_v3  ;;  %v6359_v3 = vld [vmem:[%s8814_s1 + $0x4a0] ss:$16 sps:$4 sm:$0xff]  }
  0x62   :  { %2020 = vmatmul.mubr.bf16.gmra.mrb[16].mxu1 %v7024_v6 }
  0x63   :  { %2077 = vmatpush1.bf16.msra.mxu1 %v6320_v7  ;;  %2029 = vmatprep.mubr.bf16.mxu1 %v7029_v8  ;;  %v64_v7 = vld [vmem:[%s8815_s0 + $0x128] sm:$0xff] }
  0x64   :  { %2078 = vmatprep.subr.bf16.mxu1 %v6325_v9  ;;  %v7192_v9 = vcombine.low %v52_v59, %v56_v60  ;;  %v6386_v59 = vld [vmem:[%s8814_s1 + $0x5c0] ss:$16 sps:$4 sm:$0xff]  }
  0x67   :  { %2079 = vmatpush1.bf16.msra.mxu1 %v6323_v10  ;;  %v6362_v10 = vld [vmem:[%s8814_s1 + $0x4c0] ss:$16 sps:$4 sm:$0xff]  }
  0x68   :  { %2080 = vmatprep.subr.bf16.mxu1 %v6328_v11  ;;  %v7197_v11 = vcombine.high %v60_v5, %v64_v7 }
  0x6a   :  { %2030 = vmatmul.mubr.bf16.gmra.mrb[20].mxu1 %v7048_v14 }
  0x6b   :  { %2081 = vmatpush1.bf16.msra.mxu1 %v6326_v16  ;;  %2039 = vmatprep.mubr.bf16.mxu1 %v7053_v17  ;;  %v6370_v16 = vld [vmem:[%s8814_s1 + $0x504] ss:$16 sps:$4 sm:$0xff]  }
  0x6c   :  { %2082 = vmatprep.subr.bf16.mxu1 %v6331_v18  ;;  %v68_v18 = vld [vmem:[%s8815_s0 + $0x148] sm:$0xff] }
  0x6f   :  { %2083 = vmatpush1.bf16.msra.mxu1 %v6329_v19  ;;  %v72_v19 = vld [vmem:[%s8815_s0 + $0x168] sm:$0xff] }
  0x70   :  { %2084 = vmatprep.subr.bf16.mxu1 %v6334_v20  ;;  %v7216_v20 = vcombine.low %v60_v5, %v64_v7  ;;  %v7221_v22 = vcombine.high %v68_v18, %v72_v19  ;;  %v7240_v30 = vcombine.low %v68_v18, %v72_v19  ;;  %v41_v5 = vld [vmem:[%s8815_s0 + $0x70] sm:$0xff] }
  0x71   :  { %v6400_v18 = vld [vmem:[%s8814_s1 + $0x644] ss:$16 sps:$4 sm:$0xff]  }
  0x72   :  { %2040 = vmatmul.mubr.bf16.gmra.mrb[24].mxu1 %v7072_v23  ;;  %v45_v19 = vld [vmem:[%s8815_s0 + $0x90] sm:$0xff] }
  0x73   :  { %2085 = vmatpush1.bf16.msra.mxu1 %v6332_v24  ;;  %2049 = vmatprep.mubr.bf16.mxu1 %v7077_v25  ;;  %v6373_v24 = vld [vmem:[%s8814_s1 + $0x524] ss:$16 sps:$4 sm:$0xff]  }
  0x74   :  { %2086 = vmatprep.subr.bf16.mxu1 %v6337_v26  ;;  %v6371_v26 = vld [vmem:[%s8814_s1 + $0x520] ss:$16 sps:$4 sm:$0xff]  }
  0x77   :  { %2087 = vmatpush1.bf16.msra.mxu1 %v6335_v27  ;;  %v6376_v27 = vld [vmem:[%s8814_s1 + $0x544] ss:$16 sps:$4 sm:$0xff]  }
  0x78   :  { %2088 = vmatprep.subr.bf16.mxu1 %v6340_v28  ;;  %v76_v28 = vld [vmem:[%s8815_s0 + $0x188] sm:$0xff] }
  0x7a   :  { %2050 = vmatmul.mubr.bf16.gmra.mrb[28].mxu1 %v7096_v31 }
  0x7b   :  { %2089 = vmatpush1.bf16.msra.mxu1 %v6338_v32  ;;  %2092 = vmatprep.mubr.bf16.mxu1 %v7101_v33  ;;  %v6374_v32 = vld [vmem:[%s8814_s1 + $0x540] ss:$16 sps:$4 sm:$0xff]  }
  0x7c   :  { %2090 = vmatprep.subr.bf16.mxu1 %v6343_v34  ;;  %v7245_v34 = vcombine.high %v76_v28, %v80_v29 }
  0x7f   :  { %2091 = vmatpush1.bf16.msra.mxu1 %v6341_v35  ;;  %v6379_v35 = vld [vmem:[%s8814_s1 + $0x564] ss:$16 sps:$4 sm:$0xff]  }
  0x80   :  { %2173 = vmatprep.subr.bf16.mxu1 %v6346_v36  ;;  %v6377_v36 = vld [vmem:[%s8814_s1 + $0x560] ss:$16 sps:$4 sm:$0xff]  }
  0x82   :  { %2093 = vmatmul.mubr.bf16.vlgmr.msra.gmra.mrb[0].mxu1 %v7120_v41 }
  0x83   :  { %2174 = vmatpush1.bf16.msra.mxu1 %v6344_v42  ;;  %2102 = vmatprep.mubr.bf16.mxu1 %v7125_v43  ;;  %v88_v42 = vld [vmem:[%s8815_s0 + $0x1e8] sm:$0xff] }
  0x84   :  { %2175 = vmatprep.subr.bf16.mxu1 %v6349_v44  ;;  %v7264_v44 = vcombine.low %v76_v28, %v80_v29  ;;  %v6403_v28 = vld [vmem:[%s8814_s1 + $0x664] ss:$16 sps:$4 sm:$0xff]   ;;  %v6401_v29 = vld [vmem:[%s8814_s1 + $0x660] ss:$16 sps:$4 sm:$0xff]  }
  0x87   :  { %2176 = vmatpush1.bf16.msra.mxu1 %v6347_v45  ;;  %v6380_v45 = vld [vmem:[%s8814_s1 + $0x580] ss:$16 sps:$4 sm:$0xff]  }
  0x88   :  { %2177 = vmatprep.subr.bf16.mxu1 %v6352_v47  ;;  %v7269_v47 = vcombine.high %v84_v39, %v88_v42 }
  0x8a   :  { %2103 = vmatmul.mubr.bf16.gmra.mrb[4].mxu1 %v7144_v51 }
  0x8b   :  { %2178 = vmatpush1.bf16.msra.mxu1 %v6350_v52  ;;  %2112 = vmatprep.mubr.bf16.mxu1 %v7149_v53  ;;  %v6388_v52 = vld [vmem:[%s8814_s1 + $0x5c4] ss:$16 sps:$4 sm:$0xff]  }
  0x8c   :  { %2179 = vmatprep.subr.bf16.mxu1 %v6355_v55  ;;  %v29_v55 = vld [vmem:[%s8815_s0 + $0x10] sm:$0xff] }
  0x8f   :  { %2180 = vmatpush1.bf16.msra.mxu1 %v6353_v57  ;;  %v33_v57 = vld [vmem:[%s8815_s0 + $0x30] sm:$0xff] }
  0x90   :  { %2181 = vmatprep.subr.bf16.mxu1 %v6358_v58  ;;  %v7288_v58 = vcombine.low %v84_v39, %v88_v42  ;;  %v7293_v60 = vcombine.high %v29_v55, %v33_v57  ;;  %v7312_v7 = vcombine.low %v29_v55, %v33_v57  ;;  %v6404_v39 = vld [vmem:[%s8814_s1 + $0x680] ss:$16 sps:$4 sm:$0xff]  }
  0x91   :  { %v65_v55 = vld [vmem:[%s8815_s0 + $0x130] sm:$0xff] }
  0x92   :  { %2113 = vmatmul.mubr.bf16.gmra.mrb[8].mxu1 %v7168_v61 }
  0x93   :  { %2182 = vmatpush1.bf16.msra.mxu1 %v6356_v63  ;;  %2122 = vmatprep.mubr.bf16.mxu1 %v7173_v1  ;;  %v6391_v63 = vld [vmem:[%s8814_s1 + $0x5e4] ss:$16 sps:$4 sm:$0xff]  }
  0x94   :  { %2183 = vmatprep.subr.bf16.mxu1 %v6361_v2  ;;  %v6389_v2 = vld [vmem:[%s8814_s1 + $0x5e0] ss:$16 sps:$4 sm:$0xff]  }
  0x97   :  { %2184 = vmatpush1.bf16.msra.mxu1 %v6359_v3  ;;  %v6394_v3 = vld [vmem:[%s8814_s1 + $0x604] ss:$16 sps:$4 sm:$0xff]  }
  0x98   :  { %2185 = vmatprep.subr.bf16.mxu1 %v6364_v4  ;;  %v37_v4 = vld [vmem:[%s8815_s0 + $0x50] sm:$0xff] }
  0x9a   :  { %2123 = vmatmul.mubr.bf16.gmra.mrb[12].mxu1 %v7192_v9 }
  0x9b   :  { %2186 = vmatpush1.bf16.msra.mxu1 %v6362_v10  ;;  %2132 = vmatprep.mubr.bf16.mxu1 %v7197_v11  ;;  %v6392_v10 = vld [vmem:[%s8814_s1 + $0x600] ss:$16 sps:$4 sm:$0xff]  }
  0x9c   :  { %2187 = vmatprep.subr.bf16.mxu1 %v6367_v12  ;;  %v7317_v12 = vcombine.high %v37_v4, %v41_v5 }
  0x9f   :  { %2188 = vmatpush1.bf16.msra.mxu1 %v6365_v13  ;;  %v6397_v13 = vld [vmem:[%s8814_s1 + $0x624] ss:$16 sps:$4 sm:$0xff]  }
  0xa0   :  { %2189 = vmatprep.subr.bf16.mxu1 %v6370_v16  ;;  %v6395_v16 = vld [vmem:[%s8814_s1 + $0x620] ss:$16 sps:$4 sm:$0xff]  }
  0xa2   :  { %2133 = vmatmul.mubr.bf16.gmra.mrb[16].mxu1 %v7216_v20 }
  0xa3   :  { %2190 = vmatpush1.bf16.msra.mxu1 %v6368_v21  ;;  %2142 = vmatprep.mubr.bf16.mxu1 %v7221_v22  ;;  %v49_v21 = vld [vmem:[%s8815_s0 + $0xb0] sm:$0xff] }
  0xa4   :  { %2191 = vmatprep.subr.bf16.mxu1 %v6373_v24  ;;  %v7336_v24 = vcombine.low %v37_v4, %v41_v5  ;;  %v6418_v4 = vld [vmem:[%s8814_s1 + $0x704] ss:$16 sps:$4 sm:$0xff]  }
  0xa5   :  { %v69_v5 = vld [vmem:[%s8815_s0 + $0x150] sm:$0xff] }
  0xa7   :  { %2192 = vmatpush1.bf16.msra.mxu1 %v6371_v26  ;;  %v6398_v26 = vld [vmem:[%s8814_s1 + $0x640] ss:$16 sps:$4 sm:$0xff]  }
  0xa8   :  { %2193 = vmatprep.subr.bf16.mxu1 %v6376_v27  ;;  %v7341_v27 = vcombine.high %v45_v19, %v49_v21 }
  0xaa   :  { %2143 = vmatmul.mubr.bf16.gmra.mrb[20].mxu1 %v7240_v30 }
  0xab   :  { %2194 = vmatpush1.bf16.msra.mxu1 %v6374_v32  ;;  %2152 = vmatprep.mubr.bf16.mxu1 %v7245_v34  ;;  %v6406_v32 = vld [vmem:[%s8814_s1 + $0x684] ss:$16 sps:$4 sm:$0xff]  }
  0xac   :  { %2195 = vmatprep.subr.bf16.mxu1 %v6379_v35  ;;  %v53_v35 = vld [vmem:[%s8815_s0 + $0xd0] sm:$0xff] }
  0xaf   :  { %2196 = vmatpush1.bf16.msra.mxu1 %v6377_v36  ;;  %v57_v36 = vld [vmem:[%s8815_s0 + $0xf0] sm:$0xff] }
  0xb0   :  { %2197 = vmatprep.subr.bf16.mxu1 %v6382_v37  ;;  %v7360_v37 = vcombine.low %v45_v19, %v49_v21  ;;  %v7365_v42 = vcombine.high %v53_v35, %v57_v36  ;;  %v7384_v57 = vcombine.low %v53_v35, %v57_v36  ;;  %v6421_v19 = vld [vmem:[%s8814_s1 + $0x724] ss:$16 sps:$4 sm:$0xff]   ;;  %v6419_v21 = vld [vmem:[%s8814_s1 + $0x720] ss:$16 sps:$4 sm:$0xff]  }
  0xb1   :  { %v6422_v35 = vld [vmem:[%s8814_s1 + $0x740] ss:$16 sps:$4 sm:$0xff]  }
  0xb2   :  { %2153 = vmatmul.mubr.bf16.gmra.mrb[24].mxu1 %v7264_v44 }
  0xb3   :  { %2198 = vmatpush1.bf16.msra.mxu1 %v6380_v45  ;;  %2162 = vmatprep.mubr.bf16.mxu1 %v7269_v47  ;;  %v6409_v45 = vld [vmem:[%s8814_s1 + $0x6a4] ss:$16 sps:$4 sm:$0xff]  }
  0xb4   :  { %2199 = vmatprep.subr.bf16.mxu1 %v6385_v49  ;;  %v6407_v49 = vld [vmem:[%s8814_s1 + $0x6a0] ss:$16 sps:$4 sm:$0xff]  }
  0xb7   :  { %2200 = vmatpush1.bf16.msra.mxu1 %v6383_v50  ;;  %v6412_v50 = vld [vmem:[%s8814_s1 + $0x6c4] ss:$16 sps:$4 sm:$0xff]  }
  0xb8   :  { %2201 = vmatprep.subr.bf16.mxu1 %v6388_v52  ;;  %v61_v52 = vld [vmem:[%s8815_s0 + $0x110] sm:$0xff] }
  0xba   :  { %2163 = vmatmul.mubr.bf16.gmra.mrb[28].mxu1 %v7288_v58 }
  0xbb   :  { %2202 = vmatpush1.bf16.msra.mxu1 %v6386_v59  ;;  %2205 = vmatprep.mubr.bf16.mxu1 %v7293_v60  ;;  %v6410_v59 = vld [vmem:[%s8814_s1 + $0x6c0] ss:$16 sps:$4 sm:$0xff]  }
  0xbc   :  { %2203 = vmatprep.subr.bf16.mxu1 %v6391_v63  ;;  %v7389_v63 = vcombine.high %v61_v52, %v65_v55 }
  0xbf   :  { %2204 = vmatpush1.bf16.msra.mxu1 %v6389_v2  ;;  %v6415_v2 = vld [vmem:[%s8814_s1 + $0x6e4] ss:$16 sps:$4 sm:$0xff]  }
  0xc0   :  { %2286 = vmatprep.subr.bf16.mxu1 %v6394_v3  ;;  %v6413_v3 = vld [vmem:[%s8814_s1 + $0x6e0] ss:$16 sps:$4 sm:$0xff]  }
  0xc2   :  { %2206 = vmatmul.mubr.bf16.vlgmr.msra.gmra.mrb[0].mxu1 %v7312_v7 }
  0xc3   :  { %2287 = vmatpush1.bf16.msra.mxu1 %v6392_v10  ;;  %2215 = vmatprep.mubr.bf16.mxu1 %v7317_v12  ;;  %v73_v10 = vld [vmem:[%s8815_s0 + $0x170] sm:$0xff] }
  0xc4   :  { %2288 = vmatprep.subr.bf16.mxu1 %v6397_v13  ;;  %v7408_v13 = vcombine.low %v61_v52, %v65_v55  ;;  %v89_v52 = vld [vmem:[%s8815_s0 + $0x1f0] sm:$0xff] }
  0xc7   :  { %2289 = vmatpush1.bf16.msra.mxu1 %v6395_v16  ;;  %v6416_v16 = vld [vmem:[%s8814_s1 + $0x700] ss:$16 sps:$4 sm:$0xff]  }
  0xc8   :  { %2290 = vmatprep.subr.bf16.mxu1 %v6400_v18  ;;  %v7413_v18 = vcombine.high %v69_v5, %v73_v10 }
  0xca   :  { %2216 = vmatmul.mubr.bf16.gmra.mrb[4].mxu1 %v7336_v24 }
  0xcb   :  { %2291 = vmatpush1.bf16.msra.mxu1 %v6398_v26  ;;  %2225 = vmatprep.mubr.bf16.mxu1 %v7341_v27  ;;  %v6424_v26 = vld [vmem:[%s8814_s1 + $0x744] ss:$16 sps:$4 sm:$0xff]  }
  0xcc   :  { %2292 = vmatprep.subr.bf16.mxu1 %v6403_v28  ;;  %v77_v28 = vld [vmem:[%s8815_s0 + $0x190] sm:$0xff] }
  0xcf   :  { %2293 = vmatpush1.bf16.msra.mxu1 %v6401_v29  ;;  %v81_v29 = vld [vmem:[%s8815_s0 + $0x1b0] sm:$0xff] }
  0xd0   :  { %2294 = vmatprep.subr.bf16.mxu1 %v6406_v32  ;;  %v7432_v32 = vcombine.low %v69_v5, %v73_v10  ;;  %v7437_v36 = vcombine.high %v77_v28, %v81_v29  ;;  %v7456_v55 = vcombine.low %v77_v28, %v81_v29  ;;  %v6436_v5 = vld [vmem:[%s8814_s1 + $0x7c4] ss:$16 sps:$4 sm:$0xff]   ;;  %v30_v10 = vld [vmem:[%s8815_s0 + $0x18] sm:$0xff]  ;;  %v6437_v29 = vld [vmem:[%s8814_s1 + $0x7e0] ss:$16 sps:$4 sm:$0xff]  }
  0xd1   :  { %v6439_v28 = vld [vmem:[%s8814_s1 + $0x7e4] ss:$16 sps:$4 sm:$0xff]  }
  0xd2   :  { %2226 = vmatmul.mubr.bf16.gmra.mrb[8].mxu1 %v7360_v37 }
  0xd3   :  { %2295 = vmatpush1.bf16.msra.mxu1 %v6404_v39  ;;  %2235 = vmatprep.mubr.bf16.mxu1 %v7365_v42  ;;  %v6427_v39 = vld [vmem:[%s8814_s1 + $0x764] ss:$16 sps:$4 sm:$0xff]  }
  0xd4   :  { %2296 = vmatprep.subr.bf16.mxu1 %v6409_v45  ;;  %v6425_v45 = vld [vmem:[%s8814_s1 + $0x760] ss:$16 sps:$4 sm:$0xff]  }
  0xd7   :  { %2297 = vmatpush1.bf16.msra.mxu1 %v6407_v49  ;;  %v6430_v49 = vld [vmem:[%s8814_s1 + $0x784] ss:$16 sps:$4 sm:$0xff]  }
  0xd8   :  { %2298 = vmatprep.subr.bf16.mxu1 %v6412_v50  ;;  %v85_v50 = vld [vmem:[%s8815_s0 + $0x1d0] sm:$0xff] }
  0xda   :  { %2236 = vmatmul.mubr.bf16.gmra.mrb[12].mxu1 %v7384_v57 }
  0xdb   :  { %2299 = vmatpush1.bf16.msra.mxu1 %v6410_v59  ;;  %2245 = vmatprep.mubr.bf16.mxu1 %v7389_v63  ;;  %v6428_v59 = vld [vmem:[%s8814_s1 + $0x780] ss:$16 sps:$4 sm:$0xff]  }
  0xdc   :  { %2300 = vmatprep.subr.bf16.mxu1 %v6415_v2  ;;  %v7461_v2 = vcombine.high %v85_v50, %v89_v52 }
  0xdf   :  { %2301 = vmatpush1.bf16.msra.mxu1 %v6413_v3  ;;  %v6433_v3 = vld [vmem:[%s8814_s1 + $0x7a4] ss:$16 sps:$4 sm:$0xff]  }
  0xe0   :  { %2302 = vmatprep.subr.bf16.mxu1 %v6418_v4  ;;  %v6431_v4 = vld [vmem:[%s8814_s1 + $0x7a0] ss:$16 sps:$4 sm:$0xff]  }
  0xe2   :  { %2246 = vmatmul.mubr.bf16.gmra.mrb[16].mxu1 %v7408_v13 }
  0xe3   :  { %2303 = vmatpush1.bf16.msra.mxu1 %v6416_v16  ;;  %2255 = vmatprep.mubr.bf16.mxu1 %v7413_v18  ;;  %v34_v16 = vld [vmem:[%s8815_s0 + $0x38] sm:$0xff] }
  0xe4   :  { %2304 = vmatprep.subr.bf16.mxu1 %v6421_v19  ;;  %v7480_v19 = vcombine.low %v85_v50, %v89_v52  ;;  %v6440_v50 = vld [vmem:[%s8814_s1 + $0x8] ss:$16 sps:$4 sm:$0xff]  }
  0xe7   :  { %2305 = vmatpush1.bf16.msra.mxu1 %v6419_v21  ;;  %v6434_v21 = vld [vmem:[%s8814_s1 + $0x7c0] ss:$16 sps:$4 sm:$0xff]  }
  0xe8   :  { %2306 = vmatprep.subr.bf16.mxu1 %v6424_v26  ;;  %v7485_v26 = vcombine.high %v30_v10, %v34_v16 }
  0xea   :  { %2256 = vmatmul.mubr.bf16.gmra.mrb[20].mxu1 %v7432_v32 }
  0xeb   :  { %2307 = vmatpush1.bf16.msra.mxu1 %v6422_v35  ;;  %2265 = vmatprep.mubr.bf16.mxu1 %v7437_v36  ;;  %v6442_v35 = vld [vmem:[%s8814_s1 + $0xc] ss:$16 sps:$4 sm:$0xff]  }
  0xec   :  { %2308 = vmatprep.subr.bf16.mxu1 %v6427_v39  ;;  %v38_v39 = vld [vmem:[%s8815_s0 + $0x58] sm:$0xff] }
  0xef   :  { %2309 = vmatpush1.bf16.msra.mxu1 %v6425_v45  ;;  %v42_v45 = vld [vmem:[%s8815_s0 + $0x78] sm:$0xff] }
  0xf0   :  { %2310 = vmatprep.subr.bf16.mxu1 %v6430_v49  ;;  %v7504_v49 = vcombine.low %v30_v10, %v34_v16  ;;  %v7509_v52 = vcombine.high %v38_v39, %v42_v45  ;;  %v50_v10 = vld [vmem:[%s8815_s0 + $0xb8] sm:$0xff]  ;;  %v7528_v16 = vcombine.low %v38_v39, %v42_v45 }
  0xf1   :  { %v6454_v39 = vld [vmem:[%s8814_s1 + $0x8c] ss:$16 sps:$4 sm:$0xff]  }
  0xf2   :  { %2266 = vmatmul.mubr.bf16.gmra.mrb[24].mxu1 %v7456_v55  ;;  %v54_v45 = vld [vmem:[%s8815_s0 + $0xd8] sm:$0xff] }
  0xf3   :  { %2311 = vmatpush1.bf16.msra.mxu1 %v6428_v59  ;;  %2275 = vmatprep.mubr.bf16.mxu1 %v7461_v2  ;;  %v6445_v59 = vld [vmem:[%s8814_s1 + $0x2c] ss:$16 sps:$4 sm:$0xff]  }
  0xf4   :  { %2312 = vmatprep.subr.bf16.mxu1 %v6433_v3  ;;  %v6443_v3 = vld [vmem:[%s8814_s1 + $0x28] ss:$16 sps:$4 sm:$0xff]  }
  0xf7   :  { %2313 = vmatpush1.bf16.msra.mxu1 %v6431_v4  ;;  %v6448_v4 = vld [vmem:[%s8814_s1 + $0x4c] ss:$16 sps:$4 sm:$0xff]  }
  0xf8   :  { %2314 = vmatprep.subr.bf16.mxu1 %v6436_v5  ;;  %v46_v5 = vld [vmem:[%s8815_s0 + $0x98] sm:$0xff] }
  0xfa   :  { %2276 = vmatmul.mubr.bf16.gmra.mrb[28].mxu1 %v7480_v19 }
  0xfb   :  { %2315 = vmatpush1.bf16.msra.mxu1 %v6434_v21  ;;  %2318 = vmatprep.mubr.bf16.mxu1 %v7485_v26  ;;  %v6446_v21 = vld [vmem:[%s8814_s1 + $0x48] ss:$16 sps:$4 sm:$0xff]  }
  0xfc   :  { %2316 = vmatprep.subr.bf16.mxu1 %v6439_v28  ;;  %v7533_v28 = vcombine.high %v46_v5, %v50_v10 }
  0xff   :  { %2317 = vmatpush1.bf16.msra.mxu1 %v6437_v29  ;;  %v6451_v29 = vld [vmem:[%s8814_s1 + $0x6c] ss:$16 sps:$4 sm:$0xff]  }
 0x100   :  { %2399 = vmatprep.subr.bf16.mxu1 %v6442_v35  ;;  %v6449_v35 = vld [vmem:[%s8814_s1 + $0x68] ss:$16 sps:$4 sm:$0xff]  }
 0x102   :  { %2319 = vmatmul.mubr.bf16.vlgmr.msra.gmra.mrb[0].mxu1 %v7504_v49 }
 0x103   :  { %2400 = vmatpush1.bf16.msra.mxu1 %v6440_v50  ;;  %2328 = vmatprep.mubr.bf16.mxu1 %v7509_v52  ;;  %v58_v50 = vld [vmem:[%s8815_s0 + $0xf8] sm:$0xff] }
 0x104   :  { %2401 = vmatprep.subr.bf16.mxu1 %v6445_v59  ;;  %v7552_v59 = vcombine.low %v46_v5, %v50_v10  ;;  %v6455_v5 = vld [vmem:[%s8814_s1 + $0xa8] ss:$16 sps:$4 sm:$0xff]   ;;  %v6460_v10 = vld [vmem:[%s8814_s1 + $0xcc] ss:$16 sps:$4 sm:$0xff]  }
 0x107   :  { %2402 = vmatpush1.bf16.msra.mxu1 %v6443_v3  ;;  %v6452_v3 = vld [vmem:[%s8814_s1 + $0x88] ss:$16 sps:$4 sm:$0xff]  }
 0x108   :  { %2403 = vmatprep.subr.bf16.mxu1 %v6448_v4  ;;  %v7557_v4 = vcombine.high %v54_v45, %v58_v50 }
 0x10a   :  { %2329 = vmatmul.mubr.bf16.gmra.mrb[4].mxu1 %v7528_v16  ;;  %8829 = vst [vmem:[#allocation2_spill] sm:$0xff] %v7557_v4 }
 0x10b   :  { %2404 = vmatpush1.bf16.msra.mxu1 %v6446_v21  ;;  %2338 = vmatprep.mubr.bf16.mxu1 %v7533_v28  ;;  %v6457_v21 = vld [vmem:[%s8814_s1 + $0xac] ss:$16 sps:$4 sm:$0xff]  }
 0x10c   :  { %2405 = vmatprep.subr.bf16.mxu1 %v6451_v29  ;;  %v62_v29 = vld [vmem:[%s8815_s0 + $0x118] sm:$0xff] }
 0x10f   :  { %2406 = vmatpush1.bf16.msra.mxu1 %v6449_v35  ;;  %v66_v35 = vld [vmem:[%s8815_s0 + $0x138] sm:$0xff] }
 0x110   :  { %2407 = vmatprep.subr.bf16.mxu1 %v6454_v39  ;;  %v7576_v39 = vcombine.low %v54_v45, %v58_v50  ;;  %v6461_v45 = vld [vmem:[%s8814_s1 + $0xe8] ss:$16 sps:$4 sm:$0xff]   ;;  %v6466_v50 = vld [vmem:[%s8814_s1 + $0x10c] ss:$16 sps:$4 sm:$0xff]  }
 0x112   :  { %2339 = vmatmul.mubr.bf16.gmra.mrb[8].mxu1 %v7552_v59  ;;  %8830 = vst [vmem:[#allocation3_spill] sm:$0xff] %v7576_v39 }
 0x113   :  { %2408 = vmatpush1.bf16.msra.mxu1 %v6452_v3  ;;  %2348 = vmatprep.mubr.bf16.mxu1 %v7557_v4  ;;  %v6458_v3 = vld [vmem:[%s8814_s1 + $0xc8] ss:$16 sps:$4 sm:$0xff]   ;;  %v6463_v4 = vld [vmem:[%s8814_s1 + $0xec] ss:$16 sps:$4 sm:$0xff]  }
 0x114   :  { %2409 = vmatprep.subr.bf16.mxu1 %v6457_v21  ;;  %v7581_v21 = vcombine.high %v62_v29, %v66_v35 }
 0x116   :  { %8831 = vst [vmem:[#allocation4_spill] sm:$0xff] %v7581_v21 }
 0x117   :  { %2410 = vmatpush1.bf16.msra.mxu1 %v6455_v5  ;;  %v70_v5 = vld [vmem:[%s8815_s0 + $0x158] sm:$0xff] }
 0x118   :  { %2411 = vmatprep.subr.bf16.mxu1 %v6460_v10  ;;  %v74_v10 = vld [vmem:[%s8815_s0 + $0x178] sm:$0xff] }
 0x11a   :  { %2349 = vmatmul.mubr.bf16.gmra.mrb[12].mxu1 %v7576_v39  ;;  %v6469_v39 = vld [vmem:[%s8814_s1 + $0x12c] ss:$16 sps:$4 sm:$0xff]  }
 0x11b   :  { %2412 = vmatpush1.bf16.msra.mxu1 %v6458_v3  ;;  %2358 = vmatprep.mubr.bf16.mxu1 %v7581_v21  ;;  %v7600_v3 = vcombine.low %v62_v29, %v66_v35  ;;  %v6464_v21 = vld [vmem:[%s8814_s1 + $0x108] ss:$16 sps:$4 sm:$0xff]   ;;  %v6472_v35 = vld [vmem:[%s8814_s1 + $0x14c] ss:$16 sps:$4 sm:$0xff]  }
 0x11c   :  { %2413 = vmatprep.subr.bf16.mxu1 %v6463_v4  ;;  %v7605_v4 = vcombine.high %v70_v5, %v74_v10  ;;  %v6467_v29 = vld [vmem:[%s8814_s1 + $0x128] ss:$16 sps:$4 sm:$0xff]  }
 0x11d   :  { %8832 = vst [vmem:[#allocation5_spill] sm:$0xff] %v7600_v3 }
 0x11e   :  { %8833 = vst [vmem:[#allocation6_spill] sm:$0xff] %v7605_v4 }
 0x11f   :  { %2414 = vmatpush1.bf16.msra.mxu1 %v6461_v45  ;;  %v78_v45 = vld [vmem:[%s8815_s0 + $0x198] sm:$0xff] }
 0x120   :  { %2415 = vmatprep.subr.bf16.mxu1 %v6466_v50  ;;  %v82_v50 = vld [vmem:[%s8815_s0 + $0x1b8] sm:$0xff] }
 0x122   :  { %2359 = vmatmul.mubr.bf16.gmra.mrb[16].mxu1 %v7600_v3  ;;  %v6475_v3 = vld [vmem:[%s8814_s1 + $0x16c] ss:$16 sps:$4 sm:$0xff]  }
 0x123   :  { %2416 = vmatpush1.bf16.msra.mxu1 %v6464_v21  ;;  %2368 = vmatprep.mubr.bf16.mxu1 %v7605_v4  ;;  %v7624_v21 = vcombine.low %v70_v5, %v74_v10  ;;  %v6470_v4 = vld [vmem:[%s8814_s1 + $0x148] ss:$16 sps:$4 sm:$0xff]   ;;  %v6478_v10 = vld [vmem:[%s8814_s1 + $0x18c] ss:$16 sps:$4 sm:$0xff]  }
 0x124   :  { %2417 = vmatprep.subr.bf16.mxu1 %v6469_v39  ;;  %v7629_v39 = vcombine.high %v78_v45, %v82_v50  ;;  %v6473_v5 = vld [vmem:[%s8814_s1 + $0x168] ss:$16 sps:$4 sm:$0xff]  }
 0x125   :  { %8834 = vst [vmem:[#allocation7_spill] sm:$0xff] %v7624_v21 }
 0x126   :  { %8835 = vst [vmem:[#allocation8_spill] sm:$0xff] %v7629_v39 }
 0x127   :  { %2418 = vmatpush1.bf16.msra.mxu1 %v6467_v29  ;;  %v86_v29 = vld [vmem:[%s8815_s0 + $0x1d8] sm:$0xff] }
 0x128   :  { %2419 = vmatprep.subr.bf16.mxu1 %v6472_v35  ;;  %v90_v35 = vld [vmem:[%s8815_s0 + $0x1f8] sm:$0xff] }
 0x12a   :  { %2369 = vmatmul.mubr.bf16.gmra.mrb[20].mxu1 %v7624_v21  ;;  %v6481_v21 = vld [vmem:[%s8814_s1 + $0x1ac] ss:$16 sps:$4 sm:$0xff]  }
 0x12b   :  { %2420 = vmatpush1.bf16.msra.mxu1 %v6470_v4  ;;  %2378 = vmatprep.mubr.bf16.mxu1 %v7629_v39  ;;  %v7648_v4 = vcombine.low %v78_v45, %v82_v50  ;;  %v6476_v39 = vld [vmem:[%s8814_s1 + $0x188] ss:$16 sps:$4 sm:$0xff]   ;;  %v6484_v50 = vld [vmem:[%s8814_s1 + $0x1cc] ss:$16 sps:$4 sm:$0xff]  }
 0x12c   :  { %2421 = vmatprep.subr.bf16.mxu1 %v6475_v3  ;;  %v7653_v3 = vcombine.high %v86_v29, %v90_v35  ;;  %v6479_v45 = vld [vmem:[%s8814_s1 + $0x1a8] ss:$16 sps:$4 sm:$0xff]  }
 0x12f   :  { %2422 = vmatpush1.bf16.msra.mxu1 %v6473_v5  ;;  %v7666_v5 = vcombine.low %v86_v29, %v90_v35  ;;  %v6490_v29 = vld [vmem:[%s8814_s1 + $0x20c] ss:$16 sps:$4 sm:$0xff]   ;;  %v6488_v35 = vld [vmem:[%s8814_s1 + $0x208] ss:$16 sps:$4 sm:$0xff]  }
 0x130   :  { %2423 = vmatprep.subr.bf16.mxu1 %v6478_v10  ;;  %v6482_v10 = vld [vmem:[%s8814_s1 + $0x1c8] ss:$16 sps:$4 sm:$0xff]  }
 0x132   :  { %2379 = vmatmul.mubr.bf16.gmra.mrb[24].mxu1 %v7648_v4 }
 0x133   :  { %2424 = vmatpush1.bf16.msra.mxu1 %v6476_v39  ;;  %2388 = vmatprep.mubr.bf16.mxu1 %v7653_v3  ;;  %v6487_v39 = vld [vmem:[%s8814_s1 + $0x1ec] ss:$16 sps:$4 sm:$0xff]  }
 0x134   :  { %2425 = vmatprep.subr.bf16.mxu1 %v6481_v21  ;;  %v6485_v21 = vld [vmem:[%s8814_s1 + $0x1e8] ss:$16 sps:$4 sm:$0xff]  }
 0x137   :  { %2426 = vmatpush1.bf16.msra.mxu1 %v6479_v45  ;;  %v6493_v45 = vld [vmem:[%s8814_s1 + $0x22c] ss:$16 sps:$4 sm:$0xff]  }
 0x138   :  { %2427 = vmatprep.subr.bf16.mxu1 %v6484_v50  ;;  %v6496_v50 = vld [vmem:[%s8814_s1 + $0x24c] ss:$16 sps:$4 sm:$0xff]  }
 0x13a   :  { %2389 = vmatmul.mubr.bf16.gmra.mrb[28].mxu1 %v7666_v5 }
 0x13b   :  { %2428 = vmatpush1.bf16.msra.mxu1 %v6482_v10  ;;  %2431 = vmatprep.mubr.bf16.mxu1 %v6859_v15  ;;  %v6491_v15 = vld [vmem:[%s8814_s1 + $0x228] ss:$16 sps:$4 sm:$0xff]  }
 0x13c   :  { %2429 = vmatprep.subr.bf16.mxu1 %v6487_v39  ;;  %v6494_v10 = vld [vmem:[%s8814_s1 + $0x248] ss:$16 sps:$4 sm:$0xff]   ;;  %v6502_v39 = vld [vmem:[%s8814_s1 + $0x28c] ss:$16 sps:$4 sm:$0xff]  }
 0x13f   :  { %2430 = vmatpush1.bf16.msra.mxu1 %v6485_v21  ;;  %v6500_v21 = vld [vmem:[%s8814_s1 + $0x288] ss:$16 sps:$4 sm:$0xff]  }
 0x140   :  { %2512 = vmatprep.subr.bf16.mxu1 %v6490_v29  ;;  %v6508_v29 = vld [vmem:[%s8814_s1 + $0x2cc] ss:$16 sps:$4 sm:$0xff]  }
 0x142   :  { %2432 = vmatmul.mubr.bf16.vlgmr.msra.gmra.mrb[32].mxu1 %v6928_v38  ;;  %v6499_v38 = vld [vmem:[%s8814_s1 + $0x26c] ss:$16 sps:$4 sm:$0xff]  }
 0x143   :  { %2513 = vmatpush1.bf16.msra.mxu1 %v6488_v35  ;;  %2441 = vmatprep.mubr.bf16.mxu1 %v6933_v40  ;;  %v6497_v40 = vld [vmem:[%s8814_s1 + $0x268] ss:$16 sps:$4 sm:$0xff]  }
 0x144   :  { %2514 = vmatprep.subr.bf16.mxu1 %v6493_v45  ;;  %v6506_v35 = vld [vmem:[%s8814_s1 + $0x2c8] ss:$16 sps:$4 sm:$0xff]   ;;  %v6514_v45 = vld [vmem:[%s8814_s1 + $0x30c] ss:$16 sps:$4 sm:$0xff]  }
 0x147   :  { %2515 = vmatpush1.bf16.msra.mxu1 %v6491_v15  ;;  %v6512_v15 = vld [vmem:[%s8814_s1 + $0x308] ss:$16 sps:$4 sm:$0xff]  }
 0x148   :  { %2516 = vmatprep.subr.bf16.mxu1 %v6496_v50  ;;  %v6520_v50 = vld [vmem:[%s8814_s1 + $0x34c] ss:$16 sps:$4 sm:$0xff]  }
 0x14a   :  { %2442 = vmatmul.mubr.bf16.gmra.mrb[36].mxu1 %v6952_v46  ;;  %v6505_v46 = vld [vmem:[%s8814_s1 + $0x2ac] ss:$16 sps:$4 sm:$0xff]  }
 0x14b   :  { %2517 = vmatpush1.bf16.msra.mxu1 %v6494_v10  ;;  %2451 = vmatprep.mubr.bf16.mxu1 %v6957_v48  ;;  %v6503_v48 = vld [vmem:[%s8814_s1 + $0x2a8] ss:$16 sps:$4 sm:$0xff]  }
 0x14c   :  { %2518 = vmatprep.subr.bf16.mxu1 %v6499_v38  ;;  %v6518_v10 = vld [vmem:[%s8814_s1 + $0x348] ss:$16 sps:$4 sm:$0xff]   ;;  %v6526_v38 = vld [vmem:[%s8814_s1 + $0x38c] ss:$16 sps:$4 sm:$0xff]  }
 0x14f   :  { %2519 = vmatpush1.bf16.msra.mxu1 %v6497_v40  ;;  %v6524_v40 = vld [vmem:[%s8814_s1 + $0x388] ss:$16 sps:$4 sm:$0xff]  }
 0x150   :  { %2520 = vmatprep.subr.bf16.mxu1 %v6502_v39  ;;  %v6532_v39 = vld [vmem:[%s8814_s1 + $0x3cc] ss:$16 sps:$4 sm:$0xff]  }
 0x152   :  { %2452 = vmatmul.mubr.bf16.gmra.mrb[40].mxu1 %v6976_v54  ;;  %v6511_v54 = vld [vmem:[%s8814_s1 + $0x2ec] ss:$16 sps:$4 sm:$0xff]  }
 0x153   :  { %2521 = vmatpush1.bf16.msra.mxu1 %v6500_v21  ;;  %2461 = vmatprep.mubr.bf16.mxu1 %v6981_v56  ;;  %v6509_v56 = vld [vmem:[%s8814_s1 + $0x2e8] ss:$16 sps:$4 sm:$0xff]  }
 0x154   :  { %2522 = vmatprep.subr.bf16.mxu1 %v6505_v46  ;;  %v6530_v21 = vld [vmem:[%s8814_s1 + $0x3c8] ss:$16 sps:$4 sm:$0xff]   ;;  %v6538_v46 = vld [vmem:[%s8814_s1 + $0x40c] ss:$16 sps:$4 sm:$0xff]  }
 0x157   :  { %2523 = vmatpush1.bf16.msra.mxu1 %v6503_v48  ;;  %v6536_v48 = vld [vmem:[%s8814_s1 + $0x408] ss:$16 sps:$4 sm:$0xff]  }
 0x158   :  { %2524 = vmatprep.subr.bf16.mxu1 %v6508_v29  ;;  %v6544_v29 = vld [vmem:[%s8814_s1 + $0x44c] ss:$16 sps:$4 sm:$0xff]  }
 0x15a   :  { %2462 = vmatmul.mubr.bf16.gmra.mrb[44].mxu1 %v7000_v62  ;;  %v6517_v62 = vld [vmem:[%s8814_s1 + $0x32c] ss:$16 sps:$4 sm:$0xff]  }
 0x15b   :  { %2525 = vmatpush1.bf16.msra.mxu1 %v6506_v35  ;;  %2471 = vmatprep.mubr.bf16.mxu1 %v7005_v0  ;;  %v6515_v0 = vld [vmem:[%s8814_s1 + $0x328] ss:$16 sps:$4 sm:$0xff]  }
 0x15c   :  { %2526 = vmatprep.subr.bf16.mxu1 %v6511_v54  ;;  %v6542_v35 = vld [vmem:[%s8814_s1 + $0x448] ss:$16 sps:$4 sm:$0xff]   ;;  %v6550_v54 = vld [vmem:[%s8814_s1 + $0x48c] ss:$16 sps:$4 sm:$0xff]  }
 0x15f   :  { %2527 = vmatpush1.bf16.msra.mxu1 %v6509_v56  ;;  %v6548_v56 = vld [vmem:[%s8814_s1 + $0x488] ss:$16 sps:$4 sm:$0xff]  }
 0x160   :  { %2528 = vmatprep.subr.bf16.mxu1 %v6514_v45  ;;  %v6556_v45 = vld [vmem:[%s8814_s1 + $0x4cc] ss:$16 sps:$4 sm:$0xff]  }
 0x162   :  { %2472 = vmatmul.mubr.bf16.gmra.mrb[48].mxu1 %v7024_v6  ;;  %v6523_v6 = vld [vmem:[%s8814_s1 + $0x36c] ss:$16 sps:$4 sm:$0xff]  }
 0x163   :  { %2529 = vmatpush1.bf16.msra.mxu1 %v6512_v15  ;;  %2481 = vmatprep.mubr.bf16.mxu1 %v7029_v8  ;;  %v6521_v8 = vld [vmem:[%s8814_s1 + $0x368] ss:$16 sps:$4 sm:$0xff]  }
 0x164   :  { %2530 = vmatprep.subr.bf16.mxu1 %v6517_v62  ;;  %v6554_v15 = vld [vmem:[%s8814_s1 + $0x4c8] ss:$16 sps:$4 sm:$0xff]   ;;  %v6562_v62 = vld [vmem:[%s8814_s1 + $0x50c] ss:$16 sps:$4 sm:$0xff]  }
 0x167   :  { %2531 = vmatpush1.bf16.msra.mxu1 %v6515_v0  ;;  %v6560_v0 = vld [vmem:[%s8814_s1 + $0x508] ss:$16 sps:$4 sm:$0xff]  }
 0x168   :  { %2532 = vmatprep.subr.bf16.mxu1 %v6520_v50  ;;  %v6568_v50 = vld [vmem:[%s8814_s1 + $0x54c] ss:$16 sps:$4 sm:$0xff]  }
 0x16a   :  { %2482 = vmatmul.mubr.bf16.gmra.mrb[52].mxu1 %v7048_v14  ;;  %v6529_v14 = vld [vmem:[%s8814_s1 + $0x3ac] ss:$16 sps:$4 sm:$0xff]  }
 0x16b   :  { %2533 = vmatpush1.bf16.msra.mxu1 %v6518_v10  ;;  %2491 = vmatprep.mubr.bf16.mxu1 %v7053_v17  ;;  %v6527_v17 = vld [vmem:[%s8814_s1 + $0x3a8] ss:$16 sps:$4 sm:$0xff]  }
 0x16c   :  { %2534 = vmatprep.subr.bf16.mxu1 %v6523_v6  ;;  %v6566_v10 = vld [vmem:[%s8814_s1 + $0x548] ss:$16 sps:$4 sm:$0xff]   ;;  %v6574_v6 = vld [vmem:[%s8814_s1 + $0x58c] ss:$16 sps:$4 sm:$0xff]  }
 0x16f   :  { %2535 = vmatpush1.bf16.msra.mxu1 %v6521_v8  ;;  %v6572_v8 = vld [vmem:[%s8814_s1 + $0x588] ss:$16 sps:$4 sm:$0xff]  }
 0x170   :  { %2536 = vmatprep.subr.bf16.mxu1 %v6526_v38  ;;  %v6580_v38 = vld [vmem:[%s8814_s1 + $0x5cc] ss:$16 sps:$4 sm:$0xff]  }
 0x172   :  { %2492 = vmatmul.mubr.bf16.gmra.mrb[56].mxu1 %v7072_v23  ;;  %v6535_v23 = vld [vmem:[%s8814_s1 + $0x3ec] ss:$16 sps:$4 sm:$0xff]  }
 0x173   :  { %2537 = vmatpush1.bf16.msra.mxu1 %v6524_v40  ;;  %2501 = vmatprep.mubr.bf16.mxu1 %v7077_v25  ;;  %v6533_v25 = vld [vmem:[%s8814_s1 + $0x3e8] ss:$16 sps:$4 sm:$0xff]  }
 0x174   :  { %2538 = vmatprep.subr.bf16.mxu1 %v6529_v14  ;;  %v6578_v40 = vld [vmem:[%s8814_s1 + $0x5c8] ss:$16 sps:$4 sm:$0xff]   ;;  %v6632_v14 = vld [vmem:[%s8816_s3] sm:$0xff]  }
 0x177   :  { %2539 = vmatpush1.bf16.msra.mxu1 %v6527_v17  ;;  %v6586_v17 = vld [vmem:[%s8814_s1 + $0x60c] ss:$16 sps:$4 sm:$0xff]  }
 0x178   :  { %2540 = vmatprep.subr.bf16.mxu1 %v6532_v39  ;;  %v6772_v39 = vmov 0.0  }
 0x179   :  { %5653 = vmatprep.subr.bf16.mxu0 %v6772_v39  ;;  %5669 = vmatprep.mubr.msk.bf16.mxu0 %vm6773_vm0, %v6772_v39 }
 0x17a   :  { %2502 = vmatmul.mubr.bf16.gmra.mrb[60].mxu1 %v7096_v31  ;;  %v6541_v31 = vld [vmem:[%s8814_s1 + $0x42c] ss:$16 sps:$4 sm:$0xff]   ;;  %5654 = vmatpush3.bf16.msra.mxu0 %v6632_v14  ;;  %v6620_v14 = vld [vmem:[%s8814_s1 + $0x788] ss:$16 sps:$4 sm:$0xff]  }
 0x17b   :  { %2541 = vmatpush1.bf16.msra.mxu1 %v6530_v21  ;;  %2544 = vmatprep.mubr.bf16.mxu1 %v7101_v33  ;;  %v6539_v33 = vld [vmem:[%s8814_s1 + $0x428] ss:$16 sps:$4 sm:$0xff]   ;;  %v6589_v21 = vld [vmem:[%s8814_s1 + $0x62c] ss:$16 sps:$4 sm:$0xff]  }
 0x17c   :  { %2542 = vmatprep.subr.bf16.mxu1 %v6535_v23  ;;  %5655 = vmatprep.subr.bf16.mxu0 %v6772_v39  ;;  %v6634_v23 = vld [vmem:[%s8816_s3 + $0x10] sm:$0xff]  }
 0x17f   :  { %2543 = vmatpush1.bf16.msra.mxu1 %v6533_v25  ;;  %v6587_v25 = vld [vmem:[%s8814_s1 + $0x628] ss:$16 sps:$4 sm:$0xff]  }
 0x180   :  { %2625 = vmatprep.subr.bf16.mxu1 %v6538_v46  ;;  %v6592_v46 = vld [vmem:[%s8814_s1 + $0x64c] ss:$16 sps:$4 sm:$0xff]  }
 0x182   :  { %2545 = vmatmul.mubr.bf16.vlgmr.msra.gmra.mrb[32].mxu1 %v7120_v41  ;;  %v6547_v41 = vld [vmem:[%s8814_s1 + $0x46c] ss:$16 sps:$4 sm:$0xff]  }
 0x183   :  { %2626 = vmatpush1.bf16.msra.mxu1 %v6536_v48  ;;  %2554 = vmatprep.mubr.bf16.mxu1 %v7125_v43  ;;  %v6545_v43 = vld [vmem:[%s8814_s1 + $0x468] ss:$16 sps:$4 sm:$0xff]  }
 0x184   :  { %2627 = vmatprep.subr.bf16.mxu1 %v6541_v31  ;;  %v6635_v48 = vld [vmem:[%s8816_s3 + $0x18] sm:$0xff]  }
 0x185   :  { %v6590_v31 = vld [vmem:[%s8814_s1 + $0x648] ss:$16 sps:$4 sm:$0xff]  }
 0x187   :  { %2628 = vmatpush1.bf16.msra.mxu1 %v6539_v33  ;;  %v6593_v33 = vld [vmem:[%s8814_s1 + $0x668] ss:$16 sps:$4 sm:$0xff]  }
 0x188   :  { %2629 = vmatprep.subr.bf16.mxu1 %v6544_v29  ;;  %v6598_v29 = vld [vmem:[%s8814_s1 + $0x68c] ss:$16 sps:$4 sm:$0xff]  }
 0x18a   :  { %2555 = vmatmul.mubr.bf16.gmra.mrb[36].mxu1 %v7144_v51  ;;  %v6553_v51 = vld [vmem:[%s8814_s1 + $0x4ac] ss:$16 sps:$4 sm:$0xff]  }
 0x18b   :  { %2630 = vmatpush1.bf16.msra.mxu1 %v6542_v35  ;;  %2564 = vmatprep.mubr.bf16.mxu1 %v7149_v53  ;;  %v6551_v53 = vld [vmem:[%s8814_s1 + $0x4a8] ss:$16 sps:$4 sm:$0xff]  }
 0x18c   :  { %2631 = vmatprep.subr.bf16.mxu1 %v6547_v41  ;;  %v6596_v35 = vld [vmem:[%s8814_s1 + $0x688] ss:$16 sps:$4 sm:$0xff]   ;;  %v6601_v41 = vld [vmem:[%s8814_s1 + $0x6ac] ss:$16 sps:$4 sm:$0xff]  }
 0x18f   :  { %2632 = vmatpush1.bf16.msra.mxu1 %v6545_v43 }
 0x190   :  { %2633 = vmatprep.subr.bf16.mxu1 %v6550_v54  ;;  %v6602_v54 = vld [vmem:[%s8814_s1 + $0x6c8] ss:$16 sps:$4 sm:$0xff]  }
 0x192   :  { %2565 = vmatmul.mubr.bf16.gmra.mrb[40].mxu1 %v7168_v61  ;;  %v6559_v61 = vld [vmem:[%s8814_s1 + $0x4ec] ss:$16 sps:$4 sm:$0xff]  }
 0x193   :  { %2634 = vmatpush1.bf16.msra.mxu1 %v6548_v56  ;;  %2574 = vmatprep.mubr.bf16.mxu1 %v7173_v1  ;;  %v6557_v1 = vld [vmem:[%s8814_s1 + $0x4e8] ss:$16 sps:$4 sm:$0xff]  }
 0x194   :  { %2635 = vmatprep.subr.bf16.mxu1 %v6553_v51 }
 0x197   :  { %2636 = vmatpush1.bf16.msra.mxu1 %v6551_v53 }
 0x198   :  { %2637 = vmatprep.subr.bf16.mxu1 %v6556_v45 }
 0x19a   :  { %2575 = vmatmul.mubr.bf16.gmra.mrb[44].mxu1 %v7192_v9  ;;  %v6565_v9 = vld [vmem:[%s8814_s1 + $0x52c] ss:$16 sps:$4 sm:$0xff]  }
 0x19b   :  { %2638 = vmatpush1.bf16.msra.mxu1 %v6554_v15  ;;  %2584 = vmatprep.mubr.bf16.mxu1 %v7197_v11  ;;  %v6563_v11 = vld [vmem:[%s8814_s1 + $0x528] ss:$16 sps:$4 sm:$0xff]  }
 0x19c   :  { %2639 = vmatprep.subr.bf16.mxu1 %v6559_v61  ;;  %v6605_v15 = vld [vmem:[%s8814_s1 + $0x6e8] ss:$16 sps:$4 sm:$0xff]   ;;  %v6610_v61 = vld [vmem:[%s8814_s1 + $0x70c] ss:$16 sps:$4 sm:$0xff]  }
 0x19f   :  { %2640 = vmatpush1.bf16.msra.mxu1 %v6557_v1 }
 0x1a0   :  { %2641 = vmatprep.subr.bf16.mxu1 %v6562_v62  ;;  %v6608_v62 = vld [vmem:[%s8814_s1 + $0x708] ss:$16 sps:$4 sm:$0xff]  }
 0x1a2   :  { %2585 = vmatmul.mubr.bf16.gmra.mrb[48].mxu1 %v7216_v20  ;;  %v6571_v20 = vld [vmem:[%s8814_s1 + $0x56c] ss:$16 sps:$4 sm:$0xff]  }
 0x1a3   :  { %2642 = vmatpush1.bf16.msra.mxu1 %v6560_v0  ;;  %2594 = vmatprep.mubr.bf16.mxu1 %v7221_v22  ;;  %v6569_v22 = vld [vmem:[%s8814_s1 + $0x568] ss:$16 sps:$4 sm:$0xff]  }
 0x1a4   :  { %2643 = vmatprep.subr.bf16.mxu1 %v6565_v9 }
 0x1a7   :  { %2644 = vmatpush1.bf16.msra.mxu1 %v6563_v11 }
 0x1a8   :  { %2645 = vmatprep.subr.bf16.mxu1 %v6568_v50 }
 0x1aa   :  { %2595 = vmatmul.mubr.bf16.gmra.mrb[52].mxu1 %v7240_v30  ;;  %v6577_v30 = vld [vmem:[%s8814_s1 + $0x5ac] ss:$16 sps:$4 sm:$0xff]  }
 0x1ab   :  { %2646 = vmatpush1.bf16.msra.mxu1 %v6566_v10  ;;  %2604 = vmatprep.mubr.bf16.mxu1 %v7245_v34  ;;  %v6575_v34 = vld [vmem:[%s8814_s1 + $0x5a8] ss:$16 sps:$4 sm:$0xff]  }
 0x1ac   :  { %2647 = vmatprep.subr.bf16.mxu1 %v6571_v20  ;;  %v6611_v10 = vld [vmem:[%s8814_s1 + $0x728] ss:$16 sps:$4 sm:$0xff]   ;;  %v6616_v20 = vld [vmem:[%s8814_s1 + $0x74c] ss:$16 sps:$4 sm:$0xff]  }
 0x1af   :  { %2648 = vmatpush1.bf16.msra.mxu1 %v6569_v22 }
 0x1b0   :  { %2649 = vmatprep.subr.bf16.mxu1 %v6574_v6  ;;  %v6614_v6 = vld [vmem:[%s8814_s1 + $0x748] ss:$16 sps:$4 sm:$0xff]  }
 0x1b2   :  { %2605 = vmatmul.mubr.bf16.gmra.mrb[56].mxu1 %v7264_v44  ;;  %v6583_v44 = vld [vmem:[%s8814_s1 + $0x5ec] ss:$16 sps:$4 sm:$0xff]  }
 0x1b3   :  { %2650 = vmatpush1.bf16.msra.mxu1 %v6572_v8  ;;  %2614 = vmatprep.mubr.bf16.mxu1 %v7269_v47  ;;  %v6581_v47 = vld [vmem:[%s8814_s1 + $0x5e8] ss:$16 sps:$4 sm:$0xff]  }
 0x1b4   :  { %2651 = vmatprep.subr.bf16.mxu1 %v6577_v30 }
 0x1b7   :  { %2652 = vmatpush1.bf16.msra.mxu1 %v6575_v34 }
 0x1b8   :  { %2653 = vmatprep.subr.bf16.mxu1 %v6580_v38 }
 0x1ba   :  { %2615 = vmatmul.mubr.bf16.gmra.mrb[60].mxu1 %v7288_v58  ;;  %v6584_v58 = vld [vmem:[%s8814_s1 + $0x608] ss:$16 sps:$4 sm:$0xff]  }
 0x1bb   :  { %2654 = vmatpush1.bf16.msra.mxu1 %v6578_v40  ;;  %2657 = vmatprep.mubr.bf16.mxu1 %v7293_v60  ;;  %v6633_v60 = vld [vmem:[%s8816_s3 + $0x8] sm:$0xff]  }
 0x1bc   :  { %2655 = vmatprep.subr.bf16.mxu1 %v6583_v44  ;;  %5656 = vmatpush3.bf16.msra.mxu0 %v6633_v60  ;;  %v6617_v40 = vld [vmem:[%s8814_s1 + $0x768] ss:$16 sps:$4 sm:$0xff]   ;;  %v6622_v44 = vld [vmem:[%s8814_s1 + $0x78c] ss:$16 sps:$4 sm:$0xff]  }
 0x1bd   :  { %5657 = vmatprep.subr.bf16.mxu0 %v6772_v39 }
 0x1bf   :  { %2656 = vmatpush1.bf16.msra.mxu1 %v6581_v47 }
 0x1c0   :  { %2738 = vmatprep.subr.bf16.mxu1 %v6586_v17  ;;  %5658 = vmatpush3.bf16.msra.mxu0 %v6634_v23  ;;  %v6623_v23 = vld [vmem:[%s8814_s1 + $0x7a8] ss:$16 sps:$4 sm:$0xff]  }
 0x1c1   :  { %5659 = vmatprep.subr.bf16.mxu0 %v6772_v39 }
 0x1c2   :  { %2658 = vmatmul.mubr.bf16.vlgmr.msra.gmra.mrb[32].mxu1 %v7312_v7  ;;  %v6595_v7 = vld [vmem:[%s8814_s1 + $0x66c] ss:$16 sps:$4 sm:$0xff]  }
 0x1c3   :  { %2739 = vmatpush1.bf16.msra.mxu1 %v6584_v58  ;;  %2667 = vmatprep.mubr.bf16.mxu1 %v7317_v12  ;;  %v6636_v12 = vld [vmem:[%s8816_s3 + $0x20] sm:$0xff]  }
 0x1c4   :  { %2740 = vmatprep.subr.bf16.mxu1 %v6589_v21  ;;  %5660 = vmatpush3.bf16.msra.mxu0 %v6635_v48  ;;  %v6626_v48 = vld [vmem:[%s8814_s1 + $0x7c8] ss:$16 sps:$4 sm:$0xff]  }
 0x1c5   :  { %5661 = vmatprep.subr.bf16.mxu0 %v6772_v39 }
 0x1c7   :  { %2741 = vmatpush1.bf16.msra.mxu1 %v6587_v25  ;;  %v6628_v25 = vld [vmem:[%s8814_s1 + $0x7cc] ss:$16 sps:$4 sm:$0xff]  }
 0x1c8   :  { %2742 = vmatprep.subr.bf16.mxu1 %v6592_v46  ;;  %5662 = vmatpush3.bf16.msra.mxu0 %v6636_v12 }
 0x1c9   :  { %5663 = vmatprep.subr.bf16.mxu0 %v6772_v39 }
 0x1ca   :  { %2668 = vmatmul.mubr.bf16.gmra.mrb[36].mxu1 %v7336_v24  ;;  %v6599_v24 = vld [vmem:[%s8814_s1 + $0x6a8] ss:$16 sps:$4 sm:$0xff]  }
 0x1cb   :  { %2743 = vmatpush1.bf16.msra.mxu1 %v6590_v31  ;;  %2677 = vmatprep.mubr.bf16.mxu1 %v7341_v27  ;;  %v6604_v27 = vld [vmem:[%s8814_s1 + $0x6cc] ss:$16 sps:$4 sm:$0xff]  }
 0x1cc   :  { %2744 = vmatprep.subr.bf16.mxu1 %v6595_v7 }
 0x1cf   :  { %2745 = vmatpush1.bf16.msra.mxu1 %v6593_v33 }
 0x1d0   :  { %2746 = vmatprep.subr.bf16.mxu1 %v6598_v29  ;;  %v6629_v29 = vld [vmem:[%s8814_s1 + $0x7e8] ss:$16 sps:$4 sm:$0xff]  }
 0x1d2   :  { %2678 = vmatmul.mubr.bf16.gmra.mrb[40].mxu1 %v7360_v37  ;;  %v6607_v37 = vld [vmem:[%s8814_s1 + $0x6ec] ss:$16 sps:$4 sm:$0xff]  }
 0x1d3   :  { %2747 = vmatpush1.bf16.msra.mxu1 %v6596_v35  ;;  %2687 = vmatprep.mubr.bf16.mxu1 %v7365_v42 }
 0x1d4   :  { %2748 = vmatprep.subr.bf16.mxu1 %v6601_v41 }
 0x1d5   :  { %v7969_v43 = vpop.f32.mrb[0].mxu1 }
 0x1d6   :  { %v7974_v56 = vpop.f32.mrb[1].mxu1 }
 0x1d7   :  { %v2851_v51 = vmax.f32 %v7969_v43, %v7974_v56  ;;  %v7981_v53 = vpop.f32.mrb[2].mxu1  ;;  %2749 = vmatpush1.bf16.msra.mxu1 %v6599_v24  ;;  %v6640_v43 = vld [vmem:[%s8816_s3 + $0x40] sm:$0xff]  }
 0x1d8   :  { %v7983_v42 = vpop.f32.mrb[3].mxu1  ;;  %2750 = vmatprep.subr.bf16.mxu1 %v6604_v27 }
 0x1d9   :  { %v2852_v45 = vmax.f32 %v7981_v53, %v7983_v42 }
 0x1da   :  { %2688 = vmatmul.mubr.bf16.gmra.mrb[44].mxu1 %v7384_v57  ;;  %v6613_v57 = vld [vmem:[%s8814_s1 + $0x72c] ss:$16 sps:$4 sm:$0xff]  }
 0x1db   :  { %2751 = vmatpush1.bf16.msra.mxu1 %v6602_v54  ;;  %2697 = vmatprep.mubr.bf16.mxu1 %v7389_v63 }
 0x1dc   :  { %2752 = vmatprep.subr.bf16.mxu1 %v6607_v37 }
 0x1dd   :  { %v7995_v1 = vpop.f32.mrb[4].mxu1 }
 0x1de   :  { %v8000_v0 = vpop.f32.mrb[5].mxu1 }
 0x1df   :  { %v2853_v9 = vmax.f32 %v7995_v1, %v8000_v0  ;;  %v8007_v11 = vpop.f32.mrb[6].mxu1  ;;  %2753 = vmatpush1.bf16.msra.mxu1 %v6605_v15 }
 0x1e0   :  { %v8009_v63 = vpop.f32.mrb[7].mxu1  ;;  %2754 = vmatprep.subr.bf16.mxu1 %v6610_v61 }
 0x1e1   :  { %v2854_v50 = vmax.f32 %v8007_v11, %v8009_v63 }
 0x1e2   :  { %2698 = vmatmul.mubr.bf16.gmra.mrb[48].mxu1 %v7408_v13  ;;  %v6619_v13 = vld [vmem:[%s8814_s1 + $0x76c] ss:$16 sps:$4 sm:$0xff]  }
 0x1e3   :  { %2755 = vmatpush1.bf16.msra.mxu1 %v6608_v62  ;;  %2707 = vmatprep.mubr.bf16.mxu1 %v7413_v18 }
 0x1e4   :  { %2756 = vmatprep.subr.bf16.mxu1 %v6613_v57 }
 0x1e5   :  { %v8021_v22 = vpop.f32.mrb[8].mxu1 }
 0x1e6   :  { %v8026_v8 = vpop.f32.mrb[9].mxu1 }
 0x1e7   :  { %v2855_v30 = vmax.f32 %v8021_v22, %v8026_v8  ;;  %v8033_v34 = vpop.f32.mrb[10].mxu1  ;;  %2757 = vmatpush1.bf16.msra.mxu1 %v6611_v10 }
 0x1e8   :  { %v8035_v18 = vpop.f32.mrb[11].mxu1  ;;  %2758 = vmatprep.subr.bf16.mxu1 %v6616_v20 }
 0x1e9   :  { %v2856_v38 = vmax.f32 %v8033_v34, %v8035_v18  ;;  %v6644_v34 = vld [vmem:[%s8816_s3 + $0x60] sm:$0xff]  }
 0x1ea   :  { %2708 = vmatmul.mubr.bf16.gmra.mrb[52].mxu1 %v7432_v32  ;;  %v6625_v32 = vld [vmem:[%s8814_s1 + $0x7ac] ss:$16 sps:$4 sm:$0xff]  }
 0x1eb   :  { %2759 = vmatpush1.bf16.msra.mxu1 %v6614_v6  ;;  %2717 = vmatprep.mubr.bf16.mxu1 %v7437_v36 }
 0x1ec   :  { %2760 = vmatprep.subr.bf16.mxu1 %v6619_v13 }
 0x1ed   :  { %v8047_v47 = vpop.f32.mrb[12].mxu1 }
 0x1ee   :  { %v8052_v17 = vpop.f32.mrb[13].mxu1 }
 0x1ef   :  { %v2857_v58 = vmax.f32 %v8047_v47, %v8052_v17  ;;  %v8059_v60 = vpop.f32.mrb[14].mxu1  ;;  %2761 = vmatpush1.bf16.msra.mxu1 %v6617_v40  ;;  %v8836_v40 = vld [vmem:[#allocation2_spill] sm:$0xff] }
 0x1f0   :  { %v8061_v36 = vpop.f32.mrb[15].mxu1  ;;  %2762 = vmatprep.subr.bf16.mxu1 %v6622_v44  ;;  %v8839_v44 = vld [vmem:[#allocation5_spill] sm:$0xff] }
 0x1f1   :  { %v2858_v21 = vmax.f32 %v8059_v60, %v8061_v36  ;;  %v6646_v60 = vld [vmem:[%s8816_s3 + $0x70] sm:$0xff]  }
 0x1f2   :  { %2718 = vmatmul.mubr.bf16.gmra.mrb[56].mxu1 %v7456_v55  ;;  %v6631_v55 = vld [vmem:[%s8814_s1 + $0x7ec] ss:$16 sps:$4 sm:$0xff]  }
 0x1f3   :  { %2763 = vmatpush1.bf16.msra.mxu1 %v6620_v14  ;;  %2727 = vmatprep.mubr.bf16.mxu1 %v7461_v2  ;;  %v8840_v14 = vld [vmem:[#allocation6_spill] sm:$0xff] }
 0x1f4   :  { %2764 = vmatprep.subr.bf16.mxu1 %v6625_v32  ;;  %v8841_v32 = vld [vmem:[#allocation7_spill] sm:$0xff] }
 0x1f5   :  { %v8073_v46 = vpop.f32.mrb[16].mxu1 }
 0x1f6   :  { %v8078_v31 = vpop.f32.mrb[17].mxu1 }
 0x1f7   :  { %v2859_v7 = vmax.f32 %v8073_v46, %v8078_v31  ;;  %v8085_v12 = vpop.f32.mrb[18].mxu1  ;;  %2765 = vmatpush1.bf16.msra.mxu1 %v6623_v23  ;;  %v8842_v23 = vld [vmem:[#allocation8_spill] sm:$0xff] }
 0x1f8   :  { %v8087_v2 = vpop.f32.mrb[19].mxu1  ;;  %2766 = vmatprep.subr.bf16.mxu1 %v6628_v25  ;;  %v6638_v25 = vld [vmem:[%s8816_s3 + $0x30] sm:$0xff]  }
 0x1f9   :  { %v2860_v33 = vmax.f32 %v8085_v12, %v8087_v2  ;;  %v6648_v12 = vld [vmem:[%s8816_s3 + $0x80] sm:$0xff]  }
 0x1fa   :  { %2728 = vmatmul.mubr.bf16.gmra.mrb[60].mxu1 %v7480_v19 }
 0x1fb   :  { %2767 = vmatpush1.bf16.msra.mxu1 %v6626_v48  ;;  %2770 = vmatprep.mubr.bf16.mxu1 %v7485_v26 }
 0x1fc   :  { %2768 = vmatprep.subr.bf16.mxu1 %v6631_v55 }
 0x1fd   :  { %v8096_v35 = vpop.f32.mrb[20].mxu1 }
 0x1fe   :  { %v8098_v41 = vpop.f32.mrb[21].mxu1 }
 0x1ff   :  { %v2861_v24 = vmax.f32 %v8096_v35, %v8098_v41  ;;  %v8102_v27 = vpop.f32.mrb[22].mxu1  ;;  %2769 = vmatpush1.bf16.msra.mxu1 %v6629_v29  ;;  %v8164_v29 = vld [vmem:[%s8817_s2] ss:$0 sm:$0xff] }
 0x200   :  { %v8104_v54 = vpop.f32.mrb[23].mxu1 }
 0x201   :  { %v2862_v37 = vmax.f32 %v8102_v27, %v8104_v54 }
 0x202   :  { %2771 = vmatmul.mubr.bf16.vlgmr.msra.gmra.mrb[32].mxu1 %v7504_v49 }
 0x203   :  { %2780 = vmatprep.mubr.bf16.mxu1 %v7509_v52 }
 0x205   :  { %v8110_v19 = vpop.f32.mrb[24].mxu1 }
 0x206   :  { %v8112_v26 = vpop.f32.mrb[25].mxu1 }
 0x207   :  { %v2863_v15 = vmax.f32 %v8110_v19, %v8112_v26  ;;  %v8116_v61 = vpop.f32.mrb[26].mxu1 }
 0x208   :  { %v8118_v62 = vpop.f32.mrb[27].mxu1 }
 0x209   :  { %v2864_v57 = vmax.f32 %v8116_v61, %v8118_v62  ;;  %v6652_v61 = vld [vmem:[%s8816_s3 + $0xa0] sm:$0xff]  }
 0x20a   :  { %2781 = vmatmul.mubr.bf16.gmra.mrb[36].mxu1 %v7528_v16  ;;  %v8837_v16 = vld [vmem:[#allocation3_spill] sm:$0xff] }
 0x20b   :  { %2790 = vmatprep.mubr.bf16.mxu1 %v7533_v28  ;;  %v8838_v28 = vld [vmem:[#allocation4_spill] sm:$0xff] }
 0x20d   :  { %v8124_v49 = vpop.f32.mrb[28].mxu1 }
 0x20e   :  { %v8126_v52 = vpop.f32.mrb[29].mxu1 }
 0x20f   :  { %v2865_v10 = vmax.f32 %v8124_v49, %v8126_v52  ;;  %v8130_v20 = vpop.f32.mrb[30].mxu1 }
 0x210   :  { %v8132_v6 = vpop.f32.mrb[31].mxu1 }
 0x212   :  { %2791 = vmatmul.mubr.bf16.gmra.mrb[40].mxu1 %v7552_v59  ;;  %v6637_v59 = vld [vmem:[%s8816_s3 + $0x28] sm:$0xff]  }
 0x213   :  { %2800 = vmatprep.mubr.bf16.mxu1 %v8836_v40  ;;  %5664 = vmatpush3.bf16.msra.mxu0 %v6637_v59 }
 0x214   :  { %5665 = vmatprep.subr.bf16.mxu0 %v6772_v39 }
 0x217   :  { %5666 = vmatpush3.bf16.msra.mxu0 %v6638_v25 }
 0x218   :  { %5667 = vmatprep.subr.bf16.mxu0 %v6772_v39 }
 0x21a   :  { %2801 = vmatmul.mubr.bf16.gmra.mrb[44].mxu1 %v8837_v16 }
 0x21b   :  { %2810 = vmatprep.mubr.bf16.mxu1 %v8838_v28 }
 0x222   :  { %2811 = vmatmul.mubr.bf16.gmra.mrb[48].mxu1 %v8839_v44 }
 0x223   :  { %2820 = vmatprep.mubr.bf16.mxu1 %v8840_v14 }
 0x22a   :  { %2821 = vmatmul.mubr.bf16.gmra.mrb[52].mxu1 %v8841_v32 }
 0x22b   :  { %2830 = vmatprep.mubr.bf16.mxu1 %v8842_v23 }
 0x232   :  { %2831 = vmatmul.mubr.bf16.gmra.mrb[56].mxu1 %v7648_v4  ;;  %v6639_v4 = vld [vmem:[%s8816_s3 + $0x38] sm:$0xff]  }
 0x233   :  { %2840 = vmatprep.mubr.bf16.mxu1 %v7653_v3  ;;  %5668 = vmatpush3.bf16.msra.mxu0 %v6639_v4 }
 0x234   :  { %5673 = vmatprep.subr.bf16.mxu0 %v6772_v39 }
 0x23a   :  { %2841 = vmatmul.mubr.bf16.gmra.mrb[60].mxu1 %v7666_v5 }
 0x2d5   :  { %v2772_v3 = vpop.f32.mrb[32].mxu1 }
 0x2d6   :  { %v2774_v5 = vpop.f32.mrb[33].mxu1 }
 0x2d7   :  { %v2867_v48 = vmax.f32 %v2772_v3, %v2774_v5  ;;  %v2776_v55 = vpop.f32.mrb[34].mxu1 }
 0x2d8   :  { %v2778_v40 = vpop.f32.mrb[35].mxu1 }
 0x2d9   :  { %v2883_v16 = vmax.f32 %v2851_v51, %v2867_v48  ;;  %v2868_v28 = vmax.f32 %v2776_v55, %v2778_v40  ;;  %v6641_v48 = vld [vmem:[%s8816_s3 + $0x48] sm:$0xff]   ;;  %v6642_v40 = vld [vmem:[%s8816_s3 + $0x50] sm:$0xff]  }
 0x2db   :  { %v2906_v44 = vadd.f32 %v8164_v29, %v2883_v16  ;;  %v2884_v14 = vmax.f32 %v2852_v45, %v2868_v28 }
 0x2dd   :  { %v2907_v32 = vadd.f32 %v8164_v29, %v2884_v14  ;;  %v2782_v23 = vpop.f32.mrb[36].mxu1  ;;  %v2922_v25 = vmax.f32 %v2906_v44, 0.0 }
 0x2de   :  { %v2784_v59 = vpop.f32.mrb[37].mxu1 }
 0x2df   :  { %v2923_v4 = vmax.f32 %v2907_v32, 0.0  ;;  %v2869_v3 = vmax.f32 %v2782_v23, %v2784_v59  ;;  %v2786_v5 = vpop.f32.mrb[38].mxu1  ;;  %v6643_v23 = vld [vmem:[%s8816_s3 + $0x58] sm:$0xff]  }
 0x2e0   :  { %v2788_v13 = vpop.f32.mrb[39].mxu1 }
 0x2e1   :  { %v2885_v56 = vmax.f32 %v2853_v9, %v2869_v3  ;;  %v2870_v51 = vmax.f32 %v2786_v5, %v2788_v13  ;;  %v8180_v53 = vpack.c.bf16 %v2923_v4, %v2922_v25 }
 0x2e3   :  { %v2908_v42 = vadd.f32 %v8164_v29, %v2885_v56  ;;  %v2886_v45 = vmax.f32 %v2854_v50, %v2870_v51  ;;  %5670 = vmatmul.mubr.bf16.vlgmr.msra.gmra.mrb[0].mxu0 %v8180_v53  ;;  %v3077_v2 = vrot.slane %v8180_v53, 4  ;;  %v6649_v53 = vld [vmem:[%s8816_s3 + $0x88] sm:$0xff]  }
 0x2e4   :  { %5674 = vmatpush3.bf16.msra.mxu0 %v6640_v43  ;;  %5689 = vmatprep.mubr.msk.bf16.mxu0 %vm6773_vm0, %v6772_v39 }
 0x2e5   :  { %v2909_v1 = vadd.f32 %v8164_v29, %v2886_v45  ;;  %v2792_v0 = vpop.f32.mrb[40].mxu1  ;;  %5675 = vmatprep.subr.bf16.mxu0 %v6772_v39  ;;  %v2924_v13 = vmax.f32 %v2908_v42, 0.0  ;;  %v6645_v42 = vld [vmem:[%s8816_s3 + $0x68] sm:$0xff]  }
 0x2e6   :  { %v2794_v9 = vpop.f32.mrb[41].mxu1 }
 0x2e7   :  { %v2925_v55 = vmax.f32 %v2909_v1, 0.0  ;;  %v2871_v11 = vmax.f32 %v2792_v0, %v2794_v9  ;;  %v2796_v63 = vpop.f32.mrb[42].mxu1 }
 0x2e8   :  { %5676 = vmatpush3.bf16.msra.mxu0 %v6641_v48  ;;  %v2798_v50 = vpop.f32.mrb[43].mxu1 }
 0x2e9   :  { %v8197_v16 = vpack.c.bf16 %v2925_v55, %v2924_v13  ;;  %v2887_v28 = vmax.f32 %v2855_v30, %v2871_v11  ;;  %v2872_v44 = vmax.f32 %v2796_v63, %v2798_v50  ;;  %5677 = vmatprep.subr.bf16.mxu0 %v6772_v39  ;;  %v6647_v63 = vld [vmem:[%s8816_s3 + $0x78] sm:$0xff]  }
 0x2eb   :  { %v2910_v14 = vadd.f32 %v8164_v29, %v2887_v28  ;;  %v2888_v32 = vmax.f32 %v2856_v38, %v2872_v44 }
 0x2ec   :  { %5678 = vmatpush3.bf16.msra.mxu0 %v6642_v40 }
 0x2ed   :  { %v2911_v59 = vadd.f32 %v8164_v29, %v2888_v32  ;;  %v2802_v25 = vpop.f32.mrb[44].mxu1  ;;  %5679 = vmatprep.subr.bf16.mxu0 %v6772_v39  ;;  %v2926_v8 = vmax.f32 %v2910_v14, 0.0 }
 0x2ee   :  { %v2804_v22 = vpop.f32.mrb[45].mxu1 }
 0x2ef   :  { %v2927_v30 = vmax.f32 %v2911_v59, 0.0  ;;  %v2873_v4 = vmax.f32 %v2802_v25, %v2804_v22  ;;  %v2806_v3 = vpop.f32.mrb[46].mxu1 }
 0x2f0   :  { %5680 = vmatpush3.bf16.msra.mxu0 %v6643_v23  ;;  %v2808_v5 = vpop.f32.mrb[47].mxu1 }
 0x2f1   :  { %v8215_v18 = vpack.c.bf16 %v2927_v30, %v2926_v8  ;;  %v2889_v38 = vmax.f32 %v2857_v58, %v2873_v4  ;;  %v2874_v43 = vmax.f32 %v2806_v3, %v2808_v5  ;;  %5681 = vmatprep.subr.bf16.mxu0 %v6772_v39 }
 0x2f3   :  { %v2912_v56 = vadd.f32 %v8164_v29, %v2889_v38  ;;  %v2890_v51 = vmax.f32 %v2858_v21, %v2874_v43  ;;  %v6651_v43 = vld [vmem:[%s8816_s3 + $0x98] sm:$0xff]  }
 0x2f4   :  { %5682 = vmatpush3.bf16.msra.mxu0 %v6644_v34 }
 0x2f5   :  { %v2913_v45 = vadd.f32 %v8164_v29, %v2890_v51  ;;  %v2812_v48 = vpop.f32.mrb[48].mxu1  ;;  %5683 = vmatprep.subr.bf16.mxu0 %v6772_v39  ;;  %v2928_v17 = vmax.f32 %v2912_v56, 0.0 }
 0x2f6   :  { %v2814_v47 = vpop.f32.mrb[49].mxu1 }
 0x2f7   :  { %v2929_v58 = vmax.f32 %v2913_v45, 0.0  ;;  %v2875_v1 = vmax.f32 %v2812_v48, %v2814_v47  ;;  %v2816_v0 = vpop.f32.mrb[50].mxu1 }
 0x2f8   :  { %5684 = vmatpush3.bf16.msra.mxu0 %v6645_v42  ;;  %v2818_v9 = vpop.f32.mrb[51].mxu1 }
 0x2f9   :  { %v8233_v36 = vpack.c.bf16 %v2929_v58, %v2928_v17  ;;  %v2891_v21 = vmax.f32 %v2859_v7, %v2875_v1  ;;  %v2876_v13 = vmax.f32 %v2816_v0, %v2818_v9  ;;  %5685 = vmatprep.subr.bf16.mxu0 %v6772_v39  ;;  %v8843_v58 = vmax.f32 %v8130_v20, %v8132_v6  ;;  %v6653_v0 = vld [vmem:[%s8816_s3 + $0xa8] sm:$0xff]   ;;  %v6655_v20 = vld [vmem:[%s8816_s3 + $0xb8] sm:$0xff]   ;;  %v6656_v6 = vld [vmem:[%s8816_s3 + $0xc0] sm:$0xff]  }
 0x2fb   :  { %v2914_v55 = vadd.f32 %v8164_v29, %v2891_v21  ;;  %v2892_v11 = vmax.f32 %v2860_v33, %v2876_v13  ;;  %v6658_v21 = vld [vmem:[%s8816_s3 + $0xd0] sm:$0xff]   ;;  %v6659_v13 = vld [vmem:[%s8816_s3 + $0xd8] sm:$0xff]  }
 0x2fc   :  { %5686 = vmatpush3.bf16.msra.mxu0 %v6646_v60 }
 0x2fd   :  { %v2915_v50 = vadd.f32 %v8164_v29, %v2892_v11  ;;  %v2822_v40 = vpop.f32.mrb[52].mxu1  ;;  %5687 = vmatprep.subr.bf16.mxu0 %v6772_v39  ;;  %v2930_v31 = vmax.f32 %v2914_v55, 0.0  ;;  %v6660_v55 = vld [vmem:[%s8816_s3 + $0xe0] sm:$0xff]   ;;  %v6661_v11 = vld [vmem:[%s8816_s3 + $0xe8] sm:$0xff]  }
 0x2fe   :  { %v2824_v46 = vpop.f32.mrb[53].mxu1 }
 0x2ff   :  { %v2931_v7 = vmax.f32 %v2915_v50, 0.0  ;;  %v2877_v28 = vmax.f32 %v2822_v40, %v2824_v46  ;;  %v2826_v44 = vpop.f32.mrb[54].mxu1  ;;  %v6663_v50 = vld [vmem:[%s8816_s3 + $0xf8] sm:$0xff]   ;;  %v6664_v40 = vld [vmem:[%s8816_s3 + $0x100] sm:$0xff]   ;;  %v3292_v46 = vrot.slane %v8197_v16, 4 }
 0x300   :  { %5688 = vmatpush3.bf16.msra.mxu0 %v6647_v63  ;;  %v2828_v14 = vpop.f32.mrb[55].mxu1  ;;  %v6662_v63 = vld [vmem:[%s8816_s3 + $0xf0] sm:$0xff]  }
 0x301   :  { %v8252_v33 = vpack.c.bf16 %v2931_v7, %v2930_v31  ;;  %v2893_v32 = vmax.f32 %v2861_v24, %v2877_v28  ;;  %v2878_v23 = vmax.f32 %v2826_v44, %v2828_v14  ;;  %5693 = vmatprep.subr.bf16.mxu0 %v6772_v39  ;;  %v6665_v31 = vld [vmem:[%s8816_s3 + $0x108] sm:$0xff]   ;;  %v6666_v7 = vld [vmem:[%s8816_s3 + $0x110] sm:$0xff]   ;;  %v6668_v28 = vld [vmem:[%s8816_s3 + $0x120] sm:$0xff]  }
 0x302   :  { %v6669_v44 = vld [vmem:[%s8816_s3 + $0x128] sm:$0xff]   ;;  %v6670_v14 = vld [vmem:[%s8816_s3 + $0x130] sm:$0xff]  }
 0x303   :  { %v2916_v59 = vadd.f32 %v8164_v29, %v2893_v32  ;;  %v2894_v25 = vmax.f32 %v2862_v37, %v2878_v23  ;;  %5690 = vmatmul.mubr.bf16.vlgmr.msra.gmra.mrb[0].mxu0 %v3077_v2  ;;  %v6650_v37 = vld [vmem:[%s8816_s3 + $0x90] sm:$0xff]   ;;  %v6672_v2 = vld [vmem:[%s8816_s3 + $0x140] sm:$0xff]   ;;  %v6673_v32 = vld [vmem:[%s8816_s3 + $0x148] sm:$0xff]  }
 0x304   :  { %5694 = vmatpush3.bf16.msra.mxu0 %v6648_v12  ;;  %5709 = vmatprep.mubr.msk.bf16.mxu0 %vm6773_vm0, %v6772_v39  ;;  %v6671_v12 = vld [vmem:[%s8816_s3 + $0x138] sm:$0xff]   ;;  %v6674_v23 = vld [vmem:[%s8816_s3 + $0x150] sm:$0xff]  }
 0x305   :  { %v2917_v35 = vadd.f32 %v8164_v29, %v2894_v25  ;;  %v2832_v41 = vpop.f32.mrb[56].mxu1  ;;  %5695 = vmatprep.subr.bf16.mxu0 %v6772_v39  ;;  %v2932_v22 = vmax.f32 %v2916_v59, 0.0  ;;  %v6675_v59 = vld [vmem:[%s8816_s3 + $0x158] sm:$0xff]   ;;  %v6676_v25 = vld [vmem:[%s8816_s3 + $0x160] sm:$0xff]  }
 0x306   :  { %v2834_v24 = vpop.f32.mrb[57].mxu1 }
 0x307   :  { %v2933_v8 = vmax.f32 %v2917_v35, 0.0  ;;  %v2879_v30 = vmax.f32 %v2832_v41, %v2834_v24  ;;  %v2836_v27 = vpop.f32.mrb[58].mxu1  ;;  %v6678_v35 = vld [vmem:[%s8816_s3 + $0x170] sm:$0xff]   ;;  %v6679_v41 = vld [vmem:[%s8816_s3 + $0x178] sm:$0xff]   ;;  %v6680_v24 = vld [vmem:[%s8816_s3 + $0x180] sm:$0xff]  }
 0x308   :  { %5696 = vmatpush3.bf16.msra.mxu0 %v6649_v53  ;;  %v2838_v54 = vpop.f32.mrb[59].mxu1  ;;  %v6677_v53 = vld [vmem:[%s8816_s3 + $0x168] sm:$0xff]  }
 0x309   :  { %v8272_v4 = vpack.c.bf16 %v2933_v8, %v2932_v22  ;;  %v2895_v3 = vmax.f32 %v2863_v15, %v2879_v30  ;;  %v2880_v5 = vmax.f32 %v2836_v27, %v2838_v54  ;;  %5697 = vmatprep.subr.bf16.mxu0 %v6772_v39  ;;  %v3507_v22 = vrot.slane %v8215_v18, 4  ;;  %v6681_v8 = vld [vmem:[%s8816_s3 + $0x188] sm:$0xff]   ;;  %v6682_v30 = vld [vmem:[%s8816_s3 + $0x190] sm:$0xff]   ;;  %v6684_v27 = vld [vmem:[%s8816_s3 + $0x1a0] sm:$0xff]  }
 0x30a   :  { %v6685_v54 = vld [vmem:[%s8816_s3 + $0x1a8] sm:$0xff]  }
 0x30b   :  { %v2918_v34 = vadd.f32 %v8164_v29, %v2895_v3  ;;  %v2896_v38 = vmax.f32 %v2864_v57, %v2880_v5  ;;  %v6687_v3 = vld [vmem:[%s8816_s3 + $0x1b8] sm:$0xff]   ;;  %v6688_v5 = vld [vmem:[%s8816_s3 + $0x1c0] sm:$0xff]  }
 0x30c   :  { %5698 = vmatpush3.bf16.msra.mxu0 %v6650_v37  ;;  %v6686_v37 = vld [vmem:[%s8816_s3 + $0x1b0] sm:$0xff]  }
 0x30d   :  { %v2919_v56 = vadd.f32 %v8164_v29, %v2896_v38  ;;  %v2842_v51 = vpop.f32.mrb[60].mxu1  ;;  %5699 = vmatprep.subr.bf16.mxu0 %v6772_v39  ;;  %v2934_v26 = vmax.f32 %v2918_v34, 0.0  ;;  %v6689_v34 = vld [vmem:[%s8816_s3 + $0x1c8] sm:$0xff]   ;;  %v6690_v38 = vld [vmem:[%s8816_s3 + $0x1d0] sm:$0xff]  }
 0x30e   :  { %v2844_v19 = vpop.f32.mrb[61].mxu1 }
 0x30f   :  { %v2935_v15 = vmax.f32 %v2919_v56, 0.0  ;;  %v2881_v42 = vmax.f32 %v2842_v51, %v2844_v19  ;;  %v2846_v45 = vpop.f32.mrb[62].mxu1  ;;  %v6692_v56 = vld [vmem:[%s8816_s3 + $0x1e0] sm:$0xff]   ;;  %v6693_v51 = vld [vmem:[%s8816_s3 + $0x1e8] sm:$0xff]   ;;  %v6694_v19 = vld [vmem:[%s8816_s3 + $0x1f0] sm:$0xff]  }
 0x310   :  { %5700 = vmatpush3.bf16.msra.mxu0 %v6651_v43  ;;  %v2848_v48 = vpop.f32.mrb[63].mxu1  ;;  %v6691_v43 = vld [vmem:[%s8816_s3 + $0x1d8] sm:$0xff]  }
 0x311   :  { %v8290_v62 = vpack.c.bf16 %v2935_v15, %v2934_v26  ;;  %v2897_v57 = vmax.f32 %v2865_v10, %v2881_v42  ;;  %v2882_v47 = vmax.f32 %v2846_v45, %v2848_v48  ;;  %5701 = vmatprep.subr.bf16.mxu0 %v6772_v39  ;;  %v6654_v10 = vld [vmem:[%s8816_s3 + $0xb0] sm:$0xff]   ;;  %v6695_v26 = vld [vmem:[%s8816_s3 + $0x1f8] sm:$0xff]   ;;  %v6696_v15 = vld [vmem:[%s8816_s3 + $0x200] sm:$0xff]   ;;  %v3722_v42 = vrot.slane %v8233_v36, 4 }
 0x312   :  { %v6697_v45 = vld [vmem:[%s8816_s3 + $0x208] sm:$0xff]   ;;  %v6698_v48 = vld [vmem:[%s8816_s3 + $0x210] sm:$0xff]  }
 0x313   :  { %v2920_v17 = vadd.f32 %v8164_v29, %v2897_v57  ;;  %v2898_v1 = vmax.f32 %v8843_v58, %v2882_v47  ;;  %v6701_v57 = vld [vmem:[%s8816_s3 + $0x228] sm:$0xff]   ;;  %v6702_v47 = vld [vmem:[%s8816_s3 + $0x230] sm:$0xff]   ;;  %v6704_v58 = vld [vmem:[%s8816_s3 + $0x240] sm:$0xff]  }
 0x314   :  { %5702 = vmatpush3.bf16.msra.mxu0 %v6652_v61  ;;  %v6700_v61 = vld [vmem:[%s8816_s3 + $0x220] sm:$0xff]  }
 0x315   :  { %v2921_v9 = vadd.f32 %v8164_v29, %v2898_v1  ;;  %5703 = vmatprep.subr.bf16.mxu0 %v6772_v39  ;;  %v2936_v49 = vmax.f32 %v2920_v17, 0.0  ;;  %v6657_v29 = vld [vmem:[%s8816_s3 + $0xc8] sm:$0xff]   ;;  %v6703_v17 = vld [vmem:[%s8816_s3 + $0x238] sm:$0xff]  }
 0x316   :  { %v6705_v1 = vld [vmem:[%s8816_s3 + $0x248] sm:$0xff]  }
 0x317   :  { %v2937_v52 = vmax.f32 %v2921_v9, 0.0  ;;  %v6707_v9 = vld [vmem:[%s8816_s3 + $0x258] sm:$0xff]  }
 0x318   :  { %5704 = vmatpush3.bf16.msra.mxu0 %v6653_v0  ;;  %v6706_v0 = vld [vmem:[%s8816_s3 + $0x250] sm:$0xff]  }
 0x319   :  { %v8308_v60 = vpack.c.bf16 %v2937_v52, %v2936_v49  ;;  %5705 = vmatprep.subr.bf16.mxu0 %v6772_v39  ;;  %v6708_v49 = vld [vmem:[%s8816_s3 + $0x260] sm:$0xff]   ;;  %v6709_v52 = vld [vmem:[%s8816_s3 + $0x268] sm:$0xff]  }
 0x31c   :  { %5706 = vmatpush3.bf16.msra.mxu0 %v6654_v10  ;;  %v6710_v10 = vld [vmem:[%s8816_s3 + $0x270] sm:$0xff]  }
 0x31d   :  { %5707 = vmatprep.subr.bf16.mxu0 %v6772_v39 }
 0x320   :  { %5708 = vmatpush3.bf16.msra.mxu0 %v6655_v20  ;;  %v6711_v20 = vld [vmem:[%s8816_s3 + $0x278] sm:$0xff]  }
 0x321   :  { %5713 = vmatprep.subr.bf16.mxu0 %v6772_v39 }
 0x323   :  { %5710 = vmatmul.mubr.bf16.vlgmr.msra.gmra.mrb[0].mxu0 %v8197_v16  ;;  %v6667_v16 = vld [vmem:[%s8816_s3 + $0x118] sm:$0xff]  }
 0x324   :  { %5714 = vmatpush3.bf16.msra.mxu0 %v6656_v6  ;;  %5729 = vmatprep.mubr.msk.bf16.mxu0 %vm6773_vm0, %v6772_v39  ;;  %v6712_v6 = vld [vmem:[%s8816_s3 + $0x280] sm:$0xff]  }
 0x325   :  { %5715 = vmatprep.subr.bf16.mxu0 %v6772_v39 }
 0x328   :  { %5716 = vmatpush3.bf16.msra.mxu0 %v6657_v29  ;;  %v3937_v29 = vrot.slane %v8252_v33, 4 }
 0x329   :  { %5717 = vmatprep.subr.bf16.mxu0 %v6772_v39 }
 0x32c   :  { %5718 = vmatpush3.bf16.msra.mxu0 %v6658_v21  ;;  %v6713_v21 = vld [vmem:[%s8816_s3 + $0x288] sm:$0xff]  }
 0x32d   :  { %5719 = vmatprep.subr.bf16.mxu0 %v6772_v39 }
 0x330   :  { %5720 = vmatpush3.bf16.msra.mxu0 %v6659_v13  ;;  %v6714_v13 = vld [vmem:[%s8816_s3 + $0x290] sm:$0xff]  }
 0x331   :  { %5721 = vmatprep.subr.bf16.mxu0 %v6772_v39 }
 0x334   :  { %5722 = vmatpush3.bf16.msra.mxu0 %v6660_v55  ;;  %v6716_v55 = vld [vmem:[%s8816_s3 + $0x2a0] sm:$0xff]  }
 0x335   :  { %5723 = vmatprep.subr.bf16.mxu0 %v6772_v39 }
 0x338   :  { %5724 = vmatpush3.bf16.msra.mxu0 %v6661_v11  ;;  %v6717_v11 = vld [vmem:[%s8816_s3 + $0x2a8] sm:$0xff]  }
 0x339   :  { %5725 = vmatprep.subr.bf16.mxu0 %v6772_v39 }
 0x33c   :  { %5726 = vmatpush3.bf16.msra.mxu0 %v6662_v63  ;;  %v6718_v63 = vld [vmem:[%s8816_s3 + $0x2b0] sm:$0xff]  }
 0x33d   :  { %5727 = vmatprep.subr.bf16.mxu0 %v6772_v39 }
 0x340   :  { %5728 = vmatpush3.bf16.msra.mxu0 %v6663_v50  ;;  %v6719_v50 = vld [vmem:[%s8816_s3 + $0x2b8] sm:$0xff]  }
 0x341   :  { %5733 = vmatprep.subr.bf16.mxu0 %v6772_v39 }
 0x343   :  { %5730 = vmatmul.mubr.bf16.vlgmr.msra.gmra.mrb[0].mxu0 %v3292_v46  ;;  %v6721_v46 = vld [vmem:[%s8816_s3 + $0x2c8] sm:$0xff]  }
 0x344   :  { %5734 = vmatpush3.bf16.msra.mxu0 %v6664_v40  ;;  %5749 = vmatprep.mubr.msk.bf16.mxu0 %vm6773_vm0, %v6772_v39  ;;  %v6720_v40 = vld [vmem:[%s8816_s3 + $0x2c0] sm:$0xff]  }
 0x345   :  { %5735 = vmatprep.subr.bf16.mxu0 %v6772_v39 }
 0x348   :  { %5736 = vmatpush3.bf16.msra.mxu0 %v6665_v31  ;;  %v6722_v31 = vld [vmem:[%s8816_s3 + $0x2d0] sm:$0xff]  }
 0x349   :  { %5737 = vmatprep.subr.bf16.mxu0 %v6772_v39 }
 0x34c   :  { %5738 = vmatpush3.bf16.msra.mxu0 %v6666_v7  ;;  %v6723_v7 = vld [vmem:[%s8816_s3 + $0x2d8] sm:$0xff]  }
 0x34d   :  { %5739 = vmatprep.subr.bf16.mxu0 %v6772_v39 }
 0x350   :  { %5740 = vmatpush3.bf16.msra.mxu0 %v6667_v16  ;;  %v6724_v16 = vld [vmem:[%s8816_s3 + $0x2e0] sm:$0xff]  }
 0x351   :  { %5741 = vmatprep.subr.bf16.mxu0 %v6772_v39 }
 0x354   :  { %5742 = vmatpush3.bf16.msra.mxu0 %v6668_v28  ;;  %v6725_v28 = vld [vmem:[%s8816_s3 + $0x2e8] sm:$0xff]  }
 0x355   :  { %5743 = vmatprep.subr.bf16.mxu0 %v6772_v39 }
 0x358   :  { %5744 = vmatpush3.bf16.msra.mxu0 %v6669_v44  ;;  %v6726_v44 = vld [vmem:[%s8816_s3 + $0x2f0] sm:$0xff]  }
 0x359   :  { %5745 = vmatprep.subr.bf16.mxu0 %v6772_v39 }
 0x35c   :  { %5746 = vmatpush3.bf16.msra.mxu0 %v6670_v14  ;;  %v6727_v14 = vld [vmem:[%s8816_s3 + $0x2f8] sm:$0xff]  }
 0x35d   :  { %5747 = vmatprep.subr.bf16.mxu0 %v6772_v39 }
 0x360   :  { %5748 = vmatpush3.bf16.msra.mxu0 %v6671_v12  ;;  %v6728_v12 = vld [vmem:[%s8816_s3 + $0x300] sm:$0xff]  }
 0x361   :  { %5753 = vmatprep.subr.bf16.mxu0 %v6772_v39 }
 0x363   :  { %5750 = vmatmul.mubr.bf16.vlgmr.msra.gmra.mrb[0].mxu0 %v8215_v18  ;;  %v6683_v18 = vld [vmem:[%s8816_s3 + $0x198] sm:$0xff]  }
 0x364   :  { %5754 = vmatpush3.bf16.msra.mxu0 %v6672_v2  ;;  %5769 = vmatprep.mubr.msk.bf16.mxu0 %vm6773_vm0, %v6772_v39  ;;  %v4152_v2 = vrot.slane %v8272_v4, 4 }
 0x365   :  { %5755 = vmatprep.subr.bf16.mxu0 %v6772_v39 }
 0x368   :  { %5756 = vmatpush3.bf16.msra.mxu0 %v6673_v32  ;;  %v6729_v32 = vld [vmem:[%s8816_s3 + $0x308] sm:$0xff]  }
 0x369   :  { %5757 = vmatprep.subr.bf16.mxu0 %v6772_v39 }
 0x36c   :  { %5758 = vmatpush3.bf16.msra.mxu0 %v6674_v23  ;;  %v6730_v23 = vld [vmem:[%s8816_s3 + $0x310] sm:$0xff]  }
 0x36d   :  { %5759 = vmatprep.subr.bf16.mxu0 %v6772_v39 }
 0x370   :  { %5760 = vmatpush3.bf16.msra.mxu0 %v6675_v59  ;;  %v6732_v59 = vld [vmem:[%s8816_s3 + $0x320] sm:$0xff]  }
 0x371   :  { %5761 = vmatprep.subr.bf16.mxu0 %v6772_v39 }
 0x374   :  { %5762 = vmatpush3.bf16.msra.mxu0 %v6676_v25  ;;  %v6733_v25 = vld [vmem:[%s8816_s3 + $0x328] sm:$0xff]  }
 0x375   :  { %5763 = vmatprep.subr.bf16.mxu0 %v6772_v39 }
 0x378   :  { %5764 = vmatpush3.bf16.msra.mxu0 %v6677_v53  ;;  %v6734_v53 = vld [vmem:[%s8816_s3 + $0x330] sm:$0xff]  }
 0x379   :  { %5765 = vmatprep.subr.bf16.mxu0 %v6772_v39 }
 0x37c   :  { %5766 = vmatpush3.bf16.msra.mxu0 %v6678_v35  ;;  %v6735_v35 = vld [vmem:[%s8816_s3 + $0x338] sm:$0xff]  }
 0x37d   :  { %5767 = vmatprep.subr.bf16.mxu0 %v6772_v39 }
 0x380   :  { %5768 = vmatpush3.bf16.msra.mxu0 %v6679_v41  ;;  %v6736_v41 = vld [vmem:[%s8816_s3 + $0x340] sm:$0xff]  }
 0x381   :  { %5773 = vmatprep.subr.bf16.mxu0 %v6772_v39 }
 0x383   :  { %5770 = vmatmul.mubr.bf16.vlgmr.msra.gmra.mrb[0].mxu0 %v3507_v22  ;;  %v6738_v22 = vld [vmem:[%s8816_s3 + $0x350] sm:$0xff]  }
 0x384   :  { %5774 = vmatpush3.bf16.msra.mxu0 %v6680_v24  ;;  %5789 = vmatprep.mubr.msk.bf16.mxu0 %vm6773_vm0, %v6772_v39  ;;  %v6737_v24 = vld [vmem:[%s8816_s3 + $0x348] sm:$0xff]  }
 0x385   :  { %5775 = vmatprep.subr.bf16.mxu0 %v6772_v39 }
 0x388   :  { %5776 = vmatpush3.bf16.msra.mxu0 %v6681_v8  ;;  %v6739_v8 = vld [vmem:[%s8816_s3 + $0x358] sm:$0xff]  }
 0x389   :  { %5777 = vmatprep.subr.bf16.mxu0 %v6772_v39 }
 0x38c   :  { %5778 = vmatpush3.bf16.msra.mxu0 %v6682_v30  ;;  %v6740_v30 = vld [vmem:[%s8816_s3 + $0x360] sm:$0xff]  }
 0x38d   :  { %5779 = vmatprep.subr.bf16.mxu0 %v6772_v39 }
 0x390   :  { %5780 = vmatpush3.bf16.msra.mxu0 %v6683_v18  ;;  %v6741_v18 = vld [vmem:[%s8816_s3 + $0x368] sm:$0xff]  }
 0x391   :  { %5781 = vmatprep.subr.bf16.mxu0 %v6772_v39 }
 0x394   :  { %5782 = vmatpush3.bf16.msra.mxu0 %v6684_v27  ;;  %v6742_v27 = vld [vmem:[%s8816_s3 + $0x370] sm:$0xff]  }
 0x395   :  { %5783 = vmatprep.subr.bf16.mxu0 %v6772_v39 }
 0x398   :  { %5784 = vmatpush3.bf16.msra.mxu0 %v6685_v54  ;;  %v6743_v54 = vld [vmem:[%s8816_s3 + $0x378] sm:$0xff]  }
 0x399   :  { %5785 = vmatprep.subr.bf16.mxu0 %v6772_v39 }
 0x39c   :  { %5786 = vmatpush3.bf16.msra.mxu0 %v6686_v37  ;;  %v6744_v37 = vld [vmem:[%s8816_s3 + $0x380] sm:$0xff]  }
 0x39d   :  { %5787 = vmatprep.subr.bf16.mxu0 %v6772_v39 }
 0x3a0   :  { %5788 = vmatpush3.bf16.msra.mxu0 %v6687_v3  ;;  %v4367_v3 = vrot.slane %v8290_v62, 4 }
 0x3a1   :  { %5793 = vmatprep.subr.bf16.mxu0 %v6772_v39 }
 0x3a3   :  { %5790 = vmatmul.mubr.bf16.vlgmr.msra.gmra.mrb[0].mxu0 %v8233_v36  ;;  %v6699_v36 = vld [vmem:[%s8816_s3 + $0x218] sm:$0xff]  }
 0x3a4   :  { %5794 = vmatpush3.bf16.msra.mxu0 %v6688_v5  ;;  %5809 = vmatprep.mubr.msk.bf16.mxu0 %vm6773_vm0, %v6772_v39  ;;  %v6745_v5 = vld [vmem:[%s8816_s3 + $0x388] sm:$0xff]  }
 0x3a5   :  { %5795 = vmatprep.subr.bf16.mxu0 %v6772_v39 }
 0x3a8   :  { %5796 = vmatpush3.bf16.msra.mxu0 %v6689_v34  ;;  %v6746_v34 = vld [vmem:[%s8816_s3 + $0x390] sm:$0xff]  }
 0x3a9   :  { %5797 = vmatprep.subr.bf16.mxu0 %v6772_v39 }
 0x3ac   :  { %5798 = vmatpush3.bf16.msra.mxu0 %v6690_v38  ;;  %v6748_v38 = vld [vmem:[%s8816_s3 + $0x3a0] sm:$0xff]  }
 0x3ad   :  { %5799 = vmatprep.subr.bf16.mxu0 %v6772_v39 }
 0x3b0   :  { %5800 = vmatpush3.bf16.msra.mxu0 %v6691_v43  ;;  %v6749_v43 = vld [vmem:[%s8816_s3 + $0x3a8] sm:$0xff]  }
 0x3b1   :  { %5801 = vmatprep.subr.bf16.mxu0 %v6772_v39 }
 0x3b4   :  { %5802 = vmatpush3.bf16.msra.mxu0 %v6692_v56  ;;  %v6750_v56 = vld [vmem:[%s8816_s3 + $0x3b0] sm:$0xff]  }
 0x3b5   :  { %5803 = vmatprep.subr.bf16.mxu0 %v6772_v39 }
 0x3b8   :  { %5804 = vmatpush3.bf16.msra.mxu0 %v6693_v51  ;;  %v6751_v51 = vld [vmem:[%s8816_s3 + $0x3b8] sm:$0xff]  }
 0x3b9   :  { %5805 = vmatprep.subr.bf16.mxu0 %v6772_v39 }
 0x3bc   :  { %5806 = vmatpush3.bf16.msra.mxu0 %v6694_v19  ;;  %v6752_v19 = vld [vmem:[%s8816_s3 + $0x3c0] sm:$0xff]  }
 0x3bd   :  { %5807 = vmatprep.subr.bf16.mxu0 %v6772_v39 }
 0x3c0   :  { %5808 = vmatpush3.bf16.msra.mxu0 %v6695_v26  ;;  %v6753_v26 = vld [vmem:[%s8816_s3 + $0x3c8] sm:$0xff]  }
 0x3c1   :  { %5813 = vmatprep.subr.bf16.mxu0 %v6772_v39 }
 0x3c3   :  { %5810 = vmatmul.mubr.bf16.vlgmr.msra.gmra.mrb[0].mxu0 %v3722_v42  ;;  %v6755_v42 = vld [vmem:[%s8816_s3 + $0x3d8] sm:$0xff]  }
 0x3c4   :  { %5814 = vmatpush3.bf16.msra.mxu0 %v6696_v15  ;;  %5829 = vmatprep.mubr.msk.bf16.mxu0 %vm6773_vm0, %v6772_v39  ;;  %v6754_v15 = vld [vmem:[%s8816_s3 + $0x3d0] sm:$0xff]  }
 0x3c5   :  { %5815 = vmatprep.subr.bf16.mxu0 %v6772_v39 }
 0x3c8   :  { %5816 = vmatpush3.bf16.msra.mxu0 %v6697_v45  ;;  %v6756_v45 = vld [vmem:[%s8816_s3 + $0x3e0] sm:$0xff]  }
 0x3c9   :  { %5817 = vmatprep.subr.bf16.mxu0 %v6772_v39 }
 0x3cc   :  { %5818 = vmatpush3.bf16.msra.mxu0 %v6698_v48  ;;  %v6757_v48 = vld [vmem:[%s8816_s3 + $0x3e8] sm:$0xff]  }
 0x3cd   :  { %5819 = vmatprep.subr.bf16.mxu0 %v6772_v39 }
 0x3d0   :  { %5820 = vmatpush3.bf16.msra.mxu0 %v6699_v36  ;;  %v6758_v36 = vld [vmem:[%s8816_s3 + $0x3f0] sm:$0xff]  }
 0x3d1   :  { %5821 = vmatprep.subr.bf16.mxu0 %v6772_v39 }
 0x3d4   :  { %5822 = vmatpush3.bf16.msra.mxu0 %v6700_v61  ;;  %v6759_v61 = vld [vmem:[%s8816_s3 + $0x3f8] sm:$0xff]  }
 0x3d5   :  { %5823 = vmatprep.subr.bf16.mxu0 %v6772_v39 }
 0x3d8   :  { %5824 = vmatpush3.bf16.msra.mxu0 %v6701_v57  ;;  %v6760_v57 = vld [vmem:[%s8818_s5] sm:$0xff]  }
 0x3d9   :  { %5825 = vmatprep.subr.bf16.mxu0 %v6772_v39 }
 0x3dc   :  { %5826 = vmatpush3.bf16.msra.mxu0 %v6702_v47  ;;  %v4582_v47 = vrot.slane %v8308_v60, 4 }
 0x3dd   :  { %5827 = vmatprep.subr.bf16.mxu0 %v6772_v39 }
 0x3e0   :  { %5828 = vmatpush3.bf16.msra.mxu0 %v6703_v17  ;;  %v6761_v17 = vld [vmem:[%s8818_s5 + $0x8] sm:$0xff]  }
 0x3e1   :  { %5833 = vmatprep.subr.bf16.mxu0 %v6772_v39 }
 0x3e3   :  { %5830 = vmatmul.mubr.bf16.vlgmr.msra.gmra.mrb[0].mxu0 %v8252_v33  ;;  %v6715_v33 = vld [vmem:[%s8816_s3 + $0x298] sm:$0xff]  }
 0x3e4   :  { %5834 = vmatpush3.bf16.msra.mxu0 %v6704_v58  ;;  %5849 = vmatprep.mubr.msk.bf16.mxu0 %vm6773_vm0, %v6772_v39  ;;  %v6762_v58 = vld [vmem:[%s8818_s5 + $0x10] sm:$0xff]  }
 0x3e5   :  { %5835 = vmatprep.subr.bf16.mxu0 %v6772_v39 }
 0x3e8   :  { %5836 = vmatpush3.bf16.msra.mxu0 %v6705_v1  ;;  %v6764_v1 = vld [vmem:[%s8818_s5 + $0x20] sm:$0xff]  }
 0x3e9   :  { %5837 = vmatprep.subr.bf16.mxu0 %v6772_v39 }
 0x3ec   :  { %5838 = vmatpush3.bf16.msra.mxu0 %v6706_v0  ;;  %v6765_v0 = vld [vmem:[%s8818_s5 + $0x28] sm:$0xff]  }
 0x3ed   :  { %5839 = vmatprep.subr.bf16.mxu0 %v6772_v39 }
 0x3f0   :  { %5840 = vmatpush3.bf16.msra.mxu0 %v6707_v9  ;;  %v6766_v9 = vld [vmem:[%s8818_s5 + $0x30] sm:$0xff]  }
 0x3f1   :  { %5841 = vmatprep.subr.bf16.mxu0 %v6772_v39 }
 0x3f4   :  { %5842 = vmatpush3.bf16.msra.mxu0 %v6708_v49  ;;  %v6767_v49 = vld [vmem:[%s8818_s5 + $0x38] sm:$0xff]  }
 0x3f5   :  { %5843 = vmatprep.subr.bf16.mxu0 %v6772_v39 }
 0x3f8   :  { %5844 = vmatpush3.bf16.msra.mxu0 %v6709_v52  ;;  %v5122_v52 = vld [vmem:[%s8819_s4] ss:$0 sm:$0xff] }
 0x3f9   :  { %5845 = vmatprep.subr.bf16.mxu0 %v6772_v39 }
 0x3fc   :  { %5846 = vmatpush3.bf16.msra.mxu0 %v6710_v10 }
 0x3fd   :  { %5847 = vmatprep.subr.bf16.mxu0 %v6772_v39 }
 0x400   :  { %5848 = vmatpush3.bf16.msra.mxu0 %v6711_v20 }
 0x401   :  { %5853 = vmatprep.subr.bf16.mxu0 %v6772_v39 }
 0x403   :  { %5850 = vmatmul.mubr.bf16.vlgmr.msra.gmra.mrb[0].mxu0 %v3937_v29 }
 0x404   :  { %5854 = vmatpush3.bf16.msra.mxu0 %v6712_v6  ;;  %5869 = vmatprep.mubr.msk.bf16.mxu0 %vm6773_vm0, %v6772_v39 }
 0x405   :  { %5855 = vmatprep.subr.bf16.mxu0 %v6772_v39 }
 0x408   :  { %5856 = vmatpush3.bf16.msra.mxu0 %v6713_v21 }
 0x409   :  { %5857 = vmatprep.subr.bf16.mxu0 %v6772_v39 }
 0x40c   :  { %5858 = vmatpush3.bf16.msra.mxu0 %v6714_v13 }
 0x40d   :  { %5859 = vmatprep.subr.bf16.mxu0 %v6772_v39 }
 0x410   :  { %5860 = vmatpush3.bf16.msra.mxu0 %v6715_v33 }
 0x411   :  { %5861 = vmatprep.subr.bf16.mxu0 %v6772_v39 }
 0x414   :  { %5862 = vmatpush3.bf16.msra.mxu0 %v6716_v55 }
 0x415   :  { %5863 = vmatprep.subr.bf16.mxu0 %v6772_v39 }
 0x418   :  { %5864 = vmatpush3.bf16.msra.mxu0 %v6717_v11 }
 0x419   :  { %5865 = vmatprep.subr.bf16.mxu0 %v6772_v39 }
 0x41c   :  { %5866 = vmatpush3.bf16.msra.mxu0 %v6718_v63 }
 0x41d   :  { %5867 = vmatprep.subr.bf16.mxu0 %v6772_v39 }
 0x420   :  { %5868 = vmatpush3.bf16.msra.mxu0 %v6719_v50 }
 0x421   :  { %5873 = vmatprep.subr.bf16.mxu0 %v6772_v39 }
 0x423   :  { %5870 = vmatmul.mubr.bf16.vlgmr.msra.gmra.mrb[0].mxu0 %v8272_v4  ;;  %v6731_v4 = vld [vmem:[%s8816_s3 + $0x318] sm:$0xff]  }
 0x424   :  { %5874 = vmatpush3.bf16.msra.mxu0 %v6720_v40  ;;  %5889 = vmatprep.mubr.msk.bf16.mxu0 %vm6773_vm0, %v6772_v39 }
 0x425   :  { %5875 = vmatprep.subr.bf16.mxu0 %v6772_v39 }
 0x428   :  { %5876 = vmatpush3.bf16.msra.mxu0 %v6721_v46 }
 0x429   :  { %5877 = vmatprep.subr.bf16.mxu0 %v6772_v39 }
 0x42c   :  { %5878 = vmatpush3.bf16.msra.mxu0 %v6722_v31 }
 0x42d   :  { %5879 = vmatprep.subr.bf16.mxu0 %v6772_v39 }
 0x430   :  { %5880 = vmatpush3.bf16.msra.mxu0 %v6723_v7 }
 0x431   :  { %5881 = vmatprep.subr.bf16.mxu0 %v6772_v39 }
 0x434   :  { %5882 = vmatpush3.bf16.msra.mxu0 %v6724_v16 }
 0x435   :  { %5883 = vmatprep.subr.bf16.mxu0 %v6772_v39 }
 0x438   :  { %5884 = vmatpush3.bf16.msra.mxu0 %v6725_v28 }
 0x439   :  { %5885 = vmatprep.subr.bf16.mxu0 %v6772_v39 }
 0x43c   :  { %5886 = vmatpush3.bf16.msra.mxu0 %v6726_v44 }
 0x43d   :  { %5887 = vmatprep.subr.bf16.mxu0 %v6772_v39 }
 0x440   :  { %5888 = vmatpush3.bf16.msra.mxu0 %v6727_v14 }
 0x441   :  { %5893 = vmatprep.subr.bf16.mxu0 %v6772_v39 }
 0x443   :  { %5890 = vmatmul.mubr.bf16.vlgmr.msra.gmra.mrb[0].mxu0 %v4152_v2 }
 0x444   :  { %5894 = vmatpush3.bf16.msra.mxu0 %v6728_v12  ;;  %5909 = vmatprep.mubr.msk.bf16.mxu0 %vm6773_vm0, %v6772_v39 }
 0x445   :  { %5895 = vmatprep.subr.bf16.mxu0 %v6772_v39 }
 0x448   :  { %5896 = vmatpush3.bf16.msra.mxu0 %v6729_v32 }
 0x449   :  { %5897 = vmatprep.subr.bf16.mxu0 %v6772_v39 }
 0x44c   :  { %5898 = vmatpush3.bf16.msra.mxu0 %v6730_v23 }
 0x44d   :  { %5899 = vmatprep.subr.bf16.mxu0 %v6772_v39 }
 0x450   :  { %5900 = vmatpush3.bf16.msra.mxu0 %v6731_v4 }
 0x451   :  { %5901 = vmatprep.subr.bf16.mxu0 %v6772_v39 }
 0x454   :  { %5902 = vmatpush3.bf16.msra.mxu0 %v6732_v59 }
 0x455   :  { %5903 = vmatprep.subr.bf16.mxu0 %v6772_v39 }
 0x458   :  { %5904 = vmatpush3.bf16.msra.mxu0 %v6733_v25 }
 0x459   :  { %5905 = vmatprep.subr.bf16.mxu0 %v6772_v39 }
 0x45c   :  { %5906 = vmatpush3.bf16.msra.mxu0 %v6734_v53 }
 0x45d   :  { %5907 = vmatprep.subr.bf16.mxu0 %v6772_v39 }
 0x460   :  { %5908 = vmatpush3.bf16.msra.mxu0 %v6735_v35 }
 0x461   :  { %5913 = vmatprep.subr.bf16.mxu0 %v6772_v39 }
 0x463   :  { %5910 = vmatmul.mubr.bf16.vlgmr.msra.gmra.mrb[0].mxu0 %v8290_v62  ;;  %v6747_v62 = vld [vmem:[%s8816_s3 + $0x398] sm:$0xff]  }
 0x464   :  { %5914 = vmatpush3.bf16.msra.mxu0 %v6736_v41  ;;  %5929 = vmatprep.mubr.msk.bf16.mxu0 %vm6773_vm0, %v6772_v39 }
 0x465   :  { %5915 = vmatprep.subr.bf16.mxu0 %v6772_v39 }
 0x468   :  { %5916 = vmatpush3.bf16.msra.mxu0 %v6737_v24 }
 0x469   :  { %5917 = vmatprep.subr.bf16.mxu0 %v6772_v39 }
 0x46c   :  { %5918 = vmatpush3.bf16.msra.mxu0 %v6738_v22 }
 0x46d   :  { %5919 = vmatprep.subr.bf16.mxu0 %v6772_v39 }
 0x470   :  { %5920 = vmatpush3.bf16.msra.mxu0 %v6739_v8 }
 0x471   :  { %5921 = vmatprep.subr.bf16.mxu0 %v6772_v39 }
 0x474   :  { %5922 = vmatpush3.bf16.msra.mxu0 %v6740_v30 }
 0x475   :  { %5923 = vmatprep.subr.bf16.mxu0 %v6772_v39 }
 0x478   :  { %5924 = vmatpush3.bf16.msra.mxu0 %v6741_v18 }
 0x479   :  { %5925 = vmatprep.subr.bf16.mxu0 %v6772_v39 }
 0x47c   :  { %5926 = vmatpush3.bf16.msra.mxu0 %v6742_v27 }
 0x47d   :  { %5927 = vmatprep.subr.bf16.mxu0 %v6772_v39 }
 0x480   :  { %5928 = vmatpush3.bf16.msra.mxu0 %v6743_v54 }
 0x481   :  { %5933 = vmatprep.subr.bf16.mxu0 %v6772_v39 }
 0x483   :  { %5930 = vmatmul.mubr.bf16.vlgmr.msra.gmra.mrb[0].mxu0 %v4367_v3 }
 0x484   :  { %5934 = vmatpush3.bf16.msra.mxu0 %v6744_v37  ;;  %5949 = vmatprep.mubr.msk.bf16.mxu0 %vm6773_vm0, %v6772_v39 }
 0x485   :  { %5935 = vmatprep.subr.bf16.mxu0 %v6772_v39 }
 0x488   :  { %5936 = vmatpush3.bf16.msra.mxu0 %v6745_v5 }
 0x489   :  { %5937 = vmatprep.subr.bf16.mxu0 %v6772_v39 }
 0x48c   :  { %5938 = vmatpush3.bf16.msra.mxu0 %v6746_v34 }
 0x48d   :  { %5939 = vmatprep.subr.bf16.mxu0 %v6772_v39 }
 0x490   :  { %5940 = vmatpush3.bf16.msra.mxu0 %v6747_v62 }
 0x491   :  { %5941 = vmatprep.subr.bf16.mxu0 %v6772_v39 }
 0x494   :  { %5942 = vmatpush3.bf16.msra.mxu0 %v6748_v38 }
 0x495   :  { %5943 = vmatprep.subr.bf16.mxu0 %v6772_v39 }
 0x498   :  { %5944 = vmatpush3.bf16.msra.mxu0 %v6749_v43 }
 0x499   :  { %5945 = vmatprep.subr.bf16.mxu0 %v6772_v39 }
 0x49c   :  { %5946 = vmatpush3.bf16.msra.mxu0 %v6750_v56 }
 0x49d   :  { %5947 = vmatprep.subr.bf16.mxu0 %v6772_v39 }
 0x4a0   :  { %5948 = vmatpush3.bf16.msra.mxu0 %v6751_v51 }
 0x4a1   :  { %5953 = vmatprep.subr.bf16.mxu0 %v6772_v39 }
 0x4a3   :  { %5950 = vmatmul.mubr.bf16.vlgmr.msra.gmra.mrb[0].mxu0 %v8308_v60  ;;  %v6763_v60 = vld [vmem:[%s8818_s5 + $0x18] sm:$0xff]  }
 0x4a4   :  { %5954 = vmatpush3.bf16.msra.mxu0 %v6752_v19  ;;  %5969 = vmatprep.mubr.msk.bf16.mxu0 %vm6773_vm0, %v6772_v39 }
 0x4a5   :  { %5955 = vmatprep.subr.bf16.mxu0 %v6772_v39 }
 0x4a8   :  { %5956 = vmatpush3.bf16.msra.mxu0 %v6753_v26 }
 0x4a9   :  { %5957 = vmatprep.subr.bf16.mxu0 %v6772_v39 }
 0x4ac   :  { %5958 = vmatpush3.bf16.msra.mxu0 %v6754_v15 }
 0x4ad   :  { %5959 = vmatprep.subr.bf16.mxu0 %v6772_v39 }
 0x4b0   :  { %5960 = vmatpush3.bf16.msra.mxu0 %v6755_v42 }
 0x4b1   :  { %5961 = vmatprep.subr.bf16.mxu0 %v6772_v39 }
 0x4b4   :  { %5962 = vmatpush3.bf16.msra.mxu0 %v6756_v45 }
 0x4b5   :  { %5963 = vmatprep.subr.bf16.mxu0 %v6772_v39 }
 0x4b8   :  { %5964 = vmatpush3.bf16.msra.mxu0 %v6757_v48 }
 0x4b9   :  { %5965 = vmatprep.subr.bf16.mxu0 %v6772_v39 }
 0x4bc   :  { %5966 = vmatpush3.bf16.msra.mxu0 %v6758_v36 }
 0x4bd   :  { %5967 = vmatprep.subr.bf16.mxu0 %v6772_v39 }
 0x4c0   :  { %5968 = vmatpush3.bf16.msra.mxu0 %v6759_v61 }
 0x4c1   :  { %5973 = vmatprep.subr.bf16.mxu0 %v6772_v39 }
 0x4c3   :  { %5970 = vmatmul.mubr.bf16.vlgmr.msra.gmra.mrb[0].mxu0 %v4582_v47 }
 0x4c4   :  { %5974 = vmatpush3.bf16.msra.mxu0 %v6760_v57  ;;  %5989 = vmatprep.mubr.msk.bf16.mxu0 %vm6773_vm0, %v6772_v39 }
 0x4c5   :  { %5975 = vmatprep.subr.bf16.mxu0 %v6772_v39 }
 0x4c8   :  { %5976 = vmatpush3.bf16.msra.mxu0 %v6761_v17 }
 0x4c9   :  { %5977 = vmatprep.subr.bf16.mxu0 %v6772_v39 }
 0x4cc   :  { %5978 = vmatpush3.bf16.msra.mxu0 %v6762_v58 }
 0x4cd   :  { %5979 = vmatprep.subr.bf16.mxu0 %v6772_v39 }
 0x4d0   :  { %5980 = vmatpush3.bf16.msra.mxu0 %v6763_v60 }
 0x4d1   :  { %5981 = vmatprep.subr.bf16.mxu0 %v6772_v39 }
 0x4d4   :  { %5982 = vmatpush3.bf16.msra.mxu0 %v6764_v1 }
 0x4d5   :  { %5983 = vmatprep.subr.bf16.mxu0 %v6772_v39 }
 0x4d8   :  { %5984 = vmatpush3.bf16.msra.mxu0 %v6765_v0 }
 0x4d9   :  { %5985 = vmatprep.subr.bf16.mxu0 %v6772_v39 }
 0x4dc   :  { %5986 = vmatpush3.bf16.msra.mxu0 %v6766_v9 }
 0x4dd   :  { %5987 = vmatprep.subr.bf16.mxu0 %v6772_v39  ;;  %v5491_v39 = vld [vmem:[%s8820_s6] ss:$0 sm:$0xff] }
 0x4e0   :  { %5988 = vmatpush3.bf16.msra.mxu0 %v6767_v49 }
 0x596   :  { %v4666_v10 = vpop.f32.mrb[0].mxu0 }
 0x597   :  { %v5993_v20 = vadd.f32 %v5122_v52, %v4666_v10  ;;  %v5971_v6 = vpop.f32.mrb[1].mxu0 }
 0x598   :  { %v4669_v29 = vpop.f32.mrb[2].mxu0 }
 0x599   :  { %v4673_v21 = vmax.f32 %v5993_v20, 0.0  ;;  %v5972_v13 = vpop.f32.mrb[3].mxu0 }
 0x59b   :  { %v4674_v33 = vpack.c.bf16 %v4673_v21, %v4673_v21 }
 0x59d   :  { %5990 = vmatmul.mubr.bf16.vlgmr.msra.gmra.mrb[4].mxu0 %v4674_v33 }
 0x670   :  { %v4780_v55 = vpop.f32.mrb[4].mxu0 }
 0x671   :  { %v4781_v11 = vadd.f32 %v5491_v39, %v4780_v55  ;;  %v5991_v63 = vpop.f32.mrb[5].mxu0 }
 0x672   :  { %v4783_v50 = vpop.f32.mrb[6].mxu0 }
 0x673   :  { %4786 = vmax.xlane.f32.xlu0 %v4781_v11  ;;  %v5992_v40 = vpop.f32.mrb[7].mxu0 }
 0x700   :  { %v4787_v46 = vpop.xlane.xlu0 %4786 }
 0x701   :  { %v4788_v31 = vsub.f32 %v4781_v11, %v4787_v46 }
 0x703   :  { %v4789_v7 = vmul.f32 1.442695, %v4788_v31 }
 0x705   :  { %6768 = vpow2.f32 %v4789_v7 }
 0x70f   :  { %v6769_v16 = vpop.eup %6768 }
 0x710   :  { %4791 = vadd.xlane.f32.xlu0 %v6769_v16 }
 0x79d   :  { %v4792_v28 = vpop.xlane.xlu0 %4791 }
 0x79e   :  { %6770 = vlog2.f32 %v4792_v28 }
 0x7a8   :  { %v6771_v44 = vpop.eup %6770 }
 0x7a9   :  { %v4794_v14 = vmul.f32 0.6931472, %v6771_v44 }
 0x7ab   :  { %v4795_v12 = vsub.f32 %v4788_v31, %v4794_v14 }
 0x7ad   :  { %4796 = vst [vmem:[%s8821_s7] sm:$0xff] %v4795_v12 }

</bundles_post_ra>
